<compile_context>
chip_gen: v5e
topology: v5e:2x2
jax: 0.10.0
libtpu: 0.0.40
codegen_flags: <defaults>
</compile_context>

<pallas_src>
import numpy as np

import jax
import jax.numpy as jnp
from jax.experimental import pallas as pl
from jax.experimental.pallas import tpu as pltpu


# ----------------------------- batch-tile choice ----------------------------

def _pick_bt(n):
    """Batch tile: multiple of 16, <=128, and >=2 grid steps when possible."""
    n16 = max(16, -(-n // 16) * 16)
    bt = min(128, n16)
    if n16 >= 32 and n16 // bt < 2:          # keep both v7x TensorCores busy
        bt = max(16, (n16 // 2) // 16 * 16)
    return bt


# ------------------------------- fused kernel --------------------------------

def _simplenet_kernel(x_ref, b_ref, w1_ref, w2_ref, wfc_ref, o_ref):
    f32 = jnp.float32
    bf16 = jnp.bfloat16
    bt = x_ref.shape[1]                       # batch tile (static, mult. of 16)

    biases = b_ref[...]                       # (3, 128) f32, packed on host
    b1 = biases[0:1, 0:120]                   # conv1 bias, pooled 120-lane layout
    b2 = biases[1:2, 0:80]                    # conv2 bias, pooled  80-lane layout
    bfc = biases[2:3, :]                      # fc bias, lane-padded to 128

    # conv1 (5x5, 1->10): five banded bf16 MXU matmuls, f32 accumulation.
    # rows = out_row*bt + batch ; 256 lanes = (width parity | pooled col | oc).
    x2 = x_ref[...].reshape(28 * bt, 28)      # rows = in_row*bt + batch
    h1 = jnp.dot(x2[0:24 * bt, :], w1_ref[0], preferred_element_type=f32)
    for ki in range(1, 5):
        h1 = h1 + jnp.dot(x2[ki * bt:(ki + 24) * bt, :], w1_ref[ki],
                          preferred_element_type=f32)

    # 2x2 max-pool, deferred bias, relu  ->  (12*bt, 120) bf16.
    h1 = jnp.maximum(h1[:, 0:120], h1[:, 128:248])             # pool width
    h1 = h1.reshape(12, 2 * bt, 120)
    p1 = jnp.maximum(h1[:, 0:bt, :], h1[:, bt:2 * bt, :])      # pool height
    p1 = jnp.maximum(p1 + b1, 0.0).reshape(12 * bt, 120).astype(bf16)

    # conv2 (5x5, 10->20): same banded scheme on the 12x12x10 tensor.
    h2 = jnp.dot(p1[0:8 * bt, :], w2_ref[0], preferred_element_type=f32)
    for ki in range(1, 5):
        h2 = h2 + jnp.dot(p1[ki * bt:(ki + 8) * bt, :], w2_ref[ki],
                          preferred_element_type=f32)

    # 2x2 max-pool, deferred bias, relu  ->  (4, bt, 80) bf16.
    h2 = jnp.maximum(h2[:, 0:80], h2[:, 128:208])
    h2 = h2.reshape(4, 2 * bt, 80)
    p2 = jnp.maximum(h2[:, 0:bt, :], h2[:, bt:2 * bt, :])
    p2 = jnp.maximum(p2 + b2, 0.0).astype(bf16)

    # fc (320 -> 10, padded to 128 lanes): four accumulated (bt,80)x(80,128)
    # matmuls; fc weights were host-reordered to torch's view(-1, 320) order.
    out = bfc + jnp.dot(p2[0], wfc_ref[0], preferred_element_type=f32)
    for i in range(1, 4):
        out = out + jnp.dot(p2[i], wfc_ref[i], preferred_element_type=f32)
    o_ref[...] = out                           # lane-dense (bt, 128) f32 store


# -------------------------- host-side weight packing -------------------------

def pack_params(w1, b1, w2, b2, wfc, bfc):
    """Pack torch-layout SimpleNet params into the kernel's banded bf16 layout.

    Torch shapes: w1 (10,1,5,5), b1 (10,), w2 (20,10,5,5), b2 (20,),
                  wfc (10,320), bfc (10,).
    """
    w1, b1, w2, b2, wfc, bfc = (np.asarray(a, np.float32)
                                for a in (w1, b1, w2, b2, wfc, bfc))

    # conv1 banded weights: W1[ki, w_in, col], col = (ow%2)*128 + (ow//2)*10 + oc
    W1 = np.zeros((5, 28, 256), np.float32)
    for ow in range(24):
        col0 = (ow % 2) * 128 + (ow // 2) * 10
        for ki in range(5):
            for kj in range(5):
                W1[ki, ow + kj, col0:col0 + 10] = w1[:, 0, ki, kj]

    # conv2 banded weights: input lanes = w_in*10 + ic,
    # output col = (ow%2)*128 + (ow//2)*20 + oc
    W2 = np.zeros((5, 120, 256), np.float32)
    for ow in range(8):
        col0 = (ow % 2) * 128 + (ow // 2) * 20
        for ki in range(5):
            for kj in range(5):
                for ic in range(10):
                    W2[ki, (ow + kj) * 10 + ic, col0:col0 + 20] = w2[:, ic, ki, kj]

    # fc weights (output lanes padded 10 -> 128): kernel feature
    # (row i, lane j*20 + c) == torch feature c*16 + i*4 + j
    # (torch flattens (N, 20, 4, 4) channel-major).
    WFC = np.zeros((4, 80, 128), np.float32)
    for i in range(4):
        for j in range(4):
            for c in range(20):
                WFC[i, j * 20 + c, 0:10] = wfc[:, c * 16 + i * 4 + j]

    # Merged bias constant (f32, added after pooling / accumulation):
    #  row 0: conv1 bias tiled over the 12 pooled columns (lanes p*10 + oc)
    #  row 1: conv2 bias tiled over the  4 pooled columns (lanes p*20 + oc)
    #  row 2: fc bias, lane-padded to 128
    bias = np.zeros((3, 128), np.float32)
    bias[0, 0:120] = np.tile(b1, 12)
    bias[1, 0:80] = np.tile(b2, 4)
    bias[2, 0:10] = bfc

    return dict(
        W1=jnp.asarray(W1, jnp.bfloat16),
        W2=jnp.asarray(W2, jnp.bfloat16),
        WFC=jnp.asarray(WFC, jnp.bfloat16),
        bias=jnp.asarray(bias, jnp.float32),
    )


# -------------------------------- forward pass --------------------------------

def simple_net_forward(x_nchw, packed):
    n = x_nchw.shape[0]
    assert x_nchw.shape[1:] == (1, 28, 28)
    bt = _pick_bt(n)
    assert bt % 16 == 0
    n_pad = ((n + bt - 1) // bt) * bt

    # Cast to bf16 first (halves the layout-change traffic), then put the batch
    # on the inner sublane axis: (N, 1, 28, 28) -> (28, N_pad, 28).
    x = x_nchw.reshape(n, 28, 28).astype(jnp.bfloat16)
    x = jnp.transpose(x, (1, 0, 2))
    if n_pad != n:
        x = jnp.pad(x, ((0, 0), (0, n_pad - n), (0, 0)))

    out = pl.pallas_call(
        _simplenet_kernel,
        grid=(n_pad // bt,),
        out_shape=jax.ShapeDtypeStruct((n_pad, 128), jnp.float32),
        in_specs=[
            pl.BlockSpec((28, bt, 28), lambda i: (0, i, 0)),     # input tile (bf16)
            pl.BlockSpec((3, 128), lambda i: (0, 0)),            # merged biases
            pl.BlockSpec((5, 28, 256), lambda i: (0, 0, 0)),     # conv1 banded W
            pl.BlockSpec((5, 120, 256), lambda i: (0, 0, 0)),    # conv2 banded W
            pl.BlockSpec((4, 80, 128), lambda i: (0, 0, 0)),     # fc W (lane-padded)
        ],
        out_specs=pl.BlockSpec((bt, 128), lambda i: (i, 0)),     # lane-dense output
        compiler_params=pltpu.CompilerParams(
            dimension_semantics=("parallel",),   # batch tiles are independent
            vmem_limit_bytes=32 * 1024 * 1024,   # fits bt=128 incl. v7x's 64 MiB
        ),
    )(x, packed["bias"], packed["W1"], packed["W2"], packed["WFC"])
    return out[:n, :10]


# --------------------------- pure-JAX reference check -------------------------

def _reference_forward(x_nchw, w1, b1, w2, b2, wfc, bfc):
    dn = ("NCHW", "OIHW", "NCHW")
    hp = jax.lax.Precision.HIGHEST
    y = jax.lax.conv_general_dilated(x_nchw, w1, (1, 1), "VALID",
                                     dimension_numbers=dn, precision=hp)
    y = y + b1.reshape(1, -1, 1, 1)
    y = jax.lax.reduce_window(y, -jnp.inf, jax.lax.max,
                              (1, 1, 2, 2), (1, 1, 2, 2), "VALID")
    y = jnp.maximum(y, 0.0)
    y = jax.lax.conv_general_dilated(y, w2, (1, 1), "VALID",
                                     dimension_numbers=dn, precision=hp)
    y = y + b2.reshape(1, -1, 1, 1)
    y = jax.lax.reduce_window(y, -jnp.inf, jax.lax.max,
                              (1, 1, 2, 2), (1, 1, 2, 2), "VALID")
    y = jnp.maximum(y, 0.0)
    y = y.reshape(y.shape[0], 320)
    return jnp.dot(y, wfc.T, precision=hp) + bfc


if __name__ == "__main__":
    key = jax.random.PRNGKey(0)
    k_x, k_xl, *kp = jax.random.split(key, 8)

    # Deterministic synthetic parameters with PyTorch-module shapes.
    w1 = 0.1 * jax.random.normal(kp[0], (10, 1, 5, 5), jnp.float32)
    b1 = 0.1 * jax.random.normal(kp[1], (10,), jnp.float32)
    w2 = 0.1 * jax.random.normal(kp[2], (20, 10, 5, 5), jnp.float32)
    b2 = 0.1 * jax.random.normal(kp[3], (20,), jnp.float32)
    wfc = 0.1 * jax.random.normal(kp[4], (10, 320), jnp.float32)
    bfc = 0.1 * jax.random.normal(kp[5], (10,), jnp.float32)

    packed = pack_params(w1, b1, w2, b2, wfc, bfc)
    fwd = jax.jit(simple_net_forward)

    # Tolerance reflects bf16 MXU inputs with f32 accumulation (~1e-2 level);
    # genuine packing/layout bugs would be ~10-100x larger.
    ATOL = RTOL = 5e-2

    # 1) Small-shape check (batch=2; input must be 28x28 so flatten gives 320).
    x = jax.random.normal(k_x, (2, 1, 28, 28), jnp.float32)
    out = fwd(x, packed)
    jax.block_until_ready(out)
    assert out.shape == (2, 10), out.shape
    ref = _reference_forward(x, w1, b1, w2, b2, wfc, bfc)
    assert jnp.allclose(out, ref, atol=ATOL, rtol=RTOL), (
        float(jnp.max(jnp.abs(out - ref))))

    # 2) Larger batch: exercises the big batch tile, multi-step grid, padding.
    xl = jax.random.normal(k_xl, (130, 1, 28, 28), jnp.float32)
    outl = fwd(xl, packed)
    jax.block_until_ready(outl)
    assert outl.shape == (130, 10), outl.shape
    refl = _reference_forward(xl, w1, b1, w2, b2, wfc, bfc)
    assert jnp.allclose(outl, refl, atol=ATOL, rtol=RTOL), (
        float(jnp.max(jnp.abs(outl - refl))))

    print("KERNEL_OK")
</pallas_src>

<mosaic_0001>
module attributes {stable_mosaic.version = 11 : i64} {
  func.func @_simplenet_kernel(%arg0: i32, %arg1: memref<28x16x28xbf16, #tpu.memory_space<vmem>>, %arg2: memref<3x128xf32, #tpu.memory_space<vmem>>, %arg3: memref<5x28x256xbf16, #tpu.memory_space<vmem>>, %arg4: memref<5x120x256xbf16, #tpu.memory_space<vmem>>, %arg5: memref<4x80x128xbf16, #tpu.memory_space<vmem>>, %arg6: memref<16x128xf32, #tpu.memory_space<vmem>>) attributes {dimension_semantics = [#tpu.dimension_semantics<parallel>], iteration_bounds = array<i64: 1>, scalar_prefetch = 0 : i64, scratch_operands = 0 : i64, tpu.core_type = #tpu.core_type<tc>, window_params = [{transform_indices = @transform_0, window_bounds = array<i64: 28, 16, 28>}, {pipeline_mode = #tpu.pipeline_mode<synchronous>, transform_indices = @transform_1, window_bounds = array<i64: 3, 128>}, {pipeline_mode = #tpu.pipeline_mode<synchronous>, transform_indices = @transform_2, window_bounds = array<i64: 5, 28, 256>}, {pipeline_mode = #tpu.pipeline_mode<synchronous>, transform_indices = @transform_3, window_bounds = array<i64: 5, 120, 256>}, {pipeline_mode = #tpu.pipeline_mode<synchronous>, transform_indices = @transform_4, window_bounds = array<i64: 4, 80, 128>}, {transform_indices = @transform_5, window_bounds = array<i64: 16, 128>}]} {
    %c0 = arith.constant 0 : index
    %c0_0 = arith.constant 0 : index
    %0 = vector.load %arg2[%c0, %c0_0] : memref<3x128xf32, #tpu.memory_space<vmem>>, vector<3x128xf32>
    %1 = vector.extract_strided_slice %0 {offsets = [0, 0], sizes = [1, 120], strides = [1, 1]} : vector<3x128xf32> to vector<1x120xf32>
    %2 = vector.extract_strided_slice %0 {offsets = [1, 0], sizes = [1, 80], strides = [1, 1]} : vector<3x128xf32> to vector<1x80xf32>
    %3 = vector.extract_strided_slice %0 {offsets = [2, 0], sizes = [1, 128], strides = [1, 1]} : vector<3x128xf32> to vector<1x128xf32>
    %c0_1 = arith.constant 0 : index
    %c0_2 = arith.constant 0 : index
    %c0_3 = arith.constant 0 : index
    %4 = vector.load %arg1[%c0_1, %c0_2, %c0_3] : memref<28x16x28xbf16, #tpu.memory_space<vmem>>, vector<28x16x28xbf16>
    %5 = vector.shape_cast %4 : vector<28x16x28xbf16> to vector<448x28xbf16>
    %6 = vector.extract_strided_slice %5 {offsets = [0, 0], sizes = [384, 28], strides = [1, 1]} : vector<448x28xbf16> to vector<384x28xbf16>
    %c0_4 = arith.constant 0 : index
    %c0_5 = arith.constant 0 : index
    %c0_6 = arith.constant 0 : index
    %7 = vector.load %arg3[%c0_4, %c0_5, %c0_6] : memref<5x28x256xbf16, #tpu.memory_space<vmem>>, vector<1x28x256xbf16>
    %8 = vector.shape_cast %7 : vector<1x28x256xbf16> to vector<28x256xbf16>
    %cst = arith.constant dense<0.000000e+00> : vector<384x256xf32>
    %9 = tpu.matmul %6, %8, %cst {dimension_numbers = #tpu.dot_dimension_numbers<[1], [0], [0], [1], [0, 0, 1, 1], [], []>} : vector<384x28xbf16>, vector<28x256xbf16>, vector<384x256xf32> -> vector<384x256xf32>
    %10 = vector.extract_strided_slice %5 {offsets = [16, 0], sizes = [384, 28], strides = [1, 1]} : vector<448x28xbf16> to vector<384x28xbf16>
    %c1 = arith.constant 1 : index
    %c0_7 = arith.constant 0 : index
    %c0_8 = arith.constant 0 : index
    %11 = vector.load %arg3[%c1, %c0_7, %c0_8] : memref<5x28x256xbf16, #tpu.memory_space<vmem>>, vector<1x28x256xbf16>
    %12 = vector.shape_cast %11 : vector<1x28x256xbf16> to vector<28x256xbf16>
    %cst_9 = arith.constant dense<0.000000e+00> : vector<384x256xf32>
    %13 = tpu.matmul %10, %12, %cst_9 {dimension_numbers = #tpu.dot_dimension_numbers<[1], [0], [0], [1], [0, 0, 1, 1], [], []>} : vector<384x28xbf16>, vector<28x256xbf16>, vector<384x256xf32> -> vector<384x256xf32>
    %14 = arith.addf %9, %13 : vector<384x256xf32>
    %15 = vector.extract_strided_slice %5 {offsets = [32, 0], sizes = [384, 28], strides = [1, 1]} : vector<448x28xbf16> to vector<384x28xbf16>
    %c2 = arith.constant 2 : index
    %c0_10 = arith.constant 0 : index
    %c0_11 = arith.constant 0 : index
    %16 = vector.load %arg3[%c2, %c0_10, %c0_11] : memref<5x28x256xbf16, #tpu.memory_space<vmem>>, vector<1x28x256xbf16>
    %17 = vector.shape_cast %16 : vector<1x28x256xbf16> to vector<28x256xbf16>
    %cst_12 = arith.constant dense<0.000000e+00> : vector<384x256xf32>
    %18 = tpu.matmul %15, %17, %cst_12 {dimension_numbers = #tpu.dot_dimension_numbers<[1], [0], [0], [1], [0, 0, 1, 1], [], []>} : vector<384x28xbf16>, vector<28x256xbf16>, vector<384x256xf32> -> vector<384x256xf32>
    %19 = arith.addf %14, %18 : vector<384x256xf32>
    %20 = vector.extract_strided_slice %5 {offsets = [48, 0], sizes = [384, 28], strides = [1, 1]} : vector<448x28xbf16> to vector<384x28xbf16>
    %c3 = arith.constant 3 : index
    %c0_13 = arith.constant 0 : index
    %c0_14 = arith.constant 0 : index
    %21 = vector.load %arg3[%c3, %c0_13, %c0_14] : memref<5x28x256xbf16, #tpu.memory_space<vmem>>, vector<1x28x256xbf16>
    %22 = vector.shape_cast %21 : vector<1x28x256xbf16> to vector<28x256xbf16>
    %cst_15 = arith.constant dense<0.000000e+00> : vector<384x256xf32>
    %23 = tpu.matmul %20, %22, %cst_15 {dimension_numbers = #tpu.dot_dimension_numbers<[1], [0], [0], [1], [0, 0, 1, 1], [], []>} : vector<384x28xbf16>, vector<28x256xbf16>, vector<384x256xf32> -> vector<384x256xf32>
    %24 = arith.addf %19, %23 : vector<384x256xf32>
    %25 = vector.extract_strided_slice %5 {offsets = [64, 0], sizes = [384, 28], strides = [1, 1]} : vector<448x28xbf16> to vector<384x28xbf16>
    %c4 = arith.constant 4 : index
    %c0_16 = arith.constant 0 : index
    %c0_17 = arith.constant 0 : index
    %26 = vector.load %arg3[%c4, %c0_16, %c0_17] : memref<5x28x256xbf16, #tpu.memory_space<vmem>>, vector<1x28x256xbf16>
    %27 = vector.shape_cast %26 : vector<1x28x256xbf16> to vector<28x256xbf16>
    %cst_18 = arith.constant dense<0.000000e+00> : vector<384x256xf32>
    %28 = tpu.matmul %25, %27, %cst_18 {dimension_numbers = #tpu.dot_dimension_numbers<[1], [0], [0], [1], [0, 0, 1, 1], [], []>} : vector<384x28xbf16>, vector<28x256xbf16>, vector<384x256xf32> -> vector<384x256xf32>
    %29 = arith.addf %24, %28 : vector<384x256xf32>
    %30 = vector.extract_strided_slice %29 {offsets = [0, 0], sizes = [384, 120], strides = [1, 1]} : vector<384x256xf32> to vector<384x120xf32>
    %31 = vector.extract_strided_slice %29 {offsets = [0, 128], sizes = [384, 120], strides = [1, 1]} : vector<384x256xf32> to vector<384x120xf32>
    %32 = arith.maximumf %30, %31 : vector<384x120xf32>
    %33 = vector.shape_cast %32 : vector<384x120xf32> to vector<12x32x120xf32>
    %34 = vector.extract_strided_slice %33 {offsets = [0, 0, 0], sizes = [12, 16, 120], strides = [1, 1, 1]} : vector<12x32x120xf32> to vector<12x16x120xf32>
    %35 = vector.extract_strided_slice %33 {offsets = [0, 16, 0], sizes = [12, 16, 120], strides = [1, 1, 1]} : vector<12x32x120xf32> to vector<12x16x120xf32>
    %36 = arith.maximumf %34, %35 : vector<12x16x120xf32>
    %37 = vector.shape_cast %1 : vector<1x120xf32> to vector<1x1x120xf32>
    %38 = vector.broadcast %37 : vector<1x1x120xf32> to vector<12x16x120xf32>
    %39 = arith.addf %36, %38 : vector<12x16x120xf32>
    %cst_19 = arith.constant 0.000000e+00 : f32
    %40 = vector.broadcast %cst_19 : f32 to vector<12x16x120xf32>
    %41 = arith.maximumf %39, %40 : vector<12x16x120xf32>
    %42 = vector.shape_cast %41 : vector<12x16x120xf32> to vector<192x120xf32>
    %43 = arith.truncf %42 : vector<192x120xf32> to vector<192x120xbf16>
    %44 = vector.extract_strided_slice %43 {offsets = [0, 0], sizes = [128, 120], strides = [1, 1]} : vector<192x120xbf16> to vector<128x120xbf16>
    %c0_20 = arith.constant 0 : index
    %c0_21 = arith.constant 0 : index
    %c0_22 = arith.constant 0 : index
    %45 = vector.load %arg4[%c0_20, %c0_21, %c0_22] : memref<5x120x256xbf16, #tpu.memory_space<vmem>>, vector<1x120x256xbf16>
    %46 = vector.shape_cast %45 : vector<1x120x256xbf16> to vector<120x256xbf16>
    %cst_23 = arith.constant dense<0.000000e+00> : vector<128x256xf32>
    %47 = tpu.matmul %44, %46, %cst_23 {dimension_numbers = #tpu.dot_dimension_numbers<[1], [0], [0], [1], [0, 0, 1, 1], [], []>} : vector<128x120xbf16>, vector<120x256xbf16>, vector<128x256xf32> -> vector<128x256xf32>
    %48 = vector.extract_strided_slice %43 {offsets = [16, 0], sizes = [128, 120], strides = [1, 1]} : vector<192x120xbf16> to vector<128x120xbf16>
    %c1_24 = arith.constant 1 : index
    %c0_25 = arith.constant 0 : index
    %c0_26 = arith.constant 0 : index
    %49 = vector.load %arg4[%c1_24, %c0_25, %c0_26] : memref<5x120x256xbf16, #tpu.memory_space<vmem>>, vector<1x120x256xbf16>
    %50 = vector.shape_cast %49 : vector<1x120x256xbf16> to vector<120x256xbf16>
    %cst_27 = arith.constant dense<0.000000e+00> : vector<128x256xf32>
    %51 = tpu.matmul %48, %50, %cst_27 {dimension_numbers = #tpu.dot_dimension_numbers<[1], [0], [0], [1], [0, 0, 1, 1], [], []>} : vector<128x120xbf16>, vector<120x256xbf16>, vector<128x256xf32> -> vector<128x256xf32>
    %52 = arith.addf %47, %51 : vector<128x256xf32>
    %53 = vector.extract_strided_slice %43 {offsets = [32, 0], sizes = [128, 120], strides = [1, 1]} : vector<192x120xbf16> to vector<128x120xbf16>
    %c2_28 = arith.constant 2 : index
    %c0_29 = arith.constant 0 : index
    %c0_30 = arith.constant 0 : index
    %54 = vector.load %arg4[%c2_28, %c0_29, %c0_30] : memref<5x120x256xbf16, #tpu.memory_space<vmem>>, vector<1x120x256xbf16>
    %55 = vector.shape_cast %54 : vector<1x120x256xbf16> to vector<120x256xbf16>
    %cst_31 = arith.constant dense<0.000000e+00> : vector<128x256xf32>
    %56 = tpu.matmul %53, %55, %cst_31 {dimension_numbers = #tpu.dot_dimension_numbers<[1], [0], [0], [1], [0, 0, 1, 1], [], []>} : vector<128x120xbf16>, vector<120x256xbf16>, vector<128x256xf32> -> vector<128x256xf32>
    %57 = arith.addf %52, %56 : vector<128x256xf32>
    %58 = vector.extract_strided_slice %43 {offsets = [48, 0], sizes = [128, 120], strides = [1, 1]} : vector<192x120xbf16> to vector<128x120xbf16>
    %c3_32 = arith.constant 3 : index
    %c0_33 = arith.constant 0 : index
    %c0_34 = arith.constant 0 : index
    %59 = vector.load %arg4[%c3_32, %c0_33, %c0_34] : memref<5x120x256xbf16, #tpu.memory_space<vmem>>, vector<1x120x256xbf16>
    %60 = vector.shape_cast %59 : vector<1x120x256xbf16> to vector<120x256xbf16>
    %cst_35 = arith.constant dense<0.000000e+00> : vector<128x256xf32>
    %61 = tpu.matmul %58, %60, %cst_35 {dimension_numbers = #tpu.dot_dimension_numbers<[1], [0], [0], [1], [0, 0, 1, 1], [], []>} : vector<128x120xbf16>, vector<120x256xbf16>, vector<128x256xf32> -> vector<128x256xf32>
    %62 = arith.addf %57, %61 : vector<128x256xf32>
    %63 = vector.extract_strided_slice %43 {offsets = [64, 0], sizes = [128, 120], strides = [1, 1]} : vector<192x120xbf16> to vector<128x120xbf16>
    %c4_36 = arith.constant 4 : index
    %c0_37 = arith.constant 0 : index
    %c0_38 = arith.constant 0 : index
    %64 = vector.load %arg4[%c4_36, %c0_37, %c0_38] : memref<5x120x256xbf16, #tpu.memory_space<vmem>>, vector<1x120x256xbf16>
    %65 = vector.shape_cast %64 : vector<1x120x256xbf16> to vector<120x256xbf16>
    %cst_39 = arith.constant dense<0.000000e+00> : vector<128x256xf32>
    %66 = tpu.matmul %63, %65, %cst_39 {dimension_numbers = #tpu.dot_dimension_numbers<[1], [0], [0], [1], [0, 0, 1, 1], [], []>} : vector<128x120xbf16>, vector<120x256xbf16>, vector<128x256xf32> -> vector<128x256xf32>
    %67 = arith.addf %62, %66 : vector<128x256xf32>
    %68 = vector.extract_strided_slice %67 {offsets = [0, 0], sizes = [128, 80], strides = [1, 1]} : vector<128x256xf32> to vector<128x80xf32>
    %69 = vector.extract_strided_slice %67 {offsets = [0, 128], sizes = [128, 80], strides = [1, 1]} : vector<128x256xf32> to vector<128x80xf32>
    %70 = arith.maximumf %68, %69 : vector<128x80xf32>
    %71 = vector.shape_cast %70 : vector<128x80xf32> to vector<4x32x80xf32>
    %72 = vector.extract_strided_slice %71 {offsets = [0, 0, 0], sizes = [4, 16, 80], strides = [1, 1, 1]} : vector<4x32x80xf32> to vector<4x16x80xf32>
    %73 = vector.extract_strided_slice %71 {offsets = [0, 16, 0], sizes = [4, 16, 80], strides = [1, 1, 1]} : vector<4x32x80xf32> to vector<4x16x80xf32>
    %74 = arith.maximumf %72, %73 : vector<4x16x80xf32>
    %75 = vector.shape_cast %2 : vector<1x80xf32> to vector<1x1x80xf32>
    %76 = vector.broadcast %75 : vector<1x1x80xf32> to vector<4x16x80xf32>
    %77 = arith.addf %74, %76 : vector<4x16x80xf32>
    %cst_40 = arith.constant 0.000000e+00 : f32
    %78 = vector.broadcast %cst_40 : f32 to vector<4x16x80xf32>
    %79 = arith.maximumf %77, %78 : vector<4x16x80xf32>
    %80 = arith.truncf %79 : vector<4x16x80xf32> to vector<4x16x80xbf16>
    %81 = vector.extract_strided_slice %80 {offsets = [0, 0, 0], sizes = [1, 16, 80], strides = [1, 1, 1]} : vector<4x16x80xbf16> to vector<1x16x80xbf16>
    %82 = vector.shape_cast %81 : vector<1x16x80xbf16> to vector<16x80xbf16>
    %c0_41 = arith.constant 0 : index
    %c0_42 = arith.constant 0 : index
    %c0_43 = arith.constant 0 : index
    %83 = vector.load %arg5[%c0_41, %c0_42, %c0_43] : memref<4x80x128xbf16, #tpu.memory_space<vmem>>, vector<1x80x128xbf16>
    %84 = vector.shape_cast %83 : vector<1x80x128xbf16> to vector<80x128xbf16>
    %cst_44 = arith.constant dense<0.000000e+00> : vector<16x128xf32>
    %85 = tpu.matmul %82, %84, %cst_44 {dimension_numbers = #tpu.dot_dimension_numbers<[1], [0], [0], [1], [0, 0, 1, 1], [], []>} : vector<16x80xbf16>, vector<80x128xbf16>, vector<16x128xf32> -> vector<16x128xf32>
    %86 = vector.broadcast %3 : vector<1x128xf32> to vector<16x128xf32>
    %87 = arith.addf %86, %85 : vector<16x128xf32>
    %88 = vector.extract_strided_slice %80 {offsets = [1, 0, 0], sizes = [1, 16, 80], strides = [1, 1, 1]} : vector<4x16x80xbf16> to vector<1x16x80xbf16>
    %89 = vector.shape_cast %88 : vector<1x16x80xbf16> to vector<16x80xbf16>
    %c1_45 = arith.constant 1 : index
    %c0_46 = arith.constant 0 : index
    %c0_47 = arith.constant 0 : index
    %90 = vector.load %arg5[%c1_45, %c0_46, %c0_47] : memref<4x80x128xbf16, #tpu.memory_space<vmem>>, vector<1x80x128xbf16>
    %91 = vector.shape_cast %90 : vector<1x80x128xbf16> to vector<80x128xbf16>
    %cst_48 = arith.constant dense<0.000000e+00> : vector<16x128xf32>
    %92 = tpu.matmul %89, %91, %cst_48 {dimension_numbers = #tpu.dot_dimension_numbers<[1], [0], [0], [1], [0, 0, 1, 1], [], []>} : vector<16x80xbf16>, vector<80x128xbf16>, vector<16x128xf32> -> vector<16x128xf32>
    %93 = arith.addf %87, %92 : vector<16x128xf32>
    %94 = vector.extract_strided_slice %80 {offsets = [2, 0, 0], sizes = [1, 16, 80], strides = [1, 1, 1]} : vector<4x16x80xbf16> to vector<1x16x80xbf16>
    %95 = vector.shape_cast %94 : vector<1x16x80xbf16> to vector<16x80xbf16>
    %c2_49 = arith.constant 2 : index
    %c0_50 = arith.constant 0 : index
    %c0_51 = arith.constant 0 : index
    %96 = vector.load %arg5[%c2_49, %c0_50, %c0_51] : memref<4x80x128xbf16, #tpu.memory_space<vmem>>, vector<1x80x128xbf16>
    %97 = vector.shape_cast %96 : vector<1x80x128xbf16> to vector<80x128xbf16>
    %cst_52 = arith.constant dense<0.000000e+00> : vector<16x128xf32>
    %98 = tpu.matmul %95, %97, %cst_52 {dimension_numbers = #tpu.dot_dimension_numbers<[1], [0], [0], [1], [0, 0, 1, 1], [], []>} : vector<16x80xbf16>, vector<80x128xbf16>, vector<16x128xf32> -> vector<16x128xf32>
    %99 = arith.addf %93, %98 : vector<16x128xf32>
    %100 = vector.extract_strided_slice %80 {offsets = [3, 0, 0], sizes = [1, 16, 80], strides = [1, 1, 1]} : vector<4x16x80xbf16> to vector<1x16x80xbf16>
    %101 = vector.shape_cast %100 : vector<1x16x80xbf16> to vector<16x80xbf16>
    %c3_53 = arith.constant 3 : index
    %c0_54 = arith.constant 0 : index
    %c0_55 = arith.constant 0 : index
    %102 = vector.load %arg5[%c3_53, %c0_54, %c0_55] : memref<4x80x128xbf16, #tpu.memory_space<vmem>>, vector<1x80x128xbf16>
    %103 = vector.shape_cast %102 : vector<1x80x128xbf16> to vector<80x128xbf16>
    %cst_56 = arith.constant dense<0.000000e+00> : vector<16x128xf32>
    %104 = tpu.matmul %101, %103, %cst_56 {dimension_numbers = #tpu.dot_dimension_numbers<[1], [0], [0], [1], [0, 0, 1, 1], [], []>} : vector<16x80xbf16>, vector<80x128xbf16>, vector<16x128xf32> -> vector<16x128xf32>
    %105 = arith.addf %99, %104 : vector<16x128xf32>
    %c0_57 = arith.constant 0 : index
    %c0_58 = arith.constant 0 : index
    %106 = vector.load %arg6[%c0_57, %c0_58] : memref<16x128xf32, #tpu.memory_space<vmem>>, vector<16x128xf32>
    tpu.vector_store %arg6[%c0_57, %c0_58], %105 {strides = array<i32>} : memref<16x128xf32, #tpu.memory_space<vmem>>, vector<16x128xf32>,
    return
  }
  func.func @transform_0(%arg0: i32) -> (i32, i32, i32) {
    %c0_i32 = arith.constant 0 : i32
    %c0_i32_0 = arith.constant 0 : i32
    %c0_i32_1 = arith.constant 0 : i32
    return %c0_i32, %arg0, %c0_i32_0 : i32, i32, i32
  }
  func.func @transform_1(%arg0: i32) -> (i32, i32) {
    %c0_i32 = arith.constant 0 : i32
    %c0_i32_0 = arith.constant 0 : i32
    %c0_i32_1 = arith.constant 0 : i32
    return %c0_i32, %c0_i32_0 : i32, i32
  }
  func.func @transform_2(%arg0: i32) -> (i32, i32, i32) {
    %c0_i32 = arith.constant 0 : i32
    %c0_i32_0 = arith.constant 0 : i32
    %c0_i32_1 = arith.constant 0 : i32
    %c0_i32_2 = arith.constant 0 : i32
    return %c0_i32, %c0_i32_0, %c0_i32_1 : i32, i32, i32
  }
  func.func @transform_3(%arg0: i32) -> (i32, i32, i32) {
    %c0_i32 = arith.constant 0 : i32
    %c0_i32_0 = arith.constant 0 : i32
    %c0_i32_1 = arith.constant 0 : i32
    %c0_i32_2 = arith.constant 0 : i32
    return %c0_i32, %c0_i32_0, %c0_i32_1 : i32, i32, i32
  }
  func.func @transform_4(%arg0: i32) -> (i32, i32, i32) {
    %c0_i32 = arith.constant 0 : i32
    %c0_i32_0 = arith.constant 0 : i32
    %c0_i32_1 = arith.constant 0 : i32
    %c0_i32_2 = arith.constant 0 : i32
    return %c0_i32, %c0_i32_0, %c0_i32_1 : i32, i32, i32
  }
  func.func @transform_5(%arg0: i32) -> (i32, i32) {
    %c0_i32 = arith.constant 0 : i32
    %c0_i32_0 = arith.constant 0 : i32
    return %arg0, %c0_i32 : i32, i32
  }
}

</mosaic_0001>

<bundles_post_ra>
// kernel: simple_net_forward.1
= control target key start
LH: loop header
LB: loop body
LE: loop exit
PB: predicated region body
PF: predicated region fallthrough
CT: control target
= control target key end

     0   :  { %10 = vsyncpa [#allocation3], 0  ;;  %s4785_s21 = smov [#allocation2]   ;;  %s4786_s23 = smov 128   ;;  %s6828_s0 = inlined_call_operand.vmem [shape: bf16[28,16,28], index: 0, kind: input, shape index: {}]   ;;  %s6829_s1 = inlined_call_operand.vmem [shape: f32[3,128], index: 1, kind: input, shape index: {}]   ;;  %s6830_s2 = inlined_call_operand.vmem [shape: bf16[5,28,256], index: 2, kind: input, shape index: {}]   ;;  %s6831_s3 = inlined_call_operand.hbm [shape: bf16[5,120,256], index: 3, kind: input, shape index: {}]   ;;  %s6832_s4 = inlined_call_operand.vmem [shape: bf16[4,80,128], index: 4, kind: input, shape index: {}]   ;;  %s6833_s5 = inlined_call_operand.vmem [shape: f32[16,128], index: 5, kind: output, shape index: {}]  }
   0x1   :  { %s21_s20 = sshll.u32 %s6831_s3, 4  ;;  %s23_s22 = sshll.u32 %s4785_s21, 4  ;;  %s22_s20 = int_to_ptr.hbm [resolvable:$true] %s21_s20  ;;  %s24_s22 = int_to_ptr.vmem [resolvable:$true] %s23_s22 }
   0x2   :  { %s4787_s24 = smov 8  }
   0x3   :  { %29 = dma.hbm_to_vmem [thread:$0]  %s22_s20, 9600, %s24_s22, [#allocation3], %s4786_s23, %s4786_s23, %s4787_s24  }
   0x4   :  { %4783 = dma.done.wait [#allocation3], 9600  }
   0x5   :  { %4784 = vsyncadd [#allocation3], 4294957696  ;;  %vm314_vm0 = vcmask 1045504   ;;  %v3782_v0 = vld [vmem:[%s6830_s2 + $0x30] sm:$0xf]  ;;  %v4595_v30 = vld [vmem:[%s6828_s0 + $0x8] sm:$0xff] }
   0x6   :  { %v4629_v1 = vld [vmem:[%s6830_s2 + $0x34] sm:$0x30]  ;;  %v4628_v2 = vld [vmem:[%s6830_s2 + $0x34] sm:$0xf]  ;;  %v3784_v4 = vld [vmem:[%s6830_s2 + $0x38] sm:$0x30] }
   0x7   :  { %v3783_v3 = vor.u32 %v4629_v1, %v3782_v0  ;;  %v3850_v5 = vld [vmem:[%s6830_s2 + $0x10] sm:$0xf]  ;;  %v4625_v6 = vld [vmem:[%s6830_s2 + $0x14] sm:$0x30]  ;;  %v3787_v7 = vor.u32 %v4628_v2, %v3784_v4  ;;  %v4624_v9 = vld [vmem:[%s6830_s2 + $0x14] sm:$0xf] }
   0x8   :  { %v3851_v8 = vor.u32 %v4625_v6, %v3850_v5  ;;  %v3852_v10 = vld [vmem:[%s6830_s2 + $0x18] sm:$0x30]  ;;  %v3774_v11 = vld [vmem:[%s6830_s2 + $0x20] sm:$0xf]  ;;  %v4627_v14 = vld [vmem:[%s6830_s2 + $0x24] sm:$0xf0] }
   0x9   :  { %v316_v12 = vsel %vm314_vm0, %v3783_v3, 0  ;;  %v3855_v13 = vor.u32 %v4624_v9, %v3852_v10  ;;  %v4626_v15 = vld [vmem:[%s6830_s2 + $0x24] sm:$0xf]  ;;  %v319_v16 = vsel %vm314_vm0, %v3787_v7, 0  ;;  %v3775_v18 = vor.u32 %v4627_v14, %v3774_v11  ;;  %v3776_v19 = vld [vmem:[%s6830_s2 + $0x28] sm:$0xf0] }
   0xa   :  { %327 = vmatpush.bf16.msra.mxu0 %v316_v12  ;;  %v606_v17 = vsel %vm314_vm0, %v3851_v8, 0  ;;  %v3842_v20 = vld [vmem:[%s6830_s2] sm:$0xf]  ;;  %456 = vmatpush.bf16.msra.mxu1 %v319_v16  ;;  %v3779_v22 = vor.u32 %v4626_v15, %v3776_v19  ;;  %v4623_v23 = vld [vmem:[%s6830_s2 + $0x4] sm:$0xf0]  ;;  %vm241_vm1 = vcmask 228352  }
   0xb   :  { %617 = vmatpush.bf16.msra.mxu2 %v606_v17  ;;  %v609_v21 = vsel %vm314_vm0, %v3855_v13, 0  ;;  %v4622_v24 = vld [vmem:[%s6830_s2 + $0x4] sm:$0xf]  ;;  %v3843_v25 = vor.u32 %v4623_v23, %v3842_v20  ;;  %v3844_v26 = vld [vmem:[%s6830_s2 + $0x8] sm:$0xf0]  ;;  %v4900_v38 = vld [vmem:[%s6828_s0 + $0x10] sm:$0xff] }
   0xc   :  { %746 = vmatpush.bf16.msra.mxu3 %v609_v21  ;;  %v3922_v27 = vld [vmem:[%s6830_s2 + $0x50] sm:$0xf]  ;;  %v4633_v28 = vld [vmem:[%s6830_s2 + $0x54] sm:$0x30]  ;;  %v3847_v29 = vor.u32 %v4622_v24, %v3844_v26  ;;  %v4632_v32 = vld [vmem:[%s6830_s2 + $0x54] sm:$0xf] }
   0xd   :  { %v3923_v31 = vor.u32 %v4633_v28, %v3922_v27  ;;  %v3924_v33 = vld [vmem:[%s6830_s2 + $0x58] sm:$0x30]  ;;  %v4594_v34 = vld [vmem:[%s6828_s0] sm:$0xff]  ;;  %v4937_v41 = vld [vmem:[%s6828_s0 + $0x28] sm:$0xff]  ;;  %vm2358_vm2 = vcmask 1043456   ;;  %vm2333_vm3 = vcmask 982016  }
   0xe   :  { %328 = vmatpush.bf16.msra.mxu0 %v3775_v18  ;;  %v3927_v35 = vor.u32 %v4632_v32, %v3924_v33  ;;  %457 = vmatpush.bf16.msra.mxu1 %v3779_v22  ;;  %v4911_v39 = vld [vmem:[%s6828_s0 + $0x18] sm:$0xff]  ;;  %v4924_v40 = vld [vmem:[%s6828_s0 + $0x20] sm:$0xff]  ;;  %v4950_v42 = vld [vmem:[%s6828_s0 + $0x30] sm:$0xff]  ;;  %vm3449_vm4 = vcmask 654336  }
   0xf   :  { %618 = vmatpush.bf16.msra.mxu2 %v3843_v25  ;;  %v901_v36 = vsel %vm314_vm0, %v3923_v31, 0  ;;  %v4963_v43 = vld [vmem:[%s6828_s0 + $0x38] sm:$0xff]  ;;  %v4976_v44 = vld [vmem:[%s6828_s0 + $0x40] sm:$0xff]  ;;  %v4989_v45 = vld [vmem:[%s6828_s0 + $0x48] sm:$0xff] }
  0x10   :  { %747 = vmatpush.bf16.msra.mxu3 %v3847_v29  ;;  %v904_v37 = vsel %vm314_vm0, %v3927_v35, 0  ;;  %v5006_v55 = vld [vmem:[%s6828_s0 + $0x50] sm:$0xff]  ;;  %v5027_v4 = vld [vmem:[%s6828_s0 + $0x58] sm:$0xff]  ;;  %v3914_v10 = vld [vmem:[%s6830_s2 + $0x40] sm:$0xf] }
  0x11   :  { %3788 = vmatmul.msk.bf16.vlgmr.msra.gmra.mxu0 %vm241_vm1, %v4595_v30  ;;  %3812 = vmatmul.msk.bf16.vlgmr.msra.gmra.mxu1 %vm241_vm1, %v4595_v30  ;;  %v4631_v11 = vld [vmem:[%s6830_s2 + $0x44] sm:$0xf0]  ;;  %v4630_v12 = vld [vmem:[%s6830_s2 + $0x44] sm:$0xf]  ;;  %v3916_v14 = vld [vmem:[%s6830_s2 + $0x48] sm:$0xf0] }
  0x12   :  { %912 = vmatpush.bf16.msrb.mxu0 %v901_v36  ;;  %1041 = vmatpush.bf16.msrb.mxu1 %v904_v37  ;;  %v3915_v13 = vor.u32 %v4631_v11, %v3914_v10  ;;  %v3919_v16 = vor.u32 %v4630_v12, %v3916_v14  ;;  %v5060_v23 = vld [vmem:[%s6828_s0 + $0x60] sm:$0xff]  ;;  %v5081_v36 = vld [vmem:[%s6828_s0 + $0x68] sm:$0xff] }
  0x13   :  { %3856 = vmatmul.msk.bf16.vlgmr.msra.gmra.mxu2 %vm241_vm1, %v4594_v34  ;;  %3880 = vmatmul.msk.bf16.vlgmr.msra.gmra.mxu3 %vm241_vm1, %v4594_v34 }
  0x16   :  { %913 = vmatpush.bf16.msrb.mxu0 %v3915_v13  ;;  %1042 = vmatpush.bf16.msrb.mxu1 %v3919_v16  ;;  %v5123_v16 = vld [vmem:[%s6828_s0 + $0x78] sm:$0xff] }
  0x21   :  { %3789 = vmatmul.msk.bf16.gmra.mxu0 %vm241_vm1, %v4900_v38  ;;  %3813 = vmatmul.msk.bf16.gmra.mxu1 %vm241_vm1, %v4900_v38 }
  0x23   :  { %3857 = vmatmul.msk.bf16.gmra.mxu2 %vm241_vm1, %v4595_v30  ;;  %3881 = vmatmul.msk.bf16.gmra.mxu3 %vm241_vm1, %v4595_v30 }
  0x31   :  { %3790 = vmatmul.msk.bf16.gmra.mxu0 %vm241_vm1, %v4911_v39  ;;  %3814 = vmatmul.msk.bf16.gmra.mxu1 %vm241_vm1, %v4911_v39 }
  0x33   :  { %3858 = vmatmul.msk.bf16.gmra.mxu2 %vm241_vm1, %v4900_v38  ;;  %3882 = vmatmul.msk.bf16.gmra.mxu3 %vm241_vm1, %v4900_v38 }
  0x41   :  { %3791 = vmatmul.msk.bf16.gmra.mxu0 %vm241_vm1, %v4924_v40  ;;  %3815 = vmatmul.msk.bf16.gmra.mxu1 %vm241_vm1, %v4924_v40 }
  0x43   :  { %3859 = vmatmul.msk.bf16.gmra.mxu2 %vm241_vm1, %v4911_v39  ;;  %3883 = vmatmul.msk.bf16.gmra.mxu3 %vm241_vm1, %v4911_v39 }
  0x51   :  { %3792 = vmatmul.msk.bf16.gmra.mxu0 %vm241_vm1, %v4937_v41  ;;  %3816 = vmatmul.msk.bf16.gmra.mxu1 %vm241_vm1, %v4937_v41 }
  0x53   :  { %3860 = vmatmul.msk.bf16.gmra.mxu2 %vm241_vm1, %v4924_v40  ;;  %3884 = vmatmul.msk.bf16.gmra.mxu3 %vm241_vm1, %v4924_v40 }
  0x61   :  { %3793 = vmatmul.msk.bf16.gmra.mxu0 %vm241_vm1, %v4950_v42  ;;  %3817 = vmatmul.msk.bf16.gmra.mxu1 %vm241_vm1, %v4950_v42 }
  0x63   :  { %3861 = vmatmul.msk.bf16.gmra.mxu2 %vm241_vm1, %v4937_v41  ;;  %3885 = vmatmul.msk.bf16.gmra.mxu3 %vm241_vm1, %v4937_v41 }
  0x71   :  { %3794 = vmatmul.msk.bf16.gmra.mxu0 %vm241_vm1, %v4963_v43  ;;  %3818 = vmatmul.msk.bf16.gmra.mxu1 %vm241_vm1, %v4963_v43 }
  0x73   :  { %3862 = vmatmul.msk.bf16.gmra.mxu2 %vm241_vm1, %v4950_v42  ;;  %3886 = vmatmul.msk.bf16.gmra.mxu3 %vm241_vm1, %v4950_v42 }
  0x81   :  { %3795 = vmatmul.msk.bf16.gmra.mxu0 %vm241_vm1, %v4976_v44  ;;  %3819 = vmatmul.msk.bf16.gmra.mxu1 %vm241_vm1, %v4976_v44 }
  0x83   :  { %3863 = vmatmul.msk.bf16.gmra.mxu2 %vm241_vm1, %v4963_v43  ;;  %3887 = vmatmul.msk.bf16.gmra.mxu3 %vm241_vm1, %v4963_v43 }
  0x8e   :  { %v330_v46 = vpop.f32.mrf.mxu0  ;;  %v459_v47 = vpop.f32.mrf.mxu1 }
  0x91   :  { %3796 = vmatmul.msk.bf16.gmra.mxu0 %vm241_vm1, %v4989_v45  ;;  %3820 = vmatmul.msk.bf16.gmra.mxu1 %vm241_vm1, %v4989_v45 }
  0x93   :  { %3864 = vmatmul.msk.bf16.gmra.mxu2 %vm241_vm1, %v4976_v44  ;;  %3888 = vmatmul.msk.bf16.gmra.mxu3 %vm241_vm1, %v4976_v44 }
  0x96   :  { %v620_v48 = vpop.f32.mrf.mxu2  ;;  %v749_v50 = vpop.f32.mrf.mxu3 }
  0x97   :  { %v4999_v49 = vadd.f32 %v620_v48, %v330_v46  ;;  %v332_v51 = vpop.f32.mrf.mxu0  ;;  %v5001_v52 = vadd.f32 %v749_v50, %v459_v47  ;;  %v461_v53 = vpop.f32.mrf.mxu1 }
  0x9e   :  { %v622_v54 = vpop.f32.mrf.mxu2  ;;  %v751_v57 = vpop.f32.mrf.mxu3 }
  0x9f   :  { %v5008_v56 = vadd.f32 %v622_v54, %v332_v51  ;;  %v335_v58 = vpop.f32.mrf.mxu0  ;;  %v5010_v59 = vadd.f32 %v751_v57, %v461_v53  ;;  %v464_v60 = vpop.f32.mrf.mxu1 }
  0xa1   :  { %3797 = vmatmul.msk.bf16.gmra.mxu0 %vm241_vm1, %v5006_v55  ;;  %3821 = vmatmul.msk.bf16.gmra.mxu1 %vm241_vm1, %v5006_v55 }
  0xa3   :  { %3865 = vmatmul.msk.bf16.gmra.mxu2 %vm241_vm1, %v4989_v45  ;;  %3889 = vmatmul.msk.bf16.gmra.mxu3 %vm241_vm1, %v4989_v45 }
  0xa6   :  { %v625_v61 = vpop.f32.mrf.mxu2  ;;  %v754_v63 = vpop.f32.mrf.mxu3 }
  0xa7   :  { %v5020_v62 = vadd.f32 %v625_v61, %v335_v58  ;;  %v337_v0 = vpop.f32.mrf.mxu0  ;;  %v5022_v1 = vadd.f32 %v754_v63, %v464_v60  ;;  %v466_v2 = vpop.f32.mrf.mxu1  ;;  %v5102_v63 = vld [vmem:[%s6828_s0 + $0x70] sm:$0xff] }
  0xae   :  { %v627_v3 = vpop.f32.mrf.mxu2  ;;  %v756_v6 = vpop.f32.mrf.mxu3 }
  0xaf   :  { %v5029_v5 = vadd.f32 %v627_v3, %v337_v0  ;;  %v340_v7 = vpop.f32.mrf.mxu0  ;;  %v5031_v8 = vadd.f32 %v756_v6, %v466_v2  ;;  %v469_v9 = vpop.f32.mrf.mxu1 }
  0xb1   :  { %3798 = vmatmul.msk.bf16.gmra.mxu0 %vm241_vm1, %v5027_v4  ;;  %3822 = vmatmul.msk.bf16.gmra.mxu1 %vm241_vm1, %v5027_v4 }
  0xb3   :  { %3866 = vmatmul.msk.bf16.gmra.mxu2 %vm241_vm1, %v5006_v55  ;;  %3890 = vmatmul.msk.bf16.gmra.mxu3 %vm241_vm1, %v5006_v55 }
  0xb6   :  { %v630_v15 = vpop.f32.mrf.mxu2  ;;  %v759_v18 = vpop.f32.mrf.mxu3 }
  0xb7   :  { %v5053_v17 = vadd.f32 %v630_v15, %v340_v7  ;;  %v342_v19 = vpop.f32.mrf.mxu0  ;;  %v5055_v20 = vadd.f32 %v759_v18, %v469_v9  ;;  %v471_v21 = vpop.f32.mrf.mxu1 }
  0xbe   :  { %v632_v22 = vpop.f32.mrf.mxu2  ;;  %v761_v25 = vpop.f32.mrf.mxu3 }
  0xbf   :  { %v5062_v24 = vadd.f32 %v632_v22, %v342_v19  ;;  %v345_v26 = vpop.f32.mrf.mxu0  ;;  %v5064_v27 = vadd.f32 %v761_v25, %v471_v21  ;;  %v474_v28 = vpop.f32.mrf.mxu1 }
  0xc1   :  { %3799 = vmatmul.msk.bf16.gmra.mxu0 %vm241_vm1, %v5060_v23  ;;  %3823 = vmatmul.msk.bf16.gmra.mxu1 %vm241_vm1, %v5060_v23 }
  0xc3   :  { %3867 = vmatmul.msk.bf16.gmra.mxu2 %vm241_vm1, %v5027_v4  ;;  %3891 = vmatmul.msk.bf16.gmra.mxu3 %vm241_vm1, %v5027_v4 }
  0xc6   :  { %v635_v29 = vpop.f32.mrf.mxu2  ;;  %v764_v31 = vpop.f32.mrf.mxu3 }
  0xc7   :  { %v5074_v30 = vadd.f32 %v635_v29, %v345_v26  ;;  %v347_v32 = vpop.f32.mrf.mxu0  ;;  %v5076_v33 = vadd.f32 %v764_v31, %v474_v28  ;;  %v476_v34 = vpop.f32.mrf.mxu1 }
  0xce   :  { %v637_v35 = vpop.f32.mrf.mxu2  ;;  %v766_v46 = vpop.f32.mrf.mxu3 }
  0xcf   :  { %v5083_v37 = vadd.f32 %v637_v35, %v347_v32  ;;  %v350_v47 = vpop.f32.mrf.mxu0  ;;  %v5085_v48 = vadd.f32 %v766_v46, %v476_v34  ;;  %v479_v50 = vpop.f32.mrf.mxu1  ;;  %v5144_v46 = vld [vmem:[%s6828_s0 + $0x80] sm:$0xff] }
  0xd1   :  { %3800 = vmatmul.msk.bf16.gmra.mxu0 %vm241_vm1, %v5081_v36  ;;  %3824 = vmatmul.msk.bf16.gmra.mxu1 %vm241_vm1, %v5081_v36 }
  0xd3   :  { %3868 = vmatmul.msk.bf16.gmra.mxu2 %vm241_vm1, %v5060_v23  ;;  %3892 = vmatmul.msk.bf16.gmra.mxu3 %vm241_vm1, %v5060_v23 }
  0xd6   :  { %v640_v51 = vpop.f32.mrf.mxu2  ;;  %v769_v54 = vpop.f32.mrf.mxu3 }
  0xd7   :  { %v5095_v53 = vadd.f32 %v640_v51, %v350_v47  ;;  %v352_v57 = vpop.f32.mrf.mxu0  ;;  %v5097_v58 = vadd.f32 %v769_v54, %v479_v50  ;;  %v481_v60 = vpop.f32.mrf.mxu1 }
  0xde   :  { %v642_v61 = vpop.f32.mrf.mxu2  ;;  %v771_v2 = vpop.f32.mrf.mxu3 }
  0xdf   :  { %v5104_v0 = vadd.f32 %v642_v61, %v352_v57  ;;  %v355_v3 = vpop.f32.mrf.mxu0  ;;  %v5106_v6 = vadd.f32 %v771_v2, %v481_v60  ;;  %v484_v7 = vpop.f32.mrf.mxu1 }
  0xe1   :  { %3801 = vmatmul.msk.bf16.gmra.mxu0 %vm241_vm1, %v5102_v63  ;;  %3825 = vmatmul.msk.bf16.gmra.mxu1 %vm241_vm1, %v5102_v63 }
  0xe3   :  { %3869 = vmatmul.msk.bf16.gmra.mxu2 %vm241_vm1, %v5081_v36  ;;  %3893 = vmatmul.msk.bf16.gmra.mxu3 %vm241_vm1, %v5081_v36 }
  0xe6   :  { %v645_v9 = vpop.f32.mrf.mxu2  ;;  %v774_v11 = vpop.f32.mrf.mxu3 }
  0xe7   :  { %v5116_v10 = vadd.f32 %v645_v9, %v355_v3  ;;  %v357_v12 = vpop.f32.mrf.mxu0  ;;  %v5118_v13 = vadd.f32 %v774_v11, %v484_v7  ;;  %v486_v14 = vpop.f32.mrf.mxu1 }
  0xee   :  { %v647_v15 = vpop.f32.mrf.mxu2  ;;  %v776_v19 = vpop.f32.mrf.mxu3 }
  0xef   :  { %v5125_v18 = vadd.f32 %v647_v15, %v357_v12  ;;  %v360_v21 = vpop.f32.mrf.mxu0  ;;  %v5127_v22 = vadd.f32 %v776_v19, %v486_v14  ;;  %v489_v25 = vpop.f32.mrf.mxu1  ;;  %v5165_v12 = vld [vmem:[%s6828_s0 + $0x88] sm:$0xff] }
  0xf1   :  { %3802 = vmatmul.msk.bf16.gmra.mxu0 %vm241_vm1, %v5123_v16  ;;  %3826 = vmatmul.msk.bf16.gmra.mxu1 %vm241_vm1, %v5123_v16 }
  0xf3   :  { %3870 = vmatmul.msk.bf16.gmra.mxu2 %vm241_vm1, %v5102_v63  ;;  %3894 = vmatmul.msk.bf16.gmra.mxu3 %vm241_vm1, %v5102_v63 }
  0xf6   :  { %v650_v26 = vpop.f32.mrf.mxu2  ;;  %v779_v29 = vpop.f32.mrf.mxu3 }
  0xf7   :  { %v5137_v28 = vadd.f32 %v650_v26, %v360_v21  ;;  %v362_v31 = vpop.f32.mrf.mxu0  ;;  %v5139_v32 = vadd.f32 %v779_v29, %v489_v25  ;;  %v491_v34 = vpop.f32.mrf.mxu1 }
  0xfe   :  { %v652_v35 = vpop.f32.mrf.mxu2  ;;  %v781_v50 = vpop.f32.mrf.mxu3 }
  0xff   :  { %v5146_v47 = vadd.f32 %v652_v35, %v362_v31  ;;  %v365_v51 = vpop.f32.mrf.mxu0  ;;  %v5148_v54 = vadd.f32 %v781_v50, %v491_v34  ;;  %v494_v57 = vpop.f32.mrf.mxu1 }
 0x101   :  { %3803 = vmatmul.msk.bf16.gmra.mxu0 %vm241_vm1, %v5144_v46  ;;  %3827 = vmatmul.msk.bf16.gmra.mxu1 %vm241_vm1, %v5144_v46 }
 0x103   :  { %3871 = vmatmul.msk.bf16.gmra.mxu2 %vm241_vm1, %v5123_v16  ;;  %3895 = vmatmul.msk.bf16.gmra.mxu3 %vm241_vm1, %v5123_v16 }
 0x106   :  { %v655_v60 = vpop.f32.mrf.mxu2  ;;  %v784_v2 = vpop.f32.mrf.mxu3 }
 0x107   :  { %v5158_v61 = vadd.f32 %v655_v60, %v365_v51  ;;  %v367_v3 = vpop.f32.mrf.mxu0  ;;  %v5160_v7 = vadd.f32 %v784_v2, %v494_v57  ;;  %v496_v9 = vpop.f32.mrf.mxu1  ;;  %v5186_v57 = vld [vmem:[%s6828_s0 + $0x90] sm:$0xff] }
 0x10e   :  { %v657_v11 = vpop.f32.mrf.mxu2  ;;  %v786_v15 = vpop.f32.mrf.mxu3 }
 0x10f   :  { %v5167_v14 = vadd.f32 %v657_v11, %v367_v3  ;;  %v370_v19 = vpop.f32.mrf.mxu0  ;;  %v5169_v21 = vadd.f32 %v786_v15, %v496_v9  ;;  %v499_v25 = vpop.f32.mrf.mxu1 }
 0x111   :  { %6843 = vst [vmem:[#allocation5_spill] sm:$0xff] %v5167_v14  ;;  %3804 = vmatmul.msk.bf16.gmra.mxu0 %vm241_vm1, %v5165_v12  ;;  %3828 = vmatmul.msk.bf16.gmra.mxu1 %vm241_vm1, %v5165_v12 }
 0x112   :  { %6844 = vst [vmem:[#allocation6_spill] sm:$0xff] %v5169_v21 }
 0x113   :  { %3872 = vmatmul.msk.bf16.gmra.mxu2 %vm241_vm1, %v5144_v46  ;;  %3896 = vmatmul.msk.bf16.gmra.mxu3 %vm241_vm1, %v5144_v46 }
 0x116   :  { %v660_v26 = vpop.f32.mrf.mxu2  ;;  %v789_v31 = vpop.f32.mrf.mxu3 }
 0x117   :  { %v5179_v29 = vadd.f32 %v660_v26, %v370_v19  ;;  %v372_v34 = vpop.f32.mrf.mxu0  ;;  %v5181_v35 = vadd.f32 %v789_v31, %v499_v25  ;;  %v501_v50 = vpop.f32.mrf.mxu1 }
 0x119   :  { %6845 = vst [vmem:[#allocation7_spill] sm:$0xff] %v5179_v29 }
 0x11a   :  { %6846 = vst [vmem:[#allocation8_spill] sm:$0xff] %v5181_v35 }
 0x11e   :  { %v662_v51 = vpop.f32.mrf.mxu2  ;;  %v791_v2 = vpop.f32.mrf.mxu3 }
 0x11f   :  { %v5188_v60 = vadd.f32 %v662_v51, %v372_v34  ;;  %v375_v3 = vpop.f32.mrf.mxu0  ;;  %v5190_v9 = vadd.f32 %v791_v2, %v501_v50  ;;  %v504_v11 = vpop.f32.mrf.mxu1  ;;  %v3994_v50 = vld [vmem:[%s6830_s2 + $0x70] sm:$0xf]  ;;  %v4637_v51 = vld [vmem:[%s6830_s2 + $0x74] sm:$0x30]  ;;  %v4636_v2 = vld [vmem:[%s6830_s2 + $0x74] sm:$0xf] }
 0x121   :  { %6847 = vst [vmem:[#allocation9_spill] sm:$0xff] %v5188_v60  ;;  %3805 = vmatmul.msk.bf16.gmra.mxu0 %vm241_vm1, %v5186_v57  ;;  %3829 = vmatmul.msk.bf16.gmra.mxu1 %vm241_vm1, %v5186_v57 }
 0x122   :  { %6848 = vst [vmem:[#allocation10_spill] sm:$0xff] %v5190_v9  ;;  %v3995_v9 = vor.u32 %v4637_v51, %v3994_v50 }
 0x123   :  { %3873 = vmatmul.msk.bf16.gmra.mxu2 %vm241_vm1, %v5165_v12  ;;  %3897 = vmatmul.msk.bf16.gmra.mxu3 %vm241_vm1, %v5165_v12 }
 0x126   :  { %v665_v15 = vpop.f32.mrf.mxu2  ;;  %v794_v25 = vpop.f32.mrf.mxu3 }
 0x127   :  { %v5200_v19 = vadd.f32 %v665_v15, %v375_v3  ;;  %v377_v26 = vpop.f32.mrf.mxu0  ;;  %v5202_v31 = vadd.f32 %v794_v25, %v504_v11  ;;  %v506_v34 = vpop.f32.mrf.mxu1  ;;  %v3996_v3 = vld [vmem:[%s6830_s2 + $0x78] sm:$0x30]  ;;  %v1292_v15 = vsel %vm314_vm0, %v3995_v9, 0 }
 0x128   :  { %v3999_v11 = vor.u32 %v4636_v2, %v3996_v3  ;;  %1303 = vmatpush.bf16.msrb.mxu2 %v1292_v15  ;;  %v5242_v15 = vld [vmem:[%s6828_s0 + $0xa0] sm:$0xff] }
 0x129   :  { %6849 = vst [vmem:[#allocation11_spill] sm:$0xff] %v5200_v19  ;;  %v5221_v19 = vld [vmem:[%s6828_s0 + $0x98] sm:$0xff] }
 0x12a   :  { %6850 = vst [vmem:[#allocation12_spill] sm:$0xff] %v5202_v31  ;;  %v1295_v25 = vsel %vm314_vm0, %v3999_v11, 0 }
 0x12b   :  { %1432 = vmatpush.bf16.msrb.mxu3 %v1295_v25  ;;  %6851 = vst [vmem:[#allocation13_spill] sm:$0xff] %v5221_v19 }
 0x12c   :  { %6856 = vst [vmem:[#allocation18_spill] sm:$0xff] %v5242_v15 }
 0x12e   :  { %v667_v31 = vpop.f32.mrf.mxu2  ;;  %v796_v50 = vpop.f32.mrf.mxu3 }
 0x12f   :  { %v5223_v60 = vadd.f32 %v667_v31, %v377_v26  ;;  %v380_v51 = vpop.f32.mrf.mxu0  ;;  %v5225_v35 = vadd.f32 %v796_v50, %v506_v34  ;;  %v509_v29 = vpop.f32.mrf.mxu1 }
 0x131   :  { %6852 = vst [vmem:[#allocation14_spill] sm:$0xff] %v5223_v60  ;;  %3806 = vmatmul.msk.bf16.gmra.mxu0 %vm241_vm1, %v5221_v19  ;;  %3830 = vmatmul.msk.bf16.gmra.mxu1 %vm241_vm1, %v5221_v19 }
 0x132   :  { %6853 = vst [vmem:[#allocation15_spill] sm:$0xff] %v5225_v35 }
 0x133   :  { %3874 = vmatmul.msk.bf16.gmra.mxu2 %vm241_vm1, %v5186_v57  ;;  %3898 = vmatmul.msk.bf16.gmra.mxu3 %vm241_vm1, %v5186_v57 }
 0x136   :  { %v670_v9 = vpop.f32.mrf.mxu2  ;;  %v799_v31 = vpop.f32.mrf.mxu3 }
 0x137   :  { %v5235_v26 = vadd.f32 %v670_v9, %v380_v51  ;;  %v382_v2 = vpop.f32.mrf.mxu0  ;;  %v5237_v34 = vadd.f32 %v799_v31, %v509_v29  ;;  %v511_v3 = vpop.f32.mrf.mxu1 }
 0x139   :  { %6854 = vst [vmem:[#allocation16_spill] sm:$0xff] %v5235_v26 }
 0x13a   :  { %6855 = vst [vmem:[#allocation17_spill] sm:$0xff] %v5237_v34 }
 0x13e   :  { %v672_v11 = vpop.f32.mrf.mxu2  ;;  %v801_v50 = vpop.f32.mrf.mxu3 }
 0x13f   :  { %v5244_v25 = vadd.f32 %v672_v11, %v382_v2  ;;  %v385_v35 = vpop.f32.mrf.mxu0  ;;  %v5246_v60 = vadd.f32 %v801_v50, %v511_v3  ;;  %v514_v21 = vpop.f32.mrf.mxu1  ;;  %v5263_v50 = vld [vmem:[%s6828_s0 + $0xa8] sm:$0xff] }
 0x140   :  { %6861 = vst [vmem:[#allocation23_spill] sm:$0xff] %v5263_v50 }
 0x141   :  { %6857 = vst [vmem:[#allocation19_spill] sm:$0xff] %v5244_v25  ;;  %3807 = vmatmul.msk.bf16.gmra.mxu0 %vm241_vm1, %v5242_v15  ;;  %3831 = vmatmul.msk.bf16.gmra.mxu1 %vm241_vm1, %v5242_v15 }
 0x142   :  { %6858 = vst [vmem:[#allocation20_spill] sm:$0xff] %v5246_v60 }
 0x143   :  { %3875 = vmatmul.msk.bf16.gmra.mxu2 %vm241_vm1, %v5221_v19  ;;  %3899 = vmatmul.msk.bf16.gmra.mxu3 %vm241_vm1, %v5221_v19 }
 0x146   :  { %v675_v29 = vpop.f32.mrf.mxu2  ;;  %v804_v9 = vpop.f32.mrf.mxu3 }
 0x147   :  { %v5256_v51 = vadd.f32 %v675_v29, %v385_v35  ;;  %v387_v31 = vpop.f32.mrf.mxu0  ;;  %v5258_v2 = vadd.f32 %v804_v9, %v514_v21  ;;  %v516_v3 = vpop.f32.mrf.mxu1 }
 0x149   :  { %6859 = vst [vmem:[#allocation21_spill] sm:$0xff] %v5256_v51 }
 0x14a   :  { %6860 = vst [vmem:[#allocation22_spill] sm:$0xff] %v5258_v2 }
 0x14e   :  { %v677_v11 = vpop.f32.mrf.mxu2  ;;  %v806_v25 = vpop.f32.mrf.mxu3 }
 0x14f   :  { %v5265_v60 = vadd.f32 %v677_v11, %v387_v31  ;;  %v390_v34 = vpop.f32.mrf.mxu0  ;;  %v5267_v26 = vadd.f32 %v806_v25, %v516_v3  ;;  %v519_v19 = vpop.f32.mrf.mxu1  ;;  %v5284_v11 = vld [vmem:[%s6828_s0 + $0xb0] sm:$0xff] }
 0x150   :  { %6866 = vst [vmem:[#allocation28_spill] sm:$0xff] %v5284_v11 }
 0x151   :  { %6862 = vst [vmem:[#allocation24_spill] sm:$0xff] %v5265_v60  ;;  %3808 = vmatmul.msk.bf16.gmra.mxu0 %vm241_vm1, %v5263_v50  ;;  %3832 = vmatmul.msk.bf16.gmra.mxu1 %vm241_vm1, %v5263_v50 }
 0x152   :  { %6863 = vst [vmem:[#allocation25_spill] sm:$0xff] %v5267_v26 }
 0x153   :  { %3876 = vmatmul.msk.bf16.gmra.mxu2 %vm241_vm1, %v5242_v15  ;;  %3900 = vmatmul.msk.bf16.gmra.mxu3 %vm241_vm1, %v5242_v15 }
 0x156   :  { %v680_v21 = vpop.f32.mrf.mxu2  ;;  %v809_v29 = vpop.f32.mrf.mxu3 }
 0x157   :  { %v5277_v35 = vadd.f32 %v680_v21, %v390_v34  ;;  %v392_v9 = vpop.f32.mrf.mxu0  ;;  %v5279_v25 = vadd.f32 %v809_v29, %v519_v19  ;;  %v521_v31 = vpop.f32.mrf.mxu1 }
 0x159   :  { %6864 = vst [vmem:[#allocation26_spill] sm:$0xff] %v5277_v35 }
 0x15a   :  { %6865 = vst [vmem:[#allocation27_spill] sm:$0xff] %v5279_v25 }
 0x15e   :  { %v682_v3 = vpop.f32.mrf.mxu2  ;;  %v811_v60 = vpop.f32.mrf.mxu3 }
 0x15f   :  { %v5286_v26 = vadd.f32 %v682_v3, %v392_v9  ;;  %v395_v2 = vpop.f32.mrf.mxu0  ;;  %v5288_v51 = vadd.f32 %v811_v60, %v521_v31  ;;  %v524_v15 = vpop.f32.mrf.mxu1  ;;  %v5305_v31 = vld [vmem:[%s6828_s0 + $0xb8] sm:$0xff] }
 0x161   :  { %6867 = vst [vmem:[#allocation29_spill] sm:$0xff] %v5286_v26  ;;  %3809 = vmatmul.msk.bf16.gmra.mxu0 %vm241_vm1, %v5284_v11  ;;  %3833 = vmatmul.msk.bf16.gmra.mxu1 %vm241_vm1, %v5284_v11  ;;  %v3988_v26 = vld [vmem:[%s6830_s2 + $0x68] sm:$0xf0] }
 0x162   :  { %6868 = vst [vmem:[#allocation30_spill] sm:$0xff] %v5288_v51  ;;  %v3986_v51 = vld [vmem:[%s6830_s2 + $0x60] sm:$0xf] }
 0x163   :  { %3877 = vmatmul.msk.bf16.gmra.mxu2 %vm241_vm1, %v5263_v50  ;;  %3901 = vmatmul.msk.bf16.gmra.mxu3 %vm241_vm1, %v5263_v50 }
 0x166   :  { %v685_v19 = vpop.f32.mrf.mxu2  ;;  %v814_v21 = vpop.f32.mrf.mxu3 }
 0x167   :  { %v5298_v34 = vadd.f32 %v685_v19, %v395_v2  ;;  %v397_v29 = vpop.f32.mrf.mxu0  ;;  %v5300_v60 = vadd.f32 %v814_v21, %v524_v15  ;;  %v526_v9 = vpop.f32.mrf.mxu1  ;;  %v4635_v2 = vld [vmem:[%s6830_s2 + $0x64] sm:$0xf0]  ;;  %v4634_v15 = vld [vmem:[%s6830_s2 + $0x64] sm:$0xf] }
 0x168   :  { %v3991_v50 = vor.u32 %v4634_v15, %v3988_v26  ;;  %v4641_v26 = vld [vmem:[%s6830_s2 + $0x94] sm:$0x30] }
 0x169   :  { %6869 = vst [vmem:[#allocation31_spill] sm:$0xff] %v5298_v34  ;;  %v3987_v34 = vor.u32 %v4635_v2, %v3986_v51  ;;  %v4066_v51 = vld [vmem:[%s6830_s2 + $0x90] sm:$0xf] }
 0x16a   :  { %6870 = vst [vmem:[#allocation32_spill] sm:$0xff] %v5300_v60  ;;  %1433 = vmatpush.bf16.msrb.mxu3 %v3991_v50  ;;  %v4640_v50 = vld [vmem:[%s6830_s2 + $0x94] sm:$0xf] }
 0x16b   :  { %1304 = vmatpush.bf16.msrb.mxu2 %v3987_v34  ;;  %v4067_v34 = vor.u32 %v4641_v26, %v4066_v51  ;;  %v5352_v26 = vld [vmem:[%s6828_s0 + $0xc0] sm:$0xff] }
 0x16e   :  { %v687_v3 = vpop.f32.mrf.mxu2  ;;  %v816_v21 = vpop.f32.mrf.mxu3 }
 0x16f   :  { %v5316_v19 = vadd.f32 %v687_v3, %v397_v29  ;;  %v400_v60 = vpop.f32.mrf.mxu0  ;;  %v5321_v25 = vadd.f32 %v816_v21, %v526_v9  ;;  %v529_v35 = vpop.f32.mrf.mxu1  ;;  %v4068_v29 = vld [vmem:[%s6830_s2 + $0x98] sm:$0x30] }
 0x170   :  { %v4071_v3 = vor.u32 %v4640_v50, %v4068_v29 }
 0x171   :  { %6871 = vst [vmem:[#allocation33_spill] sm:$0xff] %v5316_v19  ;;  %3810 = vmatmul.msk.bf16.gmra.mxu0 %vm241_vm1, %v5305_v31  ;;  %3834 = vmatmul.msk.bf16.gmra.mxu1 %vm241_vm1, %v5305_v31 }
 0x172   :  { %6872 = vst [vmem:[#allocation34_spill] sm:$0xff] %v5321_v25  ;;  %v1683_v25 = vsel %vm314_vm0, %v4067_v34, 0  ;;  %v1686_v14 = vsel %vm314_vm0, %v4071_v3, 0 }
 0x173   :  { %3878 = vmatmul.msk.bf16.gmra.mxu2 %vm241_vm1, %v5284_v11  ;;  %3902 = vmatmul.msk.bf16.gmra.mxu3 %vm241_vm1, %v5284_v11 }
 0x174   :  { %1694 = vmatpush.bf16.msra.mxu0 %v1683_v25  ;;  %1823 = vmatpush.bf16.msra.mxu1 %v1686_v14 }
 0x176   :  { %v690_v9 = vpop.f32.mrf.mxu2  ;;  %v819_v15 = vpop.f32.mrf.mxu3 }
 0x177   :  { %v5343_v2 = vadd.f32 %v690_v9, %v400_v60  ;;  %v402_v21 = vpop.f32.mrf.mxu0  ;;  %v5346_v19 = vadd.f32 %v819_v15, %v529_v35  ;;  %v531_v11 = vpop.f32.mrf.mxu1 }
 0x179   :  { %6873 = vst [vmem:[#allocation35_spill] sm:$0xff] %v5346_v19 }
 0x17e   :  { %v692_v51 = vpop.f32.mrf.mxu2  ;;  %v821_v60 = vpop.f32.mrf.mxu3 }
 0x17f   :  { %v5354_v50 = vadd.f32 %v692_v51, %v402_v21  ;;  %v405_v29 = vpop.f32.mrf.mxu0  ;;  %v5356_v9 = vadd.f32 %v821_v60, %v531_v11  ;;  %v534_v34 = vpop.f32.mrf.mxu1 }
 0x181   :  { %6874 = vst [vmem:[#allocation36_spill] sm:$0xff] %v5354_v50  ;;  %3811 = vmatmul.msk.bf16.gmra.mxu0 %vm241_vm1, %v5352_v26  ;;  %3835 = vmatmul.msk.bf16.gmra.mxu1 %vm241_vm1, %v5352_v26 }
 0x182   :  { %6875 = vst [vmem:[#allocation37_spill] sm:$0xff] %v5356_v9 }
 0x183   :  { %3879 = vmatmul.msk.bf16.gmra.mxu2 %vm241_vm1, %v5305_v31  ;;  %3903 = vmatmul.msk.bf16.gmra.mxu3 %vm241_vm1, %v5305_v31 }
 0x186   :  { %v695_v14 = vpop.f32.mrf.mxu2  ;;  %v824_v25 = vpop.f32.mrf.mxu3 }
 0x187   :  { %v5366_v35 = vadd.f32 %v695_v14, %v405_v29  ;;  %v407_v3 = vpop.f32.mrf.mxu0  ;;  %v5368_v11 = vadd.f32 %v824_v25, %v534_v34  ;;  %v536_v15 = vpop.f32.mrf.mxu1 }
 0x189   :  { %6876 = vst [vmem:[#allocation38_spill] sm:$0xff] %v5368_v11 }
 0x18e   :  { %v697_v21 = vpop.f32.mrf.mxu2  ;;  %v826_v60 = vpop.f32.mrf.mxu3 }
 0x18f   :  { %v5370_v51 = vadd.f32 %v697_v21, %v407_v3  ;;  %v410_v9 = vpop.f32.mrf.mxu0  ;;  %v5372_v50 = vadd.f32 %v826_v60, %v536_v15  ;;  %v539_v19 = vpop.f32.mrf.mxu1 }
 0x191   :  { %6877 = vst [vmem:[#allocation39_spill] sm:$0xff] %v5370_v51  ;;  %3928 = vmatmul.msk.bf16.vlgmr.msrb.gmra.mxu0 %vm241_vm1, %v4900_v38  ;;  %3952 = vmatmul.msk.bf16.vlgmr.msrb.gmra.mxu1 %vm241_vm1, %v4900_v38 }
 0x192   :  { %6878 = vst [vmem:[#allocation40_spill] sm:$0xff] %v5372_v50 }
 0x193   :  { %4000 = vmatmul.msk.bf16.vlgmr.msrb.gmra.mxu2 %vm241_vm1, %v4911_v39  ;;  %4024 = vmatmul.msk.bf16.vlgmr.msrb.gmra.mxu3 %vm241_vm1, %v4911_v39 }
 0x196   :  { %v700_v29 = vpop.f32.mrf.mxu2  ;;  %v829_v14 = vpop.f32.mrf.mxu3 }
 0x197   :  { %v5382_v34 = vadd.f32 %v700_v29, %v410_v9  ;;  %v412_v25 = vpop.f32.mrf.mxu0  ;;  %v5384_v3 = vadd.f32 %v829_v14, %v539_v19  ;;  %v541_v15 = vpop.f32.mrf.mxu1 }
 0x199   :  { %6879 = vst [vmem:[#allocation41_spill] sm:$0xff] %v5384_v3 }
 0x19e   :  { %v702_v21 = vpop.f32.mrf.mxu2  ;;  %v831_v50 = vpop.f32.mrf.mxu3 }
 0x19f   :  { %v5386_v60 = vadd.f32 %v702_v21, %v412_v25  ;;  %v415_v51 = vpop.f32.mrf.mxu0  ;;  %v5388_v38 = vadd.f32 %v831_v50, %v541_v15  ;;  %v544_v11 = vpop.f32.mrf.mxu1 }
 0x1a1   :  { %6880 = vst [vmem:[#allocation42_spill] sm:$0xff] %v5386_v60  ;;  %3929 = vmatmul.msk.bf16.gmra.mxu0 %vm241_vm1, %v4911_v39  ;;  %3953 = vmatmul.msk.bf16.gmra.mxu1 %vm241_vm1, %v4911_v39 }
 0x1a2   :  { %6881 = vst [vmem:[#allocation43_spill] sm:$0xff] %v5388_v38 }
 0x1a3   :  { %4001 = vmatmul.msk.bf16.gmra.mxu2 %vm241_vm1, %v4924_v40  ;;  %4025 = vmatmul.msk.bf16.gmra.mxu3 %vm241_vm1, %v4924_v40 }
 0x1a6   :  { %v705_v19 = vpop.f32.mrf.mxu2  ;;  %v834_v29 = vpop.f32.mrf.mxu3 }
 0x1a7   :  { %v5398_v9 = vadd.f32 %v705_v19, %v415_v51  ;;  %v417_v14 = vpop.f32.mrf.mxu0  ;;  %v5400_v50 = vadd.f32 %v834_v29, %v544_v11  ;;  %v546_v25 = vpop.f32.mrf.mxu1 }
 0x1a9   :  { %6882 = vst [vmem:[#allocation44_spill] sm:$0xff] %v5400_v50 }
 0x1ae   :  { %v707_v15 = vpop.f32.mrf.mxu2  ;;  %v836_v38 = vpop.f32.mrf.mxu3 }
 0x1af   :  { %v5402_v21 = vadd.f32 %v707_v15, %v417_v14  ;;  %v420_v60 = vpop.f32.mrf.mxu0  ;;  %v5404_v39 = vadd.f32 %v836_v38, %v546_v25  ;;  %v549_v3 = vpop.f32.mrf.mxu1 }
 0x1b1   :  { %6883 = vst [vmem:[#allocation45_spill] sm:$0xff] %v5402_v21  ;;  %3930 = vmatmul.msk.bf16.gmra.mxu0 %vm241_vm1, %v4924_v40  ;;  %3954 = vmatmul.msk.bf16.gmra.mxu1 %vm241_vm1, %v4924_v40 }
 0x1b2   :  { %6884 = vst [vmem:[#allocation46_spill] sm:$0xff] %v5404_v39 }
 0x1b3   :  { %4002 = vmatmul.msk.bf16.gmra.mxu2 %vm241_vm1, %v4937_v41  ;;  %4026 = vmatmul.msk.bf16.gmra.mxu3 %vm241_vm1, %v4937_v41 }
 0x1b6   :  { %v710_v11 = vpop.f32.mrf.mxu2  ;;  %v839_v19 = vpop.f32.mrf.mxu3 }
 0x1b7   :  { %v5414_v51 = vadd.f32 %v710_v11, %v420_v60  ;;  %v422_v29 = vpop.f32.mrf.mxu0  ;;  %v5416_v38 = vadd.f32 %v839_v19, %v549_v3  ;;  %v551_v14 = vpop.f32.mrf.mxu1 }
 0x1b9   :  { %6885 = vst [vmem:[#allocation47_spill] sm:$0xff] %v5416_v38 }
 0x1be   :  { %v712_v25 = vpop.f32.mrf.mxu2  ;;  %v841_v39 = vpop.f32.mrf.mxu3 }
 0x1bf   :  { %v5418_v15 = vadd.f32 %v712_v25, %v422_v29  ;;  %v425_v21 = vpop.f32.mrf.mxu0  ;;  %v5420_v40 = vadd.f32 %v841_v39, %v551_v14  ;;  %v554_v50 = vpop.f32.mrf.mxu1 }
 0x1c1   :  { %6886 = vst [vmem:[#allocation48_spill] sm:$0xff] %v5418_v15  ;;  %3931 = vmatmul.msk.bf16.gmra.mxu0 %vm241_vm1, %v4937_v41  ;;  %3955 = vmatmul.msk.bf16.gmra.mxu1 %vm241_vm1, %v4937_v41 }
 0x1c2   :  { %6887 = vst [vmem:[#allocation49_spill] sm:$0xff] %v5420_v40 }
 0x1c3   :  { %4003 = vmatmul.msk.bf16.gmra.mxu2 %vm241_vm1, %v4950_v42  ;;  %4027 = vmatmul.msk.bf16.gmra.mxu3 %vm241_vm1, %v4950_v42 }
 0x1c6   :  { %v715_v3 = vpop.f32.mrf.mxu2  ;;  %v844_v11 = vpop.f32.mrf.mxu3 }
 0x1c7   :  { %v5430_v60 = vadd.f32 %v715_v3, %v425_v21  ;;  %v427_v19 = vpop.f32.mrf.mxu0  ;;  %v5432_v39 = vadd.f32 %v844_v11, %v554_v50  ;;  %v556_v29 = vpop.f32.mrf.mxu1 }
 0x1c9   :  { %6888 = vst [vmem:[#allocation50_spill] sm:$0xff] %v5432_v39 }
 0x1ce   :  { %v717_v14 = vpop.f32.mrf.mxu2  ;;  %v846_v40 = vpop.f32.mrf.mxu3 }
 0x1cf   :  { %v5434_v25 = vadd.f32 %v717_v14, %v427_v19  ;;  %v430_v15 = vpop.f32.mrf.mxu0  ;;  %v5436_v41 = vadd.f32 %v846_v40, %v556_v29  ;;  %v559_v38 = vpop.f32.mrf.mxu1 }
 0x1d1   :  { %6889 = vst [vmem:[#allocation51_spill] sm:$0xff] %v5434_v25  ;;  %3932 = vmatmul.msk.bf16.gmra.mxu0 %vm241_vm1, %v4950_v42  ;;  %3956 = vmatmul.msk.bf16.gmra.mxu1 %vm241_vm1, %v4950_v42 }
 0x1d2   :  { %6890 = vst [vmem:[#allocation52_spill] sm:$0xff] %v5436_v41 }
 0x1d3   :  { %4004 = vmatmul.msk.bf16.gmra.mxu2 %vm241_vm1, %v4963_v43  ;;  %4028 = vmatmul.msk.bf16.gmra.mxu3 %vm241_vm1, %v4963_v43 }
 0x1d6   :  { %v720_v50 = vpop.f32.mrf.mxu2  ;;  %v849_v3 = vpop.f32.mrf.mxu3 }
 0x1d7   :  { %v5446_v21 = vadd.f32 %v720_v50, %v430_v15  ;;  %v432_v11 = vpop.f32.mrf.mxu0  ;;  %v5448_v40 = vadd.f32 %v849_v3, %v559_v38  ;;  %v561_v19 = vpop.f32.mrf.mxu1 }
 0x1d9   :  { %6891 = vst [vmem:[#allocation53_spill] sm:$0xff] %v5448_v40 }
 0x1de   :  { %v722_v29 = vpop.f32.mrf.mxu2  ;;  %v851_v41 = vpop.f32.mrf.mxu3 }
 0x1df   :  { %v5450_v14 = vadd.f32 %v722_v29, %v432_v11  ;;  %v435_v25 = vpop.f32.mrf.mxu0  ;;  %v5452_v42 = vadd.f32 %v851_v41, %v561_v19  ;;  %v564_v39 = vpop.f32.mrf.mxu1 }
 0x1e1   :  { %6892 = vst [vmem:[#allocation54_spill] sm:$0xff] %v5450_v14  ;;  %3933 = vmatmul.msk.bf16.gmra.mxu0 %vm241_vm1, %v4963_v43  ;;  %3957 = vmatmul.msk.bf16.gmra.mxu1 %vm241_vm1, %v4963_v43 }
 0x1e2   :  { %6893 = vst [vmem:[#allocation55_spill] sm:$0xff] %v5452_v42 }
 0x1e3   :  { %4005 = vmatmul.msk.bf16.gmra.mxu2 %vm241_vm1, %v4976_v44  ;;  %4029 = vmatmul.msk.bf16.gmra.mxu3 %vm241_vm1, %v4976_v44 }
 0x1e6   :  { %v725_v38 = vpop.f32.mrf.mxu2  ;;  %v854_v50 = vpop.f32.mrf.mxu3 }
 0x1e7   :  { %v5462_v15 = vadd.f32 %v725_v38, %v435_v25  ;;  %v437_v3 = vpop.f32.mrf.mxu0  ;;  %v5464_v41 = vadd.f32 %v854_v50, %v564_v39  ;;  %v566_v11 = vpop.f32.mrf.mxu1 }
 0x1e9   :  { %6894 = vst [vmem:[#allocation56_spill] sm:$0xff] %v5462_v15 }
 0x1ea   :  { %6895 = vst [vmem:[#allocation57_spill] sm:$0xff] %v5464_v41 }
 0x1ee   :  { %v727_v19 = vpop.f32.mrf.mxu2  ;;  %v856_v42 = vpop.f32.mrf.mxu3 }
 0x1ef   :  { %v5466_v29 = vadd.f32 %v727_v19, %v437_v3  ;;  %v440_v14 = vpop.f32.mrf.mxu0  ;;  %v5468_v43 = vadd.f32 %v856_v42, %v566_v11  ;;  %v569_v40 = vpop.f32.mrf.mxu1 }
 0x1f1   :  { %6896 = vst [vmem:[#allocation58_spill] sm:$0xff] %v5466_v29  ;;  %3934 = vmatmul.msk.bf16.gmra.mxu0 %vm241_vm1, %v4976_v44  ;;  %3958 = vmatmul.msk.bf16.gmra.mxu1 %vm241_vm1, %v4976_v44 }
 0x1f2   :  { %6897 = vst [vmem:[#allocation59_spill] sm:$0xff] %v5468_v43 }
 0x1f3   :  { %4006 = vmatmul.msk.bf16.gmra.mxu2 %vm241_vm1, %v4989_v45  ;;  %4030 = vmatmul.msk.bf16.gmra.mxu3 %vm241_vm1, %v4989_v45 }
 0x1f6   :  { %v730_v39 = vpop.f32.mrf.mxu2  ;;  %v859_v38 = vpop.f32.mrf.mxu3 }
 0x1f7   :  { %v5478_v25 = vadd.f32 %v730_v39, %v440_v14  ;;  %v442_v50 = vpop.f32.mrf.mxu0  ;;  %v5480_v42 = vadd.f32 %v859_v38, %v569_v40  ;;  %v571_v3 = vpop.f32.mrf.mxu1 }
 0x1f9   :  { %6898 = vst [vmem:[#allocation60_spill] sm:$0xff] %v5478_v25 }
 0x1fa   :  { %6899 = vst [vmem:[#allocation61_spill] sm:$0xff] %v5480_v42 }
 0x1fe   :  { %v732_v11 = vpop.f32.mrf.mxu2  ;;  %v861_v43 = vpop.f32.mrf.mxu3 }
 0x1ff   :  { %v5482_v19 = vadd.f32 %v732_v11, %v442_v50  ;;  %v445_v29 = vpop.f32.mrf.mxu0  ;;  %v5484_v44 = vadd.f32 %v861_v43, %v571_v3  ;;  %v574_v41 = vpop.f32.mrf.mxu1 }
 0x201   :  { %6900 = vst [vmem:[#allocation62_spill] sm:$0xff] %v5482_v19  ;;  %3935 = vmatmul.msk.bf16.gmra.mxu0 %vm241_vm1, %v4989_v45  ;;  %3959 = vmatmul.msk.bf16.gmra.mxu1 %vm241_vm1, %v4989_v45 }
 0x202   :  { %6901 = vst [vmem:[#allocation63_spill] sm:$0xff] %v5484_v44 }
 0x203   :  { %4007 = vmatmul.msk.bf16.gmra.mxu2 %vm241_vm1, %v5006_v55  ;;  %4031 = vmatmul.msk.bf16.gmra.mxu3 %vm241_vm1, %v5006_v55 }
 0x206   :  { %v735_v40 = vpop.f32.mrf.mxu2  ;;  %v864_v39 = vpop.f32.mrf.mxu3 }
 0x207   :  { %v5494_v14 = vadd.f32 %v735_v40, %v445_v29  ;;  %v447_v38 = vpop.f32.mrf.mxu0  ;;  %v5496_v43 = vadd.f32 %v864_v39, %v574_v41  ;;  %v576_v50 = vpop.f32.mrf.mxu1 }
 0x20e   :  { %v737_v3 = vpop.f32.mrf.mxu2  ;;  %v866_v44 = vpop.f32.mrf.mxu3 }
 0x20f   :  { %v5498_v11 = vadd.f32 %v737_v3, %v447_v38  ;;  %v915_v19 = vpop.f32.mrf.mxu0  ;;  %v5500_v45 = vadd.f32 %v866_v44, %v576_v50  ;;  %v1044_v25 = vpop.f32.mrf.mxu1 }
 0x210   :  { %v1164_v42 = vadd.f32 %v915_v19, %v4999_v49  ;;  %v1165_v15 = vadd.f32 %v1044_v25, %v5001_v52 }
 0x211   :  { %6902 = vst [vmem:[#allocation64_spill] sm:$0xff] %v5500_v45  ;;  %3936 = vmatmul.msk.bf16.gmra.mxu0 %vm241_vm1, %v5006_v55  ;;  %3960 = vmatmul.msk.bf16.gmra.mxu1 %vm241_vm1, %v5006_v55 }
 0x213   :  { %4008 = vmatmul.msk.bf16.gmra.mxu2 %vm241_vm1, %v5027_v4  ;;  %4032 = vmatmul.msk.bf16.gmra.mxu3 %vm241_vm1, %v5027_v4 }
 0x216   :  { %v1306_v41 = vpop.f32.mrf.mxu2  ;;  %v1435_v44 = vpop.f32.mrf.mxu3 }
 0x217   :  { %v5512_v29 = vadd.f32 %v1306_v41, %v1164_v42  ;;  %v917_v49 = vpop.f32.mrf.mxu0  ;;  %v5514_v19 = vadd.f32 %v1435_v44, %v1165_v15  ;;  %v1046_v25 = vpop.f32.mrf.mxu1 }
 0x218   :  { %v1166_v52 = vadd.f32 %v917_v49, %v5008_v56  ;;  %v1167_v40 = vadd.f32 %v1046_v25, %v5010_v59 }
 0x21e   :  { %v1308_v39 = vpop.f32.mrf.mxu2  ;;  %v1437_v38 = vpop.f32.mrf.mxu3 }
 0x21f   :  { %v5518_v55 = vadd.f32 %v1308_v39, %v1166_v52  ;;  %v920_v50 = vpop.f32.mrf.mxu0  ;;  %v5520_v3 = vadd.f32 %v1437_v38, %v1167_v40  ;;  %v1049_v42 = vpop.f32.mrf.mxu1 }
 0x220   :  { %v1168_v45 = vadd.f32 %v920_v50, %v5020_v62  ;;  %v1169_v41 = vadd.f32 %v1049_v42, %v5022_v1 }
 0x221   :  { %3937 = vmatmul.msk.bf16.gmra.mxu0 %vm241_vm1, %v5027_v4  ;;  %3961 = vmatmul.msk.bf16.gmra.mxu1 %vm241_vm1, %v5027_v4 }
 0x223   :  { %4009 = vmatmul.msk.bf16.gmra.mxu2 %vm241_vm1, %v5060_v23  ;;  %4033 = vmatmul.msk.bf16.gmra.mxu3 %vm241_vm1, %v5060_v23 }
 0x226   :  { %v1311_v56 = vpop.f32.mrf.mxu2  ;;  %v1440_v15 = vpop.f32.mrf.mxu3 }
 0x227   :  { %v5532_v59 = vadd.f32 %v1311_v56, %v1168_v45  ;;  %v922_v62 = vpop.f32.mrf.mxu0  ;;  %v5534_v44 = vadd.f32 %v1440_v15, %v1169_v41  ;;  %v1051_v49 = vpop.f32.mrf.mxu1 }
 0x228   :  { %v1170_v1 = vadd.f32 %v922_v62, %v5029_v5  ;;  %v1171_v52 = vadd.f32 %v1051_v49, %v5031_v8  ;;  %v4058_v5 = vld [vmem:[%s6830_s2 + $0x80] sm:$0xf]  ;;  %v4639_v8 = vld [vmem:[%s6830_s2 + $0x84] sm:$0xf0] }
 0x22e   :  { %v1313_v25 = vpop.f32.mrf.mxu2  ;;  %v1442_v40 = vpop.f32.mrf.mxu3 }
 0x22f   :  { %v5538_v4 = vadd.f32 %v1313_v25, %v1170_v1  ;;  %v925_v39 = vpop.f32.mrf.mxu0  ;;  %v5540_v38 = vadd.f32 %v1442_v40, %v1171_v52  ;;  %v1054_v45 = vpop.f32.mrf.mxu1 }
 0x230   :  { %v1172_v50 = vadd.f32 %v925_v39, %v5053_v17  ;;  %v1173_v42 = vadd.f32 %v1054_v45, %v5055_v20  ;;  %v4638_v17 = vld [vmem:[%s6830_s2 + $0x84] sm:$0xf]  ;;  %v4059_v20 = vor.u32 %v4639_v8, %v4058_v5 }
 0x231   :  { %6903 = vst [vmem:[#allocation65_spill] sm:$0xff] %v5540_v38  ;;  %3938 = vmatmul.msk.bf16.gmra.mxu0 %vm241_vm1, %v5060_v23  ;;  %3962 = vmatmul.msk.bf16.gmra.mxu1 %vm241_vm1, %v5060_v23  ;;  %v4060_v23 = vld [vmem:[%s6830_s2 + $0x88] sm:$0xf0] }
 0x232   :  { %v4063_v56 = vor.u32 %v4638_v17, %v4060_v23  ;;  %1695 = vmatpush.bf16.msra.mxu0 %v4059_v20 }
 0x233   :  { %4010 = vmatmul.msk.bf16.gmra.mxu2 %vm241_vm1, %v5081_v36  ;;  %4034 = vmatmul.msk.bf16.gmra.mxu3 %vm241_vm1, %v5081_v36 }
 0x234   :  { %1824 = vmatpush.bf16.msra.mxu1 %v4063_v56 }
 0x236   :  { %v1316_v41 = vpop.f32.mrf.mxu2  ;;  %v1445_v62 = vpop.f32.mrf.mxu3 }
 0x237   :  { %v5564_v15 = vadd.f32 %v1316_v41, %v1172_v50  ;;  %v927_v1 = vpop.f32.mrf.mxu0  ;;  %v5566_v49 = vadd.f32 %v1445_v62, %v1173_v42  ;;  %v1056_v25 = vpop.f32.mrf.mxu1 }
 0x238   :  { %v1174_v52 = vadd.f32 %v927_v1, %v5062_v24  ;;  %v1175_v40 = vadd.f32 %v1056_v25, %v5064_v27 }
 0x23e   :  { %v1318_v39 = vpop.f32.mrf.mxu2  ;;  %v1447_v5 = vpop.f32.mrf.mxu3 }
 0x23f   :  { %v5570_v45 = vadd.f32 %v1318_v39, %v1174_v52  ;;  %v930_v8 = vpop.f32.mrf.mxu0  ;;  %v5572_v38 = vadd.f32 %v1447_v5, %v1175_v40  ;;  %v1059_v17 = vpop.f32.mrf.mxu1 }
 0x240   :  { %v1176_v50 = vadd.f32 %v930_v8, %v5074_v30  ;;  %v1177_v20 = vadd.f32 %v1059_v17, %v5076_v33 }
 0x241   :  { %3939 = vmatmul.msk.bf16.gmra.mxu0 %vm241_vm1, %v5081_v36  ;;  %3963 = vmatmul.msk.bf16.gmra.mxu1 %vm241_vm1, %v5081_v36 }
 0x243   :  { %4011 = vmatmul.msk.bf16.gmra.mxu2 %vm241_vm1, %v5102_v63  ;;  %4035 = vmatmul.msk.bf16.gmra.mxu3 %vm241_vm1, %v5102_v63 }
 0x246   :  { %v1321_v24 = vpop.f32.mrf.mxu2  ;;  %v1450_v42 = vpop.f32.mrf.mxu3 }
 0x247   :  { %v5584_v27 = vadd.f32 %v1321_v24, %v1176_v50  ;;  %v932_v30 = vpop.f32.mrf.mxu0  ;;  %v5586_v23 = vadd.f32 %v1450_v42, %v1177_v20  ;;  %v1061_v41 = vpop.f32.mrf.mxu1 }
 0x248   :  { %v1178_v33 = vadd.f32 %v932_v30, %v5083_v37  ;;  %v1179_v56 = vadd.f32 %v1061_v41, %v5085_v48 }
 0x24e   :  { %v1323_v62 = vpop.f32.mrf.mxu2  ;;  %v1452_v1 = vpop.f32.mrf.mxu3 }
 0x24f   :  { %v5590_v36 = vadd.f32 %v1323_v62, %v1178_v33  ;;  %v935_v52 = vpop.f32.mrf.mxu0  ;;  %v5592_v25 = vadd.f32 %v1452_v1, %v1179_v56  ;;  %v1064_v39 = vpop.f32.mrf.mxu1 }
 0x250   :  { %v1180_v40 = vadd.f32 %v935_v52, %v5095_v53  ;;  %v1181_v5 = vadd.f32 %v1064_v39, %v5097_v58 }
 0x251   :  { %3940 = vmatmul.msk.bf16.gmra.mxu0 %vm241_vm1, %v5102_v63  ;;  %3964 = vmatmul.msk.bf16.gmra.mxu1 %vm241_vm1, %v5102_v63 }
 0x253   :  { %4012 = vmatmul.msk.bf16.gmra.mxu2 %vm241_vm1, %v5123_v16  ;;  %4036 = vmatmul.msk.bf16.gmra.mxu3 %vm241_vm1, %v5123_v16 }
 0x256   :  { %v1326_v37 = vpop.f32.mrf.mxu2  ;;  %v1455_v8 = vpop.f32.mrf.mxu3 }
 0x257   :  { %v5604_v48 = vadd.f32 %v1326_v37, %v1180_v40  ;;  %v937_v53 = vpop.f32.mrf.mxu0  ;;  %v5606_v50 = vadd.f32 %v1455_v8, %v1181_v5  ;;  %v1066_v17 = vpop.f32.mrf.mxu1 }
 0x258   :  { %v1182_v58 = vadd.f32 %v937_v53, %v5104_v0  ;;  %v1183_v20 = vadd.f32 %v1066_v17, %v5106_v6 }
 0x25e   :  { %v1328_v24 = vpop.f32.mrf.mxu2  ;;  %v1457_v42 = vpop.f32.mrf.mxu3 }
 0x25f   :  { %v5610_v63 = vadd.f32 %v1328_v24, %v1182_v58  ;;  %v940_v30 = vpop.f32.mrf.mxu0  ;;  %v5612_v33 = vadd.f32 %v1457_v42, %v1183_v20  ;;  %v1069_v56 = vpop.f32.mrf.mxu1 }
 0x260   :  { %v1184_v41 = vadd.f32 %v940_v30, %v5116_v10  ;;  %v1185_v62 = vadd.f32 %v1069_v56, %v5118_v13 }
 0x261   :  { %3941 = vmatmul.msk.bf16.gmra.mxu0 %vm241_vm1, %v5123_v16  ;;  %3965 = vmatmul.msk.bf16.gmra.mxu1 %vm241_vm1, %v5123_v16 }
 0x263   :  { %4013 = vmatmul.msk.bf16.gmra.mxu2 %vm241_vm1, %v5144_v46  ;;  %4037 = vmatmul.msk.bf16.gmra.mxu3 %vm241_vm1, %v5144_v46 }
 0x266   :  { %v1331_v0 = vpop.f32.mrf.mxu2  ;;  %v1460_v1 = vpop.f32.mrf.mxu3 }
 0x267   :  { %v5624_v6 = vadd.f32 %v1331_v0, %v1184_v41  ;;  %v942_v10 = vpop.f32.mrf.mxu0  ;;  %v5626_v52 = vadd.f32 %v1460_v1, %v1185_v62  ;;  %v1071_v40 = vpop.f32.mrf.mxu1 }
 0x268   :  { %v1186_v13 = vadd.f32 %v942_v10, %v5125_v18  ;;  %v1187_v39 = vadd.f32 %v1071_v40, %v5127_v22 }
 0x26e   :  { %v1333_v5 = vpop.f32.mrf.mxu2  ;;  %v1462_v37 = vpop.f32.mrf.mxu3 }
 0x26f   :  { %v5630_v16 = vadd.f32 %v1333_v5, %v1186_v13  ;;  %v945_v8 = vpop.f32.mrf.mxu0  ;;  %v5632_v53 = vadd.f32 %v1462_v37, %v1187_v39  ;;  %v1074_v17 = vpop.f32.mrf.mxu1 }
 0x270   :  { %v1188_v58 = vadd.f32 %v945_v8, %v5137_v28  ;;  %v1189_v20 = vadd.f32 %v1074_v17, %v5139_v32 }
 0x271   :  { %3942 = vmatmul.msk.bf16.gmra.mxu0 %vm241_vm1, %v5144_v46  ;;  %3966 = vmatmul.msk.bf16.gmra.mxu1 %vm241_vm1, %v5144_v46 }
 0x273   :  { %4014 = vmatmul.msk.bf16.gmra.mxu2 %vm241_vm1, %v5165_v12  ;;  %4038 = vmatmul.msk.bf16.gmra.mxu3 %vm241_vm1, %v5165_v12 }
 0x276   :  { %v1336_v18 = vpop.f32.mrf.mxu2  ;;  %v1465_v24 = vpop.f32.mrf.mxu3 }
 0x277   :  { %v5644_v22 = vadd.f32 %v1336_v18, %v1188_v58  ;;  %v947_v28 = vpop.f32.mrf.mxu0  ;;  %v5646_v42 = vadd.f32 %v1465_v24, %v1189_v20  ;;  %v1076_v30 = vpop.f32.mrf.mxu1  ;;  %v6905_v58 = vld [vmem:[#allocation6_spill] sm:$0xff] }
 0x278   :  { %v1190_v32 = vadd.f32 %v947_v28, %v5146_v47  ;;  %v1191_v41 = vadd.f32 %v1076_v30, %v5148_v54 }
 0x27e   :  { %v1338_v56 = vpop.f32.mrf.mxu2  ;;  %v1467_v62 = vpop.f32.mrf.mxu3 }
 0x27f   :  { %v5650_v46 = vadd.f32 %v1338_v56, %v1190_v32  ;;  %v950_v0 = vpop.f32.mrf.mxu0  ;;  %v5652_v1 = vadd.f32 %v1467_v62, %v1191_v41  ;;  %v1079_v13 = vpop.f32.mrf.mxu1  ;;  %v6906_v32 = vld [vmem:[#allocation7_spill] sm:$0xff]  ;;  %v6907_v56 = vld [vmem:[#allocation8_spill] sm:$0xff] }
 0x280   :  { %v1192_v10 = vadd.f32 %v950_v0, %v5158_v61  ;;  %v1193_v40 = vadd.f32 %v1079_v13, %v5160_v7  ;;  %v6904_v7 = vld [vmem:[#allocation5_spill] sm:$0xff] }
 0x281   :  { %3943 = vmatmul.msk.bf16.gmra.mxu0 %vm241_vm1, %v5165_v12  ;;  %3967 = vmatmul.msk.bf16.gmra.mxu1 %vm241_vm1, %v5165_v12  ;;  %v6908_v0 = vld [vmem:[#allocation13_spill] sm:$0xff] }
 0x283   :  { %4015 = vmatmul.msk.bf16.gmra.mxu2 %vm241_vm1, %v5186_v57  ;;  %4039 = vmatmul.msk.bf16.gmra.mxu3 %vm241_vm1, %v5186_v57 }
 0x286   :  { %v1341_v47 = vpop.f32.mrf.mxu2  ;;  %v1470_v39 = vpop.f32.mrf.mxu3 }
 0x287   :  { %v5664_v54 = vadd.f32 %v1341_v47, %v1192_v10  ;;  %v952_v61 = vpop.f32.mrf.mxu0  ;;  %v5666_v5 = vadd.f32 %v1470_v39, %v1193_v40  ;;  %v1081_v8 = vpop.f32.mrf.mxu1 }
 0x288   :  { %v1194_v37 = vadd.f32 %v952_v61, %v6904_v7  ;;  %v1195_v17 = vadd.f32 %v1081_v8, %v6905_v58  ;;  %v6910_v61 = vld [vmem:[#allocation9_spill] sm:$0xff]  ;;  %v6911_v8 = vld [vmem:[#allocation10_spill] sm:$0xff] }
 0x28e   :  { %v1343_v20 = vpop.f32.mrf.mxu2  ;;  %v1472_v18 = vpop.f32.mrf.mxu3 }
 0x28f   :  { %v5670_v12 = vadd.f32 %v1343_v20, %v1194_v37  ;;  %v955_v24 = vpop.f32.mrf.mxu0  ;;  %v5672_v28 = vadd.f32 %v1472_v18, %v1195_v17  ;;  %v1084_v41 = vpop.f32.mrf.mxu1 }
 0x290   :  { %v1196_v30 = vadd.f32 %v955_v24, %v6906_v32  ;;  %v1197_v62 = vadd.f32 %v1084_v41, %v6907_v56  ;;  %v6914_v32 = vld [vmem:[#allocation11_spill] sm:$0xff]  ;;  %v6915_v56 = vld [vmem:[#allocation12_spill] sm:$0xff] }
 0x291   :  { %3944 = vmatmul.msk.bf16.gmra.mxu0 %vm241_vm1, %v5186_v57  ;;  %3968 = vmatmul.msk.bf16.gmra.mxu1 %vm241_vm1, %v5186_v57 }
 0x293   :  { %4016 = vmatmul.msk.bf16.gmra.mxu2 %vm241_vm1, %v6908_v0  ;;  %4040 = vmatmul.msk.bf16.gmra.mxu3 %vm241_vm1, %v6908_v0 }
 0x296   :  { %v1346_v10 = vpop.f32.mrf.mxu2  ;;  %v1475_v40 = vpop.f32.mrf.mxu3 }
 0x297   :  { %v5684_v13 = vadd.f32 %v1346_v10, %v1196_v30  ;;  %v957_v47 = vpop.f32.mrf.mxu0  ;;  %v5686_v39 = vadd.f32 %v1475_v40, %v1197_v62  ;;  %v1086_v37 = vpop.f32.mrf.mxu1  ;;  %v6916_v62 = vld [vmem:[#allocation18_spill] sm:$0xff] }
 0x298   :  { %v1198_v7 = vadd.f32 %v957_v47, %v6910_v61  ;;  %v1199_v58 = vadd.f32 %v1086_v37, %v6911_v8  ;;  %v6919_v8 = vld [vmem:[#allocation14_spill] sm:$0xff] }
 0x299   :  { %6909 = vst [vmem:[#allocation5_spill] sm:$0xff] %v5686_v39 }
 0x29e   :  { %v1348_v17 = vpop.f32.mrf.mxu2  ;;  %v1477_v20 = vpop.f32.mrf.mxu3 }
 0x29f   :  { %v5690_v57 = vadd.f32 %v1348_v17, %v1198_v7  ;;  %v960_v18 = vpop.f32.mrf.mxu0  ;;  %v5692_v24 = vadd.f32 %v1477_v20, %v1199_v58  ;;  %v1089_v30 = vpop.f32.mrf.mxu1  ;;  %v6920_v20 = vld [vmem:[#allocation15_spill] sm:$0xff] }
 0x2a0   :  { %v1200_v41 = vadd.f32 %v960_v18, %v6914_v32  ;;  %v1201_v10 = vadd.f32 %v1089_v30, %v6915_v56  ;;  %v2217_v32 = vld [vmem:[#allocation2 + $0xe8] sm:$0xff] }
 0x2a1   :  { %6912 = vst [vmem:[#allocation6_spill] sm:$0xff] %v5690_v57  ;;  %3945 = vmatmul.msk.bf16.gmra.mxu0 %vm241_vm1, %v6908_v0  ;;  %3969 = vmatmul.msk.bf16.gmra.mxu1 %vm241_vm1, %v6908_v0  ;;  %v2301_v0 = vunpack.c.l.b16 %v2217_v32  ;;  %v2302_v30 = vunpack.c.h.b16 %v2217_v32  ;;  %v6924_v32 = vld [vmem:[#allocation17_spill] sm:$0xff] }
 0x2a2   :  { %6913 = vst [vmem:[#allocation7_spill] sm:$0xff] %v5692_v24 }
 0x2a3   :  { %4017 = vmatmul.msk.bf16.gmra.mxu2 %vm241_vm1, %v6916_v62  ;;  %4041 = vmatmul.msk.bf16.gmra.mxu3 %vm241_vm1, %v6916_v62  ;;  %v2317_v56 = vpack.c.b16 %v2301_v0, %v2301_v0  ;;  %v2318_v24 = vpack.c.b16 %v2302_v30, %v2302_v30  ;;  %v6928_v30 = vld [vmem:[#allocation19_spill] sm:$0xff] }
 0x2a5   :  { %v2360_v39 = vsel %vm2358_vm2, %v2317_v56, 0 }
 0x2a6   :  { %v1351_v40 = vpop.f32.mrf.mxu2  ;;  %v1480_v61 = vpop.f32.mrf.mxu3  ;;  %2365 = vmatpush.bf16.msra.mxu2 %v2360_v39 }
 0x2a7   :  { %v5704_v47 = vadd.f32 %v1351_v40, %v1200_v41  ;;  %v962_v7 = vpop.f32.mrf.mxu0  ;;  %v5706_v37 = vadd.f32 %v1480_v61, %v1201_v10  ;;  %v1091_v17 = vpop.f32.mrf.mxu1  ;;  %v2363_v41 = vsel %vm2358_vm2, %v2318_v24, 0  ;;  %v6925_v24 = vld [vmem:[#allocation23_spill] sm:$0xff] }
 0x2a8   :  { %v1202_v58 = vadd.f32 %v962_v7, %v6919_v8  ;;  %v1203_v18 = vadd.f32 %v1091_v17, %v6920_v20  ;;  %2414 = vmatpush.bf16.msra.mxu3 %v2363_v41  ;;  %v6923_v8 = vld [vmem:[#allocation16_spill] sm:$0xff] }
 0x2a9   :  { %6917 = vst [vmem:[#allocation8_spill] sm:$0xff] %v5704_v47 }
 0x2aa   :  { %6918 = vst [vmem:[#allocation13_spill] sm:$0xff] %v5706_v37 }
 0x2ae   :  { %v1353_v57 = vpop.f32.mrf.mxu2  ;;  %v1482_v10 = vpop.f32.mrf.mxu3 }
 0x2af   :  { %v5712_v40 = vadd.f32 %v1353_v57, %v1202_v58  ;;  %v965_v61 = vpop.f32.mrf.mxu0  ;;  %v5714_v7 = vadd.f32 %v1482_v10, %v1203_v18  ;;  %v1094_v20 = vpop.f32.mrf.mxu1  ;;  %v6929_v10 = vld [vmem:[#allocation20_spill] sm:$0xff] }
 0x2b0   :  { %v1204_v17 = vadd.f32 %v965_v61, %v6923_v8  ;;  %v1205_v37 = vadd.f32 %v1094_v20, %v6924_v32 }
 0x2b1   :  { %6921 = vst [vmem:[#allocation9_spill] sm:$0xff] %v5712_v40  ;;  %3946 = vmatmul.msk.bf16.gmra.mxu0 %vm241_vm1, %v6916_v62  ;;  %3970 = vmatmul.msk.bf16.gmra.mxu1 %vm241_vm1, %v6916_v62  ;;  %v6932_v40 = vld [vmem:[#allocation21_spill] sm:$0xff] }
 0x2b2   :  { %6922 = vst [vmem:[#allocation10_spill] sm:$0xff] %v5714_v7 }
 0x2b3   :  { %4018 = vmatmul.msk.bf16.gmra.mxu2 %vm241_vm1, %v6925_v24  ;;  %4042 = vmatmul.msk.bf16.gmra.mxu3 %vm241_vm1, %v6925_v24 }
 0x2b6   :  { %v1356_v39 = vpop.f32.mrf.mxu2  ;;  %v1485_v58 = vpop.f32.mrf.mxu3 }
 0x2b7   :  { %v5726_v57 = vadd.f32 %v1356_v39, %v1204_v17  ;;  %v967_v18 = vpop.f32.mrf.mxu0  ;;  %v5728_v0 = vadd.f32 %v1485_v58, %v1205_v37  ;;  %v1096_v41 = vpop.f32.mrf.mxu1  ;;  %v6933_v39 = vld [vmem:[#allocation22_spill] sm:$0xff]  ;;  %v6934_v37 = vld [vmem:[#allocation28_spill] sm:$0xff] }
 0x2b8   :  { %v1206_v56 = vadd.f32 %v967_v18, %v6928_v30  ;;  %v1207_v61 = vadd.f32 %v1096_v41, %v6929_v10  ;;  %v6936_v41 = vld [vmem:[#allocation24_spill] sm:$0xff] }
 0x2b9   :  { %6926 = vst [vmem:[#allocation11_spill] sm:$0xff] %v5726_v57 }
 0x2ba   :  { %6927 = vst [vmem:[#allocation12_spill] sm:$0xff] %v5728_v0 }
 0x2be   :  { %v1358_v8 = vpop.f32.mrf.mxu2  ;;  %v1487_v20 = vpop.f32.mrf.mxu3 }
 0x2bf   :  { %v5732_v62 = vadd.f32 %v1358_v8, %v1206_v56  ;;  %v970_v32 = vpop.f32.mrf.mxu0  ;;  %v5734_v7 = vadd.f32 %v1487_v20, %v1207_v61  ;;  %v1099_v17 = vpop.f32.mrf.mxu1  ;;  %v6937_v8 = vld [vmem:[#allocation25_spill] sm:$0xff] }
 0x2c0   :  { %v1208_v47 = vadd.f32 %v970_v32, %v6932_v40  ;;  %v1209_v57 = vadd.f32 %v1099_v17, %v6933_v39 }
 0x2c1   :  { %6930 = vst [vmem:[#allocation18_spill] sm:$0xff] %v5732_v62  ;;  %3947 = vmatmul.msk.bf16.gmra.mxu0 %vm241_vm1, %v6925_v24  ;;  %3971 = vmatmul.msk.bf16.gmra.mxu1 %vm241_vm1, %v6925_v24  ;;  %v6939_v62 = vld [vmem:[#allocation26_spill] sm:$0xff] }
 0x2c2   :  { %6931 = vst [vmem:[#allocation14_spill] sm:$0xff] %v5734_v7 }
 0x2c3   :  { %4019 = vmatmul.msk.bf16.gmra.mxu2 %vm241_vm1, %v6934_v37  ;;  %4043 = vmatmul.msk.bf16.gmra.mxu3 %vm241_vm1, %v6934_v37 }
 0x2c6   :  { %v1361_v58 = vpop.f32.mrf.mxu2  ;;  %v1490_v30 = vpop.f32.mrf.mxu3 }
 0x2c7   :  { %v5746_v18 = vadd.f32 %v1361_v58, %v1208_v47  ;;  %v972_v40 = vpop.f32.mrf.mxu0  ;;  %v5748_v56 = vadd.f32 %v1490_v30, %v1209_v57  ;;  %v1101_v61 = vpop.f32.mrf.mxu1  ;;  %v6940_v58 = vld [vmem:[#allocation27_spill] sm:$0xff] }
 0x2c8   :  { %v1210_v10 = vadd.f32 %v972_v40, %v6936_v41  ;;  %v1211_v20 = vadd.f32 %v1101_v61, %v6937_v8 }
 0x2c9   :  { %6935 = vst [vmem:[#allocation15_spill] sm:$0xff] %v5746_v18 }
 0x2ce   :  { %v1363_v32 = vpop.f32.mrf.mxu2  ;;  %v1492_v17 = vpop.f32.mrf.mxu3 }
 0x2cf   :  { %v5752_v24 = vadd.f32 %v1363_v32, %v1210_v10  ;;  %v975_v39 = vpop.f32.mrf.mxu0  ;;  %v5754_v7 = vadd.f32 %v1492_v17, %v1211_v20  ;;  %v1104_v47 = vpop.f32.mrf.mxu1  ;;  %v6942_v10 = vld [vmem:[#allocation29_spill] sm:$0xff]  ;;  %v6944_v20 = vld [vmem:[#allocation30_spill] sm:$0xff] }
 0x2d0   :  { %v1212_v0 = vadd.f32 %v975_v39, %v6939_v62  ;;  %v1213_v18 = vadd.f32 %v1104_v47, %v6940_v58  ;;  %v4669_v17 = vld [vmem:[#allocation2 + $0xdc] sm:$0xf0]  ;;  %v4668_v39 = vld [vmem:[#allocation2 + $0xdc] sm:$0xf]  ;;  %v4172_v58 = vld [vmem:[#allocation2 + $0xe0] sm:$0xf0] }
 0x2d1   :  { %6938 = vst [vmem:[#allocation16_spill] sm:$0xff] %v5754_v7  ;;  %3948 = vmatmul.msk.bf16.gmra.mxu0 %vm241_vm1, %v6934_v37  ;;  %3972 = vmatmul.msk.bf16.gmra.mxu1 %vm241_vm1, %v6934_v37  ;;  %v4170_v37 = vld [vmem:[#allocation2 + $0xd8] sm:$0xf]  ;;  %v4175_v7 = vor.u32 %v4668_v39, %v4172_v58  ;;  %v6951_v58 = vld [vmem:[#allocation34_spill] sm:$0xff] }
 0x2d2   :  { %v4171_v47 = vor.u32 %v4669_v17, %v4170_v37 }
 0x2d3   :  { %4020 = vmatmul.msk.bf16.gmra.mxu2 %vm241_vm1, %v5305_v31  ;;  %4044 = vmatmul.msk.bf16.gmra.mxu3 %vm241_vm1, %v5305_v31 }
 0x2d4   :  { %2366 = vmatpush.bf16.msra.mxu2 %v4171_v47  ;;  %2415 = vmatpush.bf16.msra.mxu3 %v4175_v7 }
 0x2d6   :  { %v1366_v57 = vpop.f32.mrf.mxu2  ;;  %v1495_v40 = vpop.f32.mrf.mxu3 }
 0x2d7   :  { %v5766_v30 = vadd.f32 %v1366_v57, %v1212_v0  ;;  %v977_v62 = vpop.f32.mrf.mxu0  ;;  %v5768_v41 = vadd.f32 %v1495_v40, %v1213_v18  ;;  %v1106_v8 = vpop.f32.mrf.mxu1  ;;  %v6945_v40 = vld [vmem:[#allocation31_spill] sm:$0xff] }
 0x2d8   :  { %v5771_v61 = vadd.f32 %v977_v62, %v6942_v10  ;;  %v5774_v32 = vadd.f32 %v1106_v8, %v6944_v20 }
 0x2d9   :  { %6941 = vst [vmem:[#allocation17_spill] sm:$0xff] %v5768_v41 }
 0x2da   :  { %6943 = vst [vmem:[#allocation23_spill] sm:$0xff] %v5771_v61  ;;  %v6946_v61 = vld [vmem:[#allocation32_spill] sm:$0xff] }
 0x2de   :  { %v5776_v0 = vpop.f32.mrf.mxu2  ;;  %v5778_v57 = vpop.f32.mrf.mxu3 }
 0x2df   :  { %v980_v18 = vpop.f32.mrf.mxu0  ;;  %v1109_v10 = vpop.f32.mrf.mxu1 }
 0x2e0   :  { %v1216_v62 = vadd.f32 %v980_v18, %v6945_v40  ;;  %v1217_v41 = vadd.f32 %v1109_v10, %v6946_v61  ;;  %v6949_v61 = vld [vmem:[#allocation33_spill] sm:$0xff] }
 0x2e1   :  { %3949 = vmatmul.msk.bf16.gmra.mxu0 %vm241_vm1, %v5305_v31  ;;  %3973 = vmatmul.msk.bf16.gmra.mxu1 %vm241_vm1, %v5305_v31 }
 0x2e3   :  { %4021 = vmatmul.msk.bf16.gmra.mxu2 %vm241_vm1, %v5352_v26  ;;  %4045 = vmatmul.msk.bf16.gmra.mxu3 %vm241_vm1, %v5352_v26 }
 0x2e6   :  { %v1371_v7 = vpop.f32.mrf.mxu2  ;;  %v1500_v20 = vpop.f32.mrf.mxu3 }
 0x2e7   :  { %v5790_v8 = vadd.f32 %v1371_v7, %v1216_v62  ;;  %v982_v37 = vpop.f32.mrf.mxu0  ;;  %v5792_v17 = vadd.f32 %v1500_v20, %v1217_v41  ;;  %v1111_v47 = vpop.f32.mrf.mxu1  ;;  %v4619_v62 = vld [vmem:[%s6828_s0 + $0xc8] sm:$0xff] }
 0x2e8   :  { %v5795_v39 = vadd.f32 %v982_v37, %v6949_v61  ;;  %v5798_v18 = vadd.f32 %v1111_v47, %v6951_v58  ;;  %v6955_v20 = vld [vmem:[#allocation35_spill] sm:$0xff] }
 0x2e9   :  { %6947 = vst [vmem:[#allocation19_spill] sm:$0xff] %v5790_v8  ;;  %v4164_v8 = vld [vmem:[#allocation2 + $0xd0] sm:$0xf0] }
 0x2ea   :  { %6948 = vst [vmem:[#allocation20_spill] sm:$0xff] %v5792_v17 }
 0x2eb   :  { %6950 = vst [vmem:[#allocation21_spill] sm:$0xff] %v5795_v39 }
 0x2ec   :  { %6952 = vst [vmem:[#allocation22_spill] sm:$0xff] %v5798_v18 }
 0x2ee   :  { %v5800_v31 = vpop.f32.mrf.mxu2  ;;  %v5802_v40 = vpop.f32.mrf.mxu3 }
 0x2ef   :  { %6953 = vst [vmem:[#allocation28_spill] sm:$0xff] %v5800_v31  ;;  %v985_v10 = vpop.f32.mrf.mxu0  ;;  %v1114_v41 = vpop.f32.mrf.mxu1 }
 0x2f0   :  { %6954 = vst [vmem:[#allocation24_spill] sm:$0xff] %v5802_v40  ;;  %v1220_v7 = vadd.f32 %v985_v10, %v5343_v2  ;;  %v1221_v17 = vadd.f32 %v1114_v41, %v6955_v20  ;;  %v6958_v2 = vld [vmem:[#allocation36_spill] sm:$0xff]  ;;  %v6960_v20 = vld [vmem:[#allocation37_spill] sm:$0xff] }
 0x2f1   :  { %3950 = vmatmul.msk.bf16.gmra.mxu0 %vm241_vm1, %v5352_v26  ;;  %3974 = vmatmul.msk.bf16.gmra.mxu1 %vm241_vm1, %v5352_v26 }
 0x2f3   :  { %4022 = vmatmul.msk.bf16.gmra.mxu2 %vm241_vm1, %v4619_v62  ;;  %4046 = vmatmul.msk.bf16.gmra.mxu3 %vm241_vm1, %v4619_v62 }
 0x2f6   :  { %v1376_v37 = vpop.f32.mrf.mxu2  ;;  %v1505_v47 = vpop.f32.mrf.mxu3 }
 0x2f7   :  { %v5815_v61 = vadd.f32 %v1376_v37, %v1220_v7  ;;  %v987_v58 = vpop.f32.mrf.mxu0  ;;  %v5817_v40 = vadd.f32 %v1505_v47, %v1221_v17  ;;  %v1116_v41 = vpop.f32.mrf.mxu1  ;;  %v4620_v7 = vld [vmem:[%s6828_s0 + $0xd0] sm:$0xff]  ;;  %v6964_v47 = vld [vmem:[#allocation38_spill] sm:$0xff] }
 0x2f8   :  { %v5820_v10 = vadd.f32 %v987_v58, %v6958_v2  ;;  %v5823_v18 = vadd.f32 %v1116_v41, %v6960_v20 }
 0x2f9   :  { %6956 = vst [vmem:[#allocation25_spill] sm:$0xff] %v5815_v61 }
 0x2fa   :  { %6957 = vst [vmem:[#allocation26_spill] sm:$0xff] %v5817_v40 }
 0x2fb   :  { %6959 = vst [vmem:[#allocation27_spill] sm:$0xff] %v5820_v10  ;;  %v4666_v10 = vld [vmem:[#allocation2 + $0xcc] sm:$0xf] }
 0x2fc   :  { %6961 = vst [vmem:[#allocation29_spill] sm:$0xff] %v5823_v18  ;;  %v6965_v18 = vld [vmem:[#allocation39_spill] sm:$0xff] }
 0x2fe   :  { %v5825_v31 = vpop.f32.mrf.mxu2  ;;  %v5827_v26 = vpop.f32.mrf.mxu3 }
 0x2ff   :  { %6962 = vst [vmem:[#allocation30_spill] sm:$0xff] %v5825_v31  ;;  %v990_v39 = vpop.f32.mrf.mxu0  ;;  %v1119_v17 = vpop.f32.mrf.mxu1  ;;  %v4162_v31 = vld [vmem:[#allocation2 + $0xc8] sm:$0xf] }
 0x300   :  { %6963 = vst [vmem:[#allocation31_spill] sm:$0xff] %v5827_v26  ;;  %v1224_v37 = vadd.f32 %v990_v39, %v5366_v35  ;;  %v1225_v40 = vadd.f32 %v1119_v17, %v6964_v47  ;;  %v6967_v17 = vld [vmem:[#allocation40_spill] sm:$0xff] }
 0x301   :  { %3951 = vmatmul.msk.bf16.gmra.mxu0 %vm241_vm1, %v4619_v62  ;;  %3975 = vmatmul.msk.bf16.gmra.mxu1 %vm241_vm1, %v4619_v62  ;;  %v4667_v62 = vld [vmem:[#allocation2 + $0xcc] sm:$0xf0] }
 0x302   :  { %v4163_v61 = vor.u32 %v4667_v62, %v4162_v31  ;;  %v6974_v62 = vld [vmem:[#allocation42_spill] sm:$0xff] }
 0x303   :  { %4023 = vmatmul.msk.bf16.gmra.mxu2 %vm241_vm1, %v4620_v7  ;;  %4047 = vmatmul.msk.bf16.gmra.mxu3 %vm241_vm1, %v4620_v7  ;;  %v4167_v7 = vor.u32 %v4666_v10, %v4164_v8 }
 0x304   :  { %2367 = vmatpush.bf16.msra.mxu2 %v4163_v61 }
 0x305   :  { %2416 = vmatpush.bf16.msra.mxu3 %v4167_v7 }
 0x306   :  { %v1381_v58 = vpop.f32.mrf.mxu2  ;;  %v1510_v41 = vpop.f32.mrf.mxu3 }
 0x307   :  { %v5838_v2 = vadd.f32 %v1381_v58, %v1224_v37  ;;  %v992_v20 = vpop.f32.mrf.mxu0  ;;  %v5840_v26 = vadd.f32 %v1510_v41, %v1225_v40  ;;  %v1121_v39 = vpop.f32.mrf.mxu1 }
 0x308   :  { %v5843_v35 = vadd.f32 %v992_v20, %v6965_v18  ;;  %v5846_v47 = vadd.f32 %v1121_v39, %v6967_v17  ;;  %v6971_v20 = vld [vmem:[#allocation41_spill] sm:$0xff]  ;;  %v4735_v39 = vld [vmem:[%s6828_s0 + $0x20] sm:$0xff] }
 0x30a   :  { %6966 = vst [vmem:[#allocation32_spill] sm:$0xff] %v5843_v35 }
 0x30b   :  { %6968 = vst [vmem:[#allocation33_spill] sm:$0xff] %v5846_v47 }
 0x30e   :  { %v5848_v37 = vpop.f32.mrf.mxu2  ;;  %v5850_v58 = vpop.f32.mrf.mxu3 }
 0x30f   :  { %6969 = vst [vmem:[#allocation34_spill] sm:$0xff] %v5848_v37  ;;  %v995_v40 = vpop.f32.mrf.mxu0  ;;  %v1124_v41 = vpop.f32.mrf.mxu1 }
 0x310   :  { %6970 = vst [vmem:[#allocation35_spill] sm:$0xff] %v5850_v58  ;;  %v1228_v18 = vadd.f32 %v995_v40, %v5382_v34  ;;  %v1229_v35 = vadd.f32 %v1124_v41, %v6971_v20  ;;  %v6976_v40 = vld [vmem:[#allocation43_spill] sm:$0xff] }
 0x311   :  { %4072 = vmatmul.msk.bf16.vlgmr.msra.gmra.mxu0 %vm241_vm1, %v4735_v39  ;;  %4096 = vmatmul.msk.bf16.vlgmr.msra.gmra.mxu1 %vm241_vm1, %v4735_v39 }
 0x316   :  { %v1386_v8 = vpop.f32.mrf.mxu2  ;;  %v1515_v61 = vpop.f32.mrf.mxu3 }
 0x317   :  { %v5859_v31 = vadd.f32 %v1386_v8, %v1228_v18  ;;  %v997_v10 = vpop.f32.mrf.mxu0  ;;  %v5861_v17 = vadd.f32 %v1515_v61, %v1229_v35  ;;  %v1126_v7 = vpop.f32.mrf.mxu1  ;;  %v6980_v8 = vld [vmem:[#allocation44_spill] sm:$0xff]  ;;  %v4736_v35 = vld [vmem:[%s6828_s0 + $0x28] sm:$0xff] }
 0x318   :  { %v5864_v34 = vadd.f32 %v997_v10, %v6974_v62  ;;  %v5867_v41 = vadd.f32 %v1126_v7, %v6976_v40 }
 0x319   :  { %6972 = vst [vmem:[#allocation36_spill] sm:$0xff] %v5859_v31 }
 0x31a   :  { %6973 = vst [vmem:[#allocation37_spill] sm:$0xff] %v5861_v17 }
 0x31b   :  { %6975 = vst [vmem:[#allocation38_spill] sm:$0xff] %v5864_v34 }
 0x31c   :  { %6977 = vst [vmem:[#allocation39_spill] sm:$0xff] %v5867_v41  ;;  %v6983_v41 = vld [vmem:[#allocation46_spill] sm:$0xff] }
 0x31e   :  { %v5869_v20 = vpop.f32.mrf.mxu2  ;;  %v5871_v58 = vpop.f32.mrf.mxu3 }
 0x31f   :  { %6978 = vst [vmem:[#allocation40_spill] sm:$0xff] %v5869_v20  ;;  %v1000_v47 = vpop.f32.mrf.mxu0  ;;  %v1129_v18 = vpop.f32.mrf.mxu1 }
 0x320   :  { %6979 = vst [vmem:[#allocation41_spill] sm:$0xff] %v5871_v58  ;;  %v1232_v39 = vadd.f32 %v1000_v47, %v5398_v9  ;;  %v1233_v31 = vadd.f32 %v1129_v18, %v6980_v8  ;;  %v6982_v58 = vld [vmem:[#allocation45_spill] sm:$0xff] }
 0x321   :  { %4073 = vmatmul.msk.bf16.gmra.mxu0 %vm241_vm1, %v4736_v35  ;;  %4097 = vmatmul.msk.bf16.gmra.mxu1 %vm241_vm1, %v4736_v35 }
 0x326   :  { %v1391_v61 = vpop.f32.mrf.mxu2  ;;  %v1520_v62 = vpop.f32.mrf.mxu3 }
 0x327   :  { %v5880_v10 = vadd.f32 %v1391_v61, %v1232_v39  ;;  %v1002_v7 = vpop.f32.mrf.mxu0  ;;  %v5882_v40 = vadd.f32 %v1520_v62, %v1233_v31  ;;  %v1131_v47 = vpop.f32.mrf.mxu1  ;;  %v6986_v61 = vld [vmem:[#allocation47_spill] sm:$0xff]  ;;  %v4737_v31 = vld [vmem:[%s6828_s0 + $0x30] sm:$0xff] }
 0x328   :  { %v1234_v9 = vadd.f32 %v1002_v7, %v6982_v58  ;;  %v1235_v18 = vadd.f32 %v1131_v47, %v6983_v41  ;;  %v6989_v47 = vld [vmem:[#allocation49_spill] sm:$0xff] }
 0x329   :  { %6981 = vst [vmem:[#allocation42_spill] sm:$0xff] %v5880_v10 }
 0x32e   :  { %v1393_v8 = vpop.f32.mrf.mxu2  ;;  %v1522_v34 = vpop.f32.mrf.mxu3 }
 0x32f   :  { %v5886_v20 = vadd.f32 %v1393_v8, %v1234_v9  ;;  %v1005_v17 = vpop.f32.mrf.mxu0  ;;  %v5888_v37 = vadd.f32 %v1522_v34, %v1235_v18  ;;  %v1134_v39 = vpop.f32.mrf.mxu1  ;;  %v6987_v9 = vld [vmem:[#allocation48_spill] sm:$0xff]  ;;  %v4154_v8 = vld [vmem:[#allocation2 + $0xb8] sm:$0xf] }
 0x330   :  { %v1236_v35 = vadd.f32 %v1005_v17, %v5414_v51  ;;  %v1237_v10 = vadd.f32 %v1134_v39, %v6986_v61  ;;  %v4665_v39 = vld [vmem:[#allocation2 + $0xbc] sm:$0xf0]  ;;  %v4664_v61 = vld [vmem:[#allocation2 + $0xbc] sm:$0xf] }
 0x331   :  { %6984 = vst [vmem:[#allocation43_spill] sm:$0xff] %v5886_v20  ;;  %4074 = vmatmul.msk.bf16.gmra.mxu0 %vm241_vm1, %v4737_v31  ;;  %4098 = vmatmul.msk.bf16.gmra.mxu1 %vm241_vm1, %v4737_v31  ;;  %v4156_v20 = vld [vmem:[#allocation2 + $0xc0] sm:$0xf0] }
 0x332   :  { %6985 = vst [vmem:[#allocation44_spill] sm:$0xff] %v5888_v37  ;;  %v4155_v37 = vor.u32 %v4665_v39, %v4154_v8  ;;  %v4159_v31 = vor.u32 %v4664_v61, %v4156_v20  ;;  %v6996_v61 = vld [vmem:[#allocation51_spill] sm:$0xff] }
 0x334   :  { %2368 = vmatpush.bf16.msra.mxu2 %v4155_v37  ;;  %2417 = vmatpush.bf16.msra.mxu3 %v4159_v31 }
 0x336   :  { %v1396_v58 = vpop.f32.mrf.mxu2  ;;  %v1525_v62 = vpop.f32.mrf.mxu3 }
 0x337   :  { %v5897_v41 = vadd.f32 %v1396_v58, %v1236_v35  ;;  %v1007_v7 = vpop.f32.mrf.mxu0  ;;  %v5899_v34 = vadd.f32 %v1525_v62, %v1237_v10  ;;  %v1136_v17 = vpop.f32.mrf.mxu1 }
 0x338   :  { %v5902_v51 = vadd.f32 %v1007_v7, %v6987_v9  ;;  %v5905_v18 = vadd.f32 %v1136_v17, %v6989_v47  ;;  %v6993_v9 = vld [vmem:[#allocation50_spill] sm:$0xff]  ;;  %v4738_v17 = vld [vmem:[%s6828_s0 + $0x38] sm:$0xff] }
 0x33a   :  { %6988 = vst [vmem:[#allocation45_spill] sm:$0xff] %v5902_v51 }
 0x33b   :  { %6990 = vst [vmem:[#allocation46_spill] sm:$0xff] %v5905_v18 }
 0x33e   :  { %v5907_v35 = vpop.f32.mrf.mxu2  ;;  %v5909_v58 = vpop.f32.mrf.mxu3 }
 0x33f   :  { %6991 = vst [vmem:[#allocation47_spill] sm:$0xff] %v5907_v35  ;;  %v1010_v10 = vpop.f32.mrf.mxu0  ;;  %v1139_v7 = vpop.f32.mrf.mxu1  ;;  %v4148_v35 = vld [vmem:[#allocation2 + $0xb0] sm:$0xf0] }
 0x340   :  { %6992 = vst [vmem:[#allocation48_spill] sm:$0xff] %v5909_v58  ;;  %v1240_v62 = vadd.f32 %v1010_v10, %v5430_v60  ;;  %v1241_v51 = vadd.f32 %v1139_v7, %v6993_v9  ;;  %v6998_v10 = vld [vmem:[#allocation52_spill] sm:$0xff] }
 0x341   :  { %4075 = vmatmul.msk.bf16.gmra.mxu0 %vm241_vm1, %v4738_v17  ;;  %4099 = vmatmul.msk.bf16.gmra.mxu1 %vm241_vm1, %v4738_v17 }
 0x346   :  { %v1401_v37 = vpop.f32.mrf.mxu2  ;;  %v1530_v47 = vpop.f32.mrf.mxu3 }
 0x347   :  { %v5918_v20 = vadd.f32 %v1401_v37, %v1240_v62  ;;  %v1012_v8 = vpop.f32.mrf.mxu0  ;;  %v5920_v39 = vadd.f32 %v1530_v47, %v1241_v51  ;;  %v1141_v31 = vpop.f32.mrf.mxu1  ;;  %v7002_v37 = vld [vmem:[#allocation53_spill] sm:$0xff]  ;;  %v4739_v51 = vld [vmem:[%s6828_s0 + $0x40] sm:$0xff] }
 0x348   :  { %v5923_v60 = vadd.f32 %v1012_v8, %v6996_v61  ;;  %v5926_v7 = vadd.f32 %v1141_v31, %v6998_v10 }
 0x349   :  { %6994 = vst [vmem:[#allocation49_spill] sm:$0xff] %v5918_v20 }
 0x34a   :  { %6995 = vst [vmem:[#allocation50_spill] sm:$0xff] %v5920_v39 }
 0x34b   :  { %6997 = vst [vmem:[#allocation51_spill] sm:$0xff] %v5923_v60 }
 0x34c   :  { %6999 = vst [vmem:[#allocation52_spill] sm:$0xff] %v5926_v7 }
 0x34e   :  { %v5928_v9 = vpop.f32.mrf.mxu2  ;;  %v5930_v58 = vpop.f32.mrf.mxu3 }
 0x34f   :  { %7000 = vst [vmem:[#allocation66_spill] sm:$0xff] %v5928_v9  ;;  %v1015_v18 = vpop.f32.mrf.mxu0  ;;  %v1144_v62 = vpop.f32.mrf.mxu1 }
 0x350   :  { %7001 = vst [vmem:[#allocation67_spill] sm:$0xff] %v5930_v58  ;;  %v1244_v17 = vadd.f32 %v1015_v18, %v5446_v21  ;;  %v1245_v20 = vadd.f32 %v1144_v62, %v7002_v37  ;;  %v7005_v58 = vld [vmem:[#allocation54_spill] sm:$0xff]  ;;  %v7007_v62 = vld [vmem:[#allocation55_spill] sm:$0xff] }
 0x351   :  { %4076 = vmatmul.msk.bf16.gmra.mxu0 %vm241_vm1, %v4739_v51  ;;  %4100 = vmatmul.msk.bf16.gmra.mxu1 %vm241_vm1, %v4739_v51  ;;  %v7011_v51 = vld [vmem:[#allocation56_spill] sm:$0xff] }
 0x356   :  { %v1406_v47 = vpop.f32.mrf.mxu2  ;;  %v1535_v61 = vpop.f32.mrf.mxu3 }
 0x357   :  { %v5939_v8 = vadd.f32 %v1406_v47, %v1244_v17  ;;  %v1017_v31 = vpop.f32.mrf.mxu0  ;;  %v5941_v10 = vadd.f32 %v1535_v61, %v1245_v20  ;;  %v1146_v18 = vpop.f32.mrf.mxu1  ;;  %v7012_v47 = vld [vmem:[#allocation57_spill] sm:$0xff]  ;;  %v4740_v20 = vld [vmem:[%s6828_s0 + $0x48] sm:$0xff] }
 0x358   :  { %v5944_v21 = vadd.f32 %v1017_v31, %v7005_v58  ;;  %v5947_v37 = vadd.f32 %v1146_v18, %v7007_v62 }
 0x359   :  { %7003 = vst [vmem:[#allocation53_spill] sm:$0xff] %v5939_v8 }
 0x35a   :  { %7004 = vst [vmem:[#allocation68_spill] sm:$0xff] %v5941_v10 }
 0x35b   :  { %7006 = vst [vmem:[#allocation54_spill] sm:$0xff] %v5944_v21  ;;  %v4662_v21 = vld [vmem:[#allocation2 + $0xac] sm:$0xf] }
 0x35c   :  { %7008 = vst [vmem:[#allocation55_spill] sm:$0xff] %v5947_v37  ;;  %v4146_v37 = vld [vmem:[#allocation2 + $0xa8] sm:$0xf] }
 0x35e   :  { %v5949_v7 = vpop.f32.mrf.mxu2  ;;  %v5951_v9 = vpop.f32.mrf.mxu3 }
 0x35f   :  { %7009 = vst [vmem:[#allocation69_spill] sm:$0xff] %v5949_v7  ;;  %v1020_v60 = vpop.f32.mrf.mxu0  ;;  %v1149_v17 = vpop.f32.mrf.mxu1  ;;  %v4663_v7 = vld [vmem:[#allocation2 + $0xac] sm:$0xf0] }
 0x360   :  { %7010 = vst [vmem:[#allocation70_spill] sm:$0xff] %v5951_v9  ;;  %v1248_v39 = vadd.f32 %v1020_v60, %v7011_v51  ;;  %v1249_v8 = vadd.f32 %v1149_v17, %v7012_v47  ;;  %v7014_v9 = vld [vmem:[#allocation58_spill] sm:$0xff]  ;;  %v7016_v17 = vld [vmem:[#allocation59_spill] sm:$0xff]  ;;  %v4147_v10 = vor.u32 %v4663_v7, %v4146_v37 }
 0x361   :  { %4077 = vmatmul.msk.bf16.gmra.mxu0 %vm241_vm1, %v4740_v20  ;;  %4101 = vmatmul.msk.bf16.gmra.mxu1 %vm241_vm1, %v4740_v20  ;;  %v4151_v20 = vor.u32 %v4662_v21, %v4148_v35 }
 0x362   :  { %2369 = vmatpush.bf16.msra.mxu2 %v4147_v10 }
 0x363   :  { %2418 = vmatpush.bf16.msra.mxu3 %v4151_v20 }
 0x366   :  { %v1411_v58 = vpop.f32.mrf.mxu2  ;;  %v1540_v31 = vpop.f32.mrf.mxu3 }
 0x367   :  { %v5960_v61 = vadd.f32 %v1411_v58, %v1248_v39  ;;  %v1022_v18 = vpop.f32.mrf.mxu0  ;;  %v5962_v62 = vadd.f32 %v1540_v31, %v1249_v8  ;;  %v1151_v51 = vpop.f32.mrf.mxu1  ;;  %v7019_v31 = vld [vmem:[#allocation60_spill] sm:$0xff] }
 0x368   :  { %v5965_v60 = vadd.f32 %v1022_v18, %v7014_v9  ;;  %v5968_v47 = vadd.f32 %v1151_v51, %v7016_v17  ;;  %v4741_v51 = vld [vmem:[%s6828_s0 + $0x50] sm:$0xff]  ;;  %v7021_v17 = vld [vmem:[#allocation62_spill] sm:$0xff] }
 0x369   :  { %7013 = vst [vmem:[#allocation56_spill] sm:$0xff] %v5962_v62 }
 0x36a   :  { %7015 = vst [vmem:[#allocation57_spill] sm:$0xff] %v5965_v60  ;;  %v7020_v60 = vld [vmem:[#allocation61_spill] sm:$0xff] }
 0x36b   :  { %7017 = vst [vmem:[#allocation58_spill] sm:$0xff] %v5968_v47 }
 0x36e   :  { %v5970_v39 = vpop.f32.mrf.mxu2  ;;  %v5972_v58 = vpop.f32.mrf.mxu3 }
 0x36f   :  { %7018 = vst [vmem:[#allocation59_spill] sm:$0xff] %v5972_v58  ;;  %v1025_v8 = vpop.f32.mrf.mxu0  ;;  %v1154_v18 = vpop.f32.mrf.mxu1 }
 0x370   :  { %v1252_v9 = vadd.f32 %v1025_v8, %v7019_v31  ;;  %v1253_v62 = vadd.f32 %v1154_v18, %v7020_v60  ;;  %v7022_v60 = vld [vmem:[#allocation63_spill] sm:$0xff] }
 0x371   :  { %4078 = vmatmul.msk.bf16.gmra.mxu0 %vm241_vm1, %v4741_v51  ;;  %4102 = vmatmul.msk.bf16.gmra.mxu1 %vm241_vm1, %v4741_v51 }
 0x376   :  { %v1416_v35 = vpop.f32.mrf.mxu2  ;;  %v1545_v10 = vpop.f32.mrf.mxu3 }
 0x377   :  { %v5981_v7 = vadd.f32 %v1416_v35, %v1252_v9  ;;  %v1027_v21 = vpop.f32.mrf.mxu0  ;;  %v5983_v37 = vadd.f32 %v1545_v10, %v1253_v62  ;;  %v1156_v8 = vpop.f32.mrf.mxu1  ;;  %v4742_v62 = vld [vmem:[%s6828_s0 + $0x58] sm:$0xff] }
 0x378   :  { %v5986_v20 = vadd.f32 %v1027_v21, %v7021_v17  ;;  %v5989_v31 = vadd.f32 %v1156_v8, %v7022_v60 }
 0x37a   :  { %7023 = vst [vmem:[#allocation60_spill] sm:$0xff] %v5989_v31 }
 0x37e   :  { %v5991_v18 = vpop.f32.mrf.mxu2  ;;  %v5993_v58 = vpop.f32.mrf.mxu3 }
 0x37f   :  { %7024 = vst [vmem:[#allocation61_spill] sm:$0xff] %v5991_v18  ;;  %v1030_v47 = vpop.f32.mrf.mxu0  ;;  %v1159_v9 = vpop.f32.mrf.mxu1 }
 0x380   :  { %7025 = vst [vmem:[#allocation62_spill] sm:$0xff] %v5993_v58  ;;  %v1256_v51 = vadd.f32 %v1030_v47, %v5494_v14  ;;  %v1257_v35 = vadd.f32 %v1159_v9, %v5496_v43  ;;  %v7028_v43 = vld [vmem:[#allocation64_spill] sm:$0xff] }
 0x381   :  { %4079 = vmatmul.msk.bf16.gmra.mxu0 %vm241_vm1, %v4742_v62  ;;  %4103 = vmatmul.msk.bf16.gmra.mxu1 %vm241_vm1, %v4742_v62 }
 0x386   :  { %v1421_v10 = vpop.f32.mrf.mxu2  ;;  %v1550_v17 = vpop.f32.mrf.mxu3 }
 0x387   :  { %v6002_v21 = vadd.f32 %v1421_v10, %v1256_v51  ;;  %v1032_v8 = vpop.f32.mrf.mxu0  ;;  %v6004_v60 = vadd.f32 %v1550_v17, %v1257_v35  ;;  %v1161_v47 = vpop.f32.mrf.mxu1  ;;  %v4743_v51 = vld [vmem:[%s6828_s0 + $0x60] sm:$0xff] }
 0x388   :  { %v6007_v14 = vadd.f32 %v1032_v8, %v5498_v11  ;;  %v6010_v9 = vadd.f32 %v1161_v47, %v7028_v43  ;;  %v4660_v43 = vld [vmem:[#allocation2 + $0x9c] sm:$0xf] }
 0x389   :  { %7026 = vst [vmem:[#allocation63_spill] sm:$0xff] %v6004_v60 }
 0x38a   :  { %7027 = vst [vmem:[#allocation71_spill] sm:$0xff] %v6007_v14 }
 0x38b   :  { %7029 = vst [vmem:[#allocation64_spill] sm:$0xff] %v6010_v9 }
 0x38f   :  { %v1697_v58 = vpop.f32.mrf.mxu0  ;;  %v1826_v18 = vpop.f32.mrf.mxu1 }
 0x390   :  { %v1946_v31 = vadd.f32 %v1697_v58, %v5512_v29  ;;  %v1947_v62 = vadd.f32 %v1826_v18, %v5514_v19  ;;  %v4138_v29 = vld [vmem:[#allocation2 + $0x98] sm:$0xf]  ;;  %v4661_v58 = vld [vmem:[#allocation2 + $0x9c] sm:$0xf0]  ;;  %v4140_v18 = vld [vmem:[#allocation2 + $0xa0] sm:$0xf0] }
 0x391   :  { %4080 = vmatmul.msk.bf16.gmra.mxu0 %vm241_vm1, %v4743_v51  ;;  %4104 = vmatmul.msk.bf16.gmra.mxu1 %vm241_vm1, %v4743_v51  ;;  %v4139_v19 = vor.u32 %v4661_v58, %v4138_v29  ;;  %v4143_v9 = vor.u32 %v4660_v43, %v4140_v18 }
 0x392   :  { %v2042_v35 = vmax.f32 %v1946_v31, %v1947_v62 }
 0x393   :  { %2370 = vmatpush.bf16.msra.mxu2 %v4139_v19  ;;  %2419 = vmatpush.bf16.msra.mxu3 %v4143_v9 }
 0x397   :  { %v1699_v11 = vpop.f32.mrf.mxu0  ;;  %v1828_v17 = vpop.f32.mrf.mxu1 }
 0x398   :  { %v1948_v10 = vadd.f32 %v1699_v11, %v5518_v55  ;;  %v1949_v8 = vadd.f32 %v1828_v17, %v5520_v3  ;;  %v37_v55 = vld [vmem:[%s6829_s1] sm:$0x7]  ;;  %v4744_v3 = vld [vmem:[%s6828_s0 + $0x68] sm:$0xff] }
 0x399   :  { %v6031_v9 = vperm.slane %v37_v55, 0  ;;  %v4659_v55 = vld [vmem:[#allocation2 + $0x8c] sm:$0xf0] }
 0x39a   :  { %v2043_v47 = vmax.f32 %v1948_v10, %v1949_v8  ;;  %v7030_v8 = vld [vmem:[#allocation65_spill] sm:$0xff] }
 0x39f   :  { %v1702_v14 = vpop.f32.mrf.mxu0  ;;  %v1831_v62 = vpop.f32.mrf.mxu1 }
 0x3a0   :  { %v1950_v31 = vadd.f32 %v1702_v14, %v5532_v59  ;;  %v1951_v51 = vadd.f32 %v1831_v62, %v5534_v44 }
 0x3a1   :  { %4081 = vmatmul.msk.bf16.gmra.mxu0 %vm241_vm1, %v4744_v3  ;;  %4105 = vmatmul.msk.bf16.gmra.mxu1 %vm241_vm1, %v4744_v3  ;;  %v4658_v3 = vld [vmem:[#allocation2 + $0x8c] sm:$0xf] }
 0x3a2   :  { %v2044_v11 = vmax.f32 %v1950_v31, %v1951_v51 }
 0x3a4   :  { %v2090_v10 = vmax.f32 %v2042_v35, %v2044_v11  ;;  %v4130_v35 = vld [vmem:[#allocation2 + $0x88] sm:$0xf] }
 0x3a6   :  { %v2115_v17 = vadd.f32 %v6031_v9, %v2090_v10  ;;  %v4132_v10 = vld [vmem:[#allocation2 + $0x90] sm:$0xf0] }
 0x3a7   :  { %v1704_v59 = vpop.f32.mrf.mxu0  ;;  %v1833_v44 = vpop.f32.mrf.mxu1 }
 0x3a8   :  { %v1952_v14 = vadd.f32 %v1704_v59, %v5538_v4  ;;  %v1953_v29 = vadd.f32 %v1833_v44, %v7030_v8  ;;  %v2139_v43 = vmax.f32 %v2115_v17, 0.0  ;;  %v4131_v59 = vor.u32 %v4659_v55, %v4130_v35  ;;  %v4657_v8 = vld [vmem:[#allocation2 + $0x7c] sm:$0xf0] }
 0x3aa   :  { %v2045_v58 = vmax.f32 %v1952_v14, %v1953_v29  ;;  %v2163_v11 = vpack.c.bf16 %v2139_v43, %v2139_v43  ;;  %v4745_v14 = vld [vmem:[%s6828_s0 + $0x70] sm:$0xff]  ;;  %2371 = vmatpush.bf16.msra.mxu2 %v4131_v59  ;;  %v4656_v29 = vld [vmem:[#allocation2 + $0x7c] sm:$0xf] }
 0x3ac   :  { %v2091_v19 = vmax.f32 %v2043_v47, %v2045_v58  ;;  %v4135_v47 = vor.u32 %v4658_v3, %v4132_v10  ;;  %v2465_v58 = vunpack.c.l.b16 %v2163_v11  ;;  %v4746_v10 = vld [vmem:[%s6828_s0 + $0x78] sm:$0xff] }
 0x3ae   :  { %v2116_v18 = vadd.f32 %v6031_v9, %v2091_v19  ;;  %2420 = vmatpush.bf16.msra.mxu3 %v4135_v47  ;;  %v4124_v19 = vld [vmem:[#allocation2 + $0x80] sm:$0xf0] }
 0x3af   :  { %v1707_v62 = vpop.f32.mrf.mxu0  ;;  %v1836_v51 = vpop.f32.mrf.mxu1 }
 0x3b0   :  { %v1954_v31 = vadd.f32 %v1707_v62, %v5564_v15  ;;  %v2140_v60 = vmax.f32 %v2116_v18, 0.0  ;;  %v1955_v4 = vadd.f32 %v1836_v51, %v5566_v49  ;;  %v4122_v15 = vld [vmem:[#allocation2 + $0x78] sm:$0xf]  ;;  %v4127_v18 = vor.u32 %v4656_v29, %v4124_v19 }
 0x3b1   :  { %4082 = vmatmul.msk.bf16.gmra.mxu0 %vm241_vm1, %v4745_v14  ;;  %4106 = vmatmul.msk.bf16.gmra.mxu1 %vm241_vm1, %v4745_v14  ;;  %v4123_v43 = vor.u32 %v4657_v8, %v4122_v15 }
 0x3b2   :  { %v2164_v44 = vpack.c.bf16 %v2140_v60, %v2140_v60  ;;  %v2046_v17 = vmax.f32 %v1954_v31, %v1955_v4  ;;  %2421 = vmatpush.bf16.msra.mxu3 %v4127_v18 }
 0x3b3   :  { %2372 = vmatpush.bf16.msra.mxu2 %v4123_v43 }
 0x3b4   :  { %v2466_v49 = vunpack.c.l.b16 %v2164_v44 }
 0x3b6   :  { %v6044_v62 = vpack.c.b16 %v2466_v49, %v2465_v58 }
 0x3b7   :  { %v1709_v51 = vpop.f32.mrf.mxu0  ;;  %v1838_v60 = vpop.f32.mrf.mxu1 }
 0x3b8   :  { %v1956_v35 = vadd.f32 %v1709_v51, %v5570_v45  ;;  %v1957_v31 = vadd.f32 %v1838_v60, %v5572_v38 }
 0x3ba   :  { %v2047_v55 = vmax.f32 %v1956_v35, %v1957_v31 }
 0x3bf   :  { %v1712_v3 = vpop.f32.mrf.mxu0  ;;  %v1841_v59 = vpop.f32.mrf.mxu1 }
 0x3c0   :  { %v1958_v4 = vadd.f32 %v1712_v3, %v5584_v27  ;;  %v1959_v11 = vadd.f32 %v1841_v59, %v5586_v23 }
 0x3c1   :  { %4083 = vmatmul.msk.bf16.gmra.mxu0 %vm241_vm1, %v4746_v10  ;;  %4107 = vmatmul.msk.bf16.gmra.mxu1 %vm241_vm1, %v4746_v10 }
 0x3c2   :  { %v2048_v14 = vmax.f32 %v1958_v4, %v1959_v11 }
 0x3c4   :  { %v2092_v45 = vmax.f32 %v2046_v17, %v2048_v14 }
 0x3c6   :  { %v2117_v15 = vadd.f32 %v6031_v9, %v2092_v45 }
 0x3c7   :  { %v1714_v47 = vpop.f32.mrf.mxu0  ;;  %v1843_v44 = vpop.f32.mrf.mxu1 }
 0x3c8   :  { %v1960_v38 = vadd.f32 %v1714_v47, %v5590_v36  ;;  %v1961_v27 = vadd.f32 %v1843_v44, %v5592_v25  ;;  %v2141_v23 = vmax.f32 %v2117_v15, 0.0  ;;  %v4747_v36 = vld [vmem:[%s6828_s0 + $0x80] sm:$0xff] }
 0x3ca   :  { %v2049_v8 = vmax.f32 %v1960_v38, %v1961_v27  ;;  %v2165_v18 = vpack.c.bf16 %v2141_v23, %v2141_v23 }
 0x3cc   :  { %v2093_v29 = vmax.f32 %v2047_v55, %v2049_v8  ;;  %v2234_v60 = vunpack.c.l.b16 %v2165_v18 }
 0x3ce   :  { %v2118_v58 = vadd.f32 %v6031_v9, %v2093_v29 }
 0x3cf   :  { %v1717_v49 = vpop.f32.mrf.mxu0  ;;  %v1846_v19 = vpop.f32.mrf.mxu1 }
 0x3d0   :  { %v1962_v43 = vadd.f32 %v1717_v49, %v5604_v48  ;;  %v2142_v51 = vmax.f32 %v2118_v58, 0.0  ;;  %v1963_v17 = vadd.f32 %v1846_v19, %v5606_v50 }
 0x3d1   :  { %4084 = vmatmul.msk.bf16.gmra.mxu0 %vm241_vm1, %v4747_v36  ;;  %4108 = vmatmul.msk.bf16.gmra.mxu1 %vm241_vm1, %v4747_v36 }
 0x3d2   :  { %v2166_v25 = vpack.c.bf16 %v2142_v51, %v2142_v51  ;;  %v2050_v35 = vmax.f32 %v1962_v43, %v1963_v17 }
 0x3d4   :  { %v2235_v31 = vunpack.c.l.b16 %v2166_v25 }
 0x3d6   :  { %v6066_v55 = vpack.c.b16 %v2235_v31, %v2234_v60 }
 0x3d7   :  { %v1719_v48 = vpop.f32.mrf.mxu0  ;;  %v1848_v4 = vpop.f32.mrf.mxu1 }
 0x3d8   :  { %v1964_v3 = vadd.f32 %v1719_v48, %v5610_v63  ;;  %v1965_v50 = vadd.f32 %v1848_v4, %v5612_v33  ;;  %4176 = vmatmul.msk.bf16.vlgmr.msra.gmra.mxu2 %vm2333_vm3, %v6066_v55  ;;  %4184 = vmatmul.msk.bf16.vlgmr.msra.gmra.mxu3 %vm2333_vm3, %v6066_v55  ;;  %v4748_v63 = vld [vmem:[%s6828_s0 + $0x88] sm:$0xff] }
 0x3da   :  { %v2051_v59 = vmax.f32 %v1964_v3, %v1965_v50 }
 0x3df   :  { %v1722_v11 = vpop.f32.mrf.mxu0  ;;  %v1851_v14 = vpop.f32.mrf.mxu1 }
 0x3e0   :  { %v1966_v10 = vadd.f32 %v1722_v11, %v5624_v6  ;;  %v1967_v45 = vadd.f32 %v1851_v14, %v5626_v52 }
 0x3e1   :  { %4085 = vmatmul.msk.bf16.gmra.mxu0 %vm241_vm1, %v4748_v63  ;;  %4109 = vmatmul.msk.bf16.gmra.mxu1 %vm241_vm1, %v4748_v63 }
 0x3e2   :  { %v2052_v33 = vmax.f32 %v1966_v10, %v1967_v45 }
 0x3e4   :  { %v2094_v47 = vmax.f32 %v2050_v35, %v2052_v33 }
 0x3e6   :  { %v2119_v27 = vadd.f32 %v6031_v9, %v2094_v47 }
 0x3e7   :  { %v1724_v38 = vpop.f32.mrf.mxu0  ;;  %v1853_v15 = vpop.f32.mrf.mxu1 }
 0x3e8   :  { %v1968_v44 = vadd.f32 %v1724_v38, %v5630_v16  ;;  %v1969_v6 = vadd.f32 %v1853_v15, %v5632_v53  ;;  %v2143_v52 = vmax.f32 %v2119_v27, 0.0  ;;  %v4749_v16 = vld [vmem:[%s6828_s0 + $0x90] sm:$0xff] }
 0x3ea   :  { %v2053_v8 = vmax.f32 %v1968_v44, %v1969_v6  ;;  %v2167_v19 = vpack.c.bf16 %v2143_v52, %v2143_v52  ;;  %v7031_v52 = vld [vmem:[#allocation5_spill] sm:$0xff] }
 0x3ec   :  { %v2095_v23 = vmax.f32 %v2051_v59, %v2053_v8  ;;  %v2236_v36 = vunpack.c.l.b16 %v2167_v19  ;;  %v7032_v19 = vld [vmem:[#allocation6_spill] sm:$0xff] }
 0x3ee   :  { %v2120_v29 = vadd.f32 %v6031_v9, %v2095_v23 }
 0x3ef   :  { %v1727_v58 = vpop.f32.mrf.mxu0  ;;  %v1856_v43 = vpop.f32.mrf.mxu1 }
 0x3f0   :  { %v1970_v49 = vadd.f32 %v1727_v58, %v5644_v22  ;;  %v2144_v18 = vmax.f32 %v2120_v29, 0.0  ;;  %v1971_v51 = vadd.f32 %v1856_v43, %v5646_v42 }
 0x3f1   :  { %4086 = vmatmul.msk.bf16.gmra.mxu0 %vm241_vm1, %v4749_v16  ;;  %4110 = vmatmul.msk.bf16.gmra.mxu1 %vm241_vm1, %v4749_v16  ;;  %v7033_v16 = vld [vmem:[#allocation7_spill] sm:$0xff] }
 0x3f2   :  { %v2168_v53 = vpack.c.bf16 %v2144_v18, %v2144_v18  ;;  %v2054_v17 = vmax.f32 %v1970_v49, %v1971_v51 }
 0x3f4   :  { %v2237_v25 = vunpack.c.l.b16 %v2168_v53 }
 0x3f6   :  { %v6092_v35 = vpack.c.b16 %v2237_v25, %v2236_v36  ;;  %v7034_v25 = vld [vmem:[#allocation8_spill] sm:$0xff] }
 0x3f7   :  { %v1729_v22 = vpop.f32.mrf.mxu0  ;;  %v1858_v31 = vpop.f32.mrf.mxu1 }
 0x3f8   :  { %v1972_v60 = vadd.f32 %v1729_v22, %v5650_v46  ;;  %v1973_v42 = vadd.f32 %v1858_v31, %v5652_v1  ;;  %4177 = vmatmul.msk.bf16.gmra.mxu2 %vm2333_vm3, %v6092_v35  ;;  %4185 = vmatmul.msk.bf16.gmra.mxu3 %vm2333_vm3, %v6092_v35  ;;  %v4750_v46 = vld [vmem:[%s6828_s0 + $0x98] sm:$0xff] }
 0x3f9   :  { %v7035_v31 = vld [vmem:[#allocation13_spill] sm:$0xff] }
 0x3fa   :  { %v2055_v48 = vmax.f32 %v1972_v60, %v1973_v42 }
 0x3ff   :  { %v1732_v3 = vpop.f32.mrf.mxu0  ;;  %v1861_v50 = vpop.f32.mrf.mxu1 }
 0x400   :  { %v1974_v4 = vadd.f32 %v1732_v3, %v5664_v54  ;;  %v1975_v59 = vadd.f32 %v1861_v50, %v5666_v5 }
 0x401   :  { %4087 = vmatmul.msk.bf16.gmra.mxu0 %vm241_vm1, %v4750_v46  ;;  %4111 = vmatmul.msk.bf16.gmra.mxu1 %vm241_vm1, %v4750_v46 }
 0x402   :  { %v2056_v1 = vmax.f32 %v1974_v4, %v1975_v59  ;;  %v7036_v59 = vld [vmem:[#allocation9_spill] sm:$0xff] }
 0x404   :  { %v2096_v11 = vmax.f32 %v2054_v17, %v2056_v1 }
 0x406   :  { %v2121_v63 = vadd.f32 %v6031_v9, %v2096_v11 }
 0x407   :  { %v1734_v10 = vpop.f32.mrf.mxu0  ;;  %v1863_v45 = vpop.f32.mrf.mxu1 }
 0x408   :  { %v1976_v14 = vadd.f32 %v1734_v10, %v5670_v12  ;;  %v1977_v54 = vadd.f32 %v1863_v45, %v5672_v28  ;;  %v2145_v5 = vmax.f32 %v2121_v63, 0.0  ;;  %v4751_v12 = vld [vmem:[%s6828_s0 + $0xa0] sm:$0xff] }
 0x409   :  { %v7037_v10 = vld [vmem:[#allocation10_spill] sm:$0xff] }
 0x40a   :  { %v2057_v33 = vmax.f32 %v1976_v14, %v1977_v54  ;;  %v2169_v6 = vpack.c.bf16 %v2145_v5, %v2145_v5 }
 0x40c   :  { %v2097_v47 = vmax.f32 %v2055_v48, %v2057_v33  ;;  %v2238_v58 = vunpack.c.l.b16 %v2169_v6  ;;  %v4752_v48 = vld [vmem:[%s6828_s0 + $0xa8] sm:$0xff]  ;;  %v7039_v6 = vld [vmem:[#allocation12_spill] sm:$0xff] }
 0x40e   :  { %v2122_v38 = vadd.f32 %v6031_v9, %v2097_v47  ;;  %v7038_v47 = vld [vmem:[#allocation11_spill] sm:$0xff] }
 0x40f   :  { %v1737_v44 = vpop.f32.mrf.mxu0  ;;  %v1866_v27 = vpop.f32.mrf.mxu1 }
 0x410   :  { %v1978_v15 = vadd.f32 %v1737_v44, %v5684_v13  ;;  %v2146_v8 = vmax.f32 %v2122_v38, 0.0  ;;  %v1979_v23 = vadd.f32 %v1866_v27, %v7031_v52  ;;  %v4753_v52 = vld [vmem:[%s6828_s0 + $0xb0] sm:$0xff] }
 0x411   :  { %4088 = vmatmul.msk.bf16.gmra.mxu0 %vm241_vm1, %v4751_v12  ;;  %4112 = vmatmul.msk.bf16.gmra.mxu1 %vm241_vm1, %v4751_v12 }
 0x412   :  { %v2170_v28 = vpack.c.bf16 %v2146_v8, %v2146_v8  ;;  %v2058_v29 = vmax.f32 %v1978_v15, %v1979_v23 }
 0x414   :  { %v2239_v49 = vunpack.c.l.b16 %v2170_v28 }
 0x416   :  { %v6118_v43 = vpack.c.b16 %v2239_v49, %v2238_v58 }
 0x417   :  { %v1739_v13 = vpop.f32.mrf.mxu0  ;;  %v1868_v51 = vpop.f32.mrf.mxu1 }
 0x418   :  { %v1980_v18 = vadd.f32 %v1739_v13, %v7032_v19  ;;  %v1981_v53 = vadd.f32 %v1868_v51, %v7033_v16  ;;  %4178 = vmatmul.msk.bf16.gmra.mxu2 %vm2333_vm3, %v6118_v43  ;;  %4186 = vmatmul.msk.bf16.gmra.mxu3 %vm2333_vm3, %v6118_v43  ;;  %v2201_v13 = vld [vmem:[#allocation2 + $0x70] sm:$0xff]  ;;  %v2900_v19 = vld [vmem:[#allocation2 + $0x1d8] sm:$0xff] }
 0x41a   :  { %v2059_v17 = vmax.f32 %v1980_v18, %v1981_v53  ;;  %v7040_v18 = vld [vmem:[#allocation18_spill] sm:$0xff]  ;;  %v2511_v53 = vunpack.c.l.b16 %v2201_v13 }
 0x41f   :  { %v1742_v36 = vpop.f32.mrf.mxu0  ;;  %v1871_v60 = vpop.f32.mrf.mxu1 }
 0x420   :  { %v1982_v22 = vadd.f32 %v1742_v36, %v7034_v25  ;;  %v1983_v42 = vadd.f32 %v1871_v60, %v7035_v31  ;;  %v2949_v36 = vunpack.c.l.b16 %v2900_v19  ;;  %v7041_v25 = vld [vmem:[#allocation14_spill] sm:$0xff]  ;;  %v2950_v60 = vunpack.c.h.b16 %v2900_v19 }
 0x421   :  { %4089 = vmatmul.msk.bf16.gmra.mxu0 %vm241_vm1, %v4752_v48  ;;  %4113 = vmatmul.msk.bf16.gmra.mxu1 %vm241_vm1, %v4752_v48  ;;  %v2527_v31 = vpack.c.b16 %v2511_v53, %v2511_v53 }
 0x422   :  { %v2060_v3 = vmax.f32 %v1982_v22, %v1983_v42  ;;  %v2965_v48 = vpack.c.b16 %v2949_v36, %v2949_v36  ;;  %v7044_v36 = vld [vmem:[#allocation17_spill] sm:$0xff] }
 0x424   :  { %v2098_v4 = vmax.f32 %v2058_v29, %v2060_v3 }
 0x426   :  { %v2123_v11 = vadd.f32 %v6031_v9, %v2098_v4  ;;  %v2966_v4 = vpack.c.b16 %v2950_v60, %v2950_v60 }
 0x427   :  { %v1744_v50 = vpop.f32.mrf.mxu0  ;;  %v1873_v1 = vpop.f32.mrf.mxu1 }
 0x428   :  { %v1984_v46 = vadd.f32 %v1744_v50, %v7036_v59  ;;  %v1985_v14 = vadd.f32 %v1873_v1, %v7037_v10  ;;  %v2147_v63 = vmax.f32 %v2123_v11, 0.0  ;;  %v4242_v50 = vld [vmem:[#allocation2 + $0x60] sm:$0xf]  ;;  %v4655_v59 = vld [vmem:[#allocation2 + $0x64] sm:$0xf0]  ;;  %v2547_v1 = vsel %vm2358_vm2, %v2527_v31, 0 }
 0x429   :  { %v2985_v10 = vsel %vm2358_vm2, %v2965_v48, 0  ;;  %2552 = vmatpush.bf16.msrb.mxu2 %v2547_v1 }
 0x42a   :  { %v2061_v45 = vmax.f32 %v1984_v46, %v1985_v14  ;;  %v2171_v15 = vpack.c.bf16 %v2147_v63, %v2147_v63  ;;  %v4654_v46 = vld [vmem:[#allocation2 + $0x64] sm:$0xf]  ;;  %v4244_v14 = vld [vmem:[#allocation2 + $0x68] sm:$0xf0]  ;;  %v4243_v63 = vor.u32 %v4655_v59, %v4242_v50  ;;  %2990 = vmatpush.bf16.msrb.mxu0 %v2985_v10  ;;  %v1606_v59 = vadd.f32 %v5778_v57, %v5774_v32  ;;  %v4653_v10 = vld [vmem:[#allocation2 + $0x54] sm:$0xf0] }
 0x42b   :  { %v4696_v50 = vld [vmem:[#allocation2 + $0x1cc] sm:$0xf] }
 0x42c   :  { %v2099_v54 = vmax.f32 %v2059_v17, %v2061_v45  ;;  %v2240_v28 = vunpack.c.l.b16 %v2171_v15  ;;  %v2512_v17 = vunpack.c.h.b16 %v2201_v13  ;;  %v2988_v45 = vsel %vm2358_vm2, %v2966_v4, 0  ;;  %v4754_v15 = vld [vmem:[%s6828_s0 + $0xb8] sm:$0xff]  ;;  %v4697_v4 = vld [vmem:[#allocation2 + $0x1cc] sm:$0xf0] }
 0x42d   :  { %3039 = vmatpush.bf16.msrb.mxu1 %v2988_v45  ;;  %2553 = vmatpush.bf16.msrb.mxu2 %v4243_v63 }
 0x42e   :  { %v2124_v33 = vadd.f32 %v6031_v9, %v2099_v54  ;;  %v2528_v42 = vpack.c.b16 %v2512_v17, %v2512_v17  ;;  %v4247_v54 = vor.u32 %v4654_v46, %v4244_v14  ;;  %v4652_v14 = vld [vmem:[#allocation2 + $0x54] sm:$0xf] }
 0x42f   :  { %v1747_v5 = vpop.f32.mrf.mxu0  ;;  %v1876_v44 = vpop.f32.mrf.mxu1 }
 0x430   :  { %v1986_v38 = vadd.f32 %v1747_v5, %v7038_v47  ;;  %v2148_v27 = vmax.f32 %v2124_v33, 0.0  ;;  %v1987_v8 = vadd.f32 %v1876_v44, %v7039_v6  ;;  %v2550_v11 = vsel %vm2358_vm2, %v2528_v42, 0  ;;  %v7042_v5 = vld [vmem:[#allocation15_spill] sm:$0xff] }
 0x431   :  { %4090 = vmatmul.msk.bf16.gmra.mxu0 %vm241_vm1, %v4753_v52  ;;  %4114 = vmatmul.msk.bf16.gmra.mxu1 %vm241_vm1, %v4753_v52  ;;  %v7045_v42 = vld [vmem:[#allocation23_spill] sm:$0xff] }
 0x432   :  { %v2172_v23 = vpack.c.bf16 %v2148_v27, %v2148_v27  ;;  %v2062_v12 = vmax.f32 %v1986_v38, %v1987_v8  ;;  %2601 = vmatpush.bf16.msrb.mxu3 %v2550_v11  ;;  %v1605_v48 = vadd.f32 %v5776_v0, %v7045_v42  ;;  %v4234_v11 = vld [vmem:[#allocation2 + $0x50] sm:$0xf] }
 0x434   :  { %v2241_v29 = vunpack.c.l.b16 %v2172_v23 }
 0x436   :  { %v6144_v58 = vpack.c.b16 %v2241_v29, %v2240_v28  ;;  %2602 = vmatpush.bf16.msrb.mxu3 %v4247_v54  ;;  %v7043_v29 = vld [vmem:[#allocation16_spill] sm:$0xff] }
 0x437   :  { %v1749_v49 = vpop.f32.mrf.mxu0  ;;  %v1878_v16 = vpop.f32.mrf.mxu1 }
 0x438   :  { %v1988_v51 = vadd.f32 %v1749_v49, %v7040_v18  ;;  %v1989_v22 = vadd.f32 %v1878_v16, %v7041_v25  ;;  %4179 = vmatmul.msk.bf16.gmra.mxu2 %vm2333_vm3, %v6144_v58  ;;  %4187 = vmatmul.msk.bf16.gmra.mxu3 %vm2333_vm3, %v6144_v58 }
 0x43a   :  { %v2063_v3 = vmax.f32 %v1988_v51, %v1989_v22 }
 0x43f   :  { %v1752_v33 = vpop.f32.mrf.mxu0  ;;  %v1881_v38 = vpop.f32.mrf.mxu1 }
 0x440   :  { %v1990_v47 = vadd.f32 %v1752_v33, %v7042_v5  ;;  %v1991_v44 = vadd.f32 %v1881_v38, %v5748_v56  ;;  %v4235_v33 = vor.u32 %v4653_v10, %v4234_v11  ;;  %v4236_v5 = vld [vmem:[#allocation2 + $0x58] sm:$0xf0]  ;;  %v4378_v38 = vld [vmem:[#allocation2 + $0x1b8] sm:$0xf]  ;;  %v4364_v11 = vld [vmem:[#allocation2 + $0x1a0] sm:$0xf0] }
 0x441   :  { %4091 = vmatmul.msk.bf16.gmra.mxu0 %vm241_vm1, %v4754_v15  ;;  %4115 = vmatmul.msk.bf16.gmra.mxu1 %vm241_vm1, %v4754_v15  ;;  %v4239_v32 = vor.u32 %v4652_v14, %v4236_v5  ;;  %v4694_v15 = vld [vmem:[#allocation2 + $0x1bc] sm:$0xf]  ;;  %v4354_v5 = vld [vmem:[#allocation2 + $0x188] sm:$0xf] }
 0x442   :  { %v2064_v27 = vmax.f32 %v1990_v47, %v1991_v44  ;;  %v4388_v47 = vld [vmem:[#allocation2 + $0x1d0] sm:$0xf0]  ;;  %2554 = vmatpush.bf16.msrb.mxu2 %v4235_v33  ;;  %v4695_v44 = vld [vmem:[#allocation2 + $0x1bc] sm:$0xf0] }
 0x443   :  { %v4391_v57 = vor.u32 %v4696_v50, %v4388_v47  ;;  %2603 = vmatpush.bf16.msrb.mxu3 %v4239_v32  ;;  %v4689_v47 = vld [vmem:[#allocation2 + $0x18c] sm:$0xf0]  ;;  %v4688_v32 = vld [vmem:[#allocation2 + $0x18c] sm:$0xf] }
 0x444   :  { %v2100_v6 = vmax.f32 %v2062_v12, %v2064_v27 }
 0x445   :  { %3040 = vmatpush.bf16.msrb.mxu1 %v4391_v57  ;;  %v7050_v57 = vld [vmem:[#allocation22_spill] sm:$0xff] }
 0x446   :  { %v2125_v28 = vadd.f32 %v6031_v9, %v2100_v6  ;;  %v4226_v6 = vld [vmem:[#allocation2 + $0x40] sm:$0xf] }
 0x447   :  { %v1754_v8 = vpop.f32.mrf.mxu0  ;;  %v1883_v23 = vpop.f32.mrf.mxu1 }
 0x448   :  { %v1992_v52 = vadd.f32 %v1754_v8, %v5752_v24  ;;  %v1993_v56 = vadd.f32 %v1883_v23, %v7043_v29  ;;  %v2149_v13 = vmax.f32 %v2125_v28, 0.0  ;;  %v4755_v24 = vld [vmem:[%s6828_s0 + $0xc0] sm:$0xff]  ;;  %v4651_v8 = vld [vmem:[#allocation2 + $0x44] sm:$0xf0]  ;;  %v4379_v23 = vor.u32 %v4695_v44, %v4378_v38  ;;  %v4228_v29 = vld [vmem:[#allocation2 + $0x48] sm:$0xf0] }
 0x449   :  { %v4227_v28 = vor.u32 %v4651_v8, %v4226_v6  ;;  %v7051_v38 = vld [vmem:[#allocation24_spill] sm:$0xff]  ;;  %v4355_v6 = vor.u32 %v4689_v47, %v4354_v5  ;;  %v7056_v5 = vld [vmem:[#allocation29_spill] sm:$0xff]  ;;  %v7057_v47 = vld [vmem:[#allocation31_spill] sm:$0xff] }
 0x44a   :  { %v2065_v49 = vmax.f32 %v1992_v52, %v1993_v56  ;;  %v2173_v17 = vpack.c.bf16 %v2149_v13, %v2149_v13  ;;  %v4650_v52 = vld [vmem:[#allocation2 + $0x44] sm:$0xf]  ;;  %v1610_v44 = vadd.f32 %v7051_v38, %v7050_v57  ;;  %v4356_v8 = vld [vmem:[#allocation2 + $0x190] sm:$0xf0] }
 0x44b   :  { %v4380_v56 = vld [vmem:[#allocation2 + $0x1c0] sm:$0xf0]  ;;  %2555 = vmatpush.bf16.msrb.mxu2 %v4227_v28  ;;  %v4359_v28 = vor.u32 %v4688_v32, %v4356_v8  ;;  %v1614_v32 = vadd.f32 %v7057_v47, %v7056_v5  ;;  %v7063_v47 = vld [vmem:[#allocation37_spill] sm:$0xff] }
 0x44c   :  { %v2101_v19 = vmax.f32 %v2063_v3, %v2065_v49  ;;  %v4386_v3 = vld [vmem:[#allocation2 + $0x1c8] sm:$0xf]  ;;  %v4231_v49 = vor.u32 %v4650_v52, %v4228_v29  ;;  %v4383_v13 = vor.u32 %v4694_v15, %v4380_v56  ;;  %v4687_v29 = vld [vmem:[#allocation2 + $0x17c] sm:$0xf0]  ;;  %v4686_v56 = vld [vmem:[#allocation2 + $0x17c] sm:$0xf] }
 0x44d   :  { %v4387_v45 = vor.u32 %v4697_v4, %v4386_v3  ;;  %v4362_v3 = vld [vmem:[#allocation2 + $0x198] sm:$0xf]  ;;  %v4691_v4 = vld [vmem:[#allocation2 + $0x19c] sm:$0xf0] }
 0x44e   :  { %v2126_v18 = vadd.f32 %v6031_v9, %v2101_v19  ;;  %v4370_v19 = vld [vmem:[#allocation2 + $0x1a8] sm:$0xf]  ;;  %2604 = vmatpush.bf16.msrb.mxu3 %v4231_v49  ;;  %3041 = vmatpush.bf16.msrb.mxu1 %v4383_v13 }
 0x44f   :  { %v1757_v51 = vpop.f32.mrf.mxu0  ;;  %v1886_v53 = vpop.f32.mrf.mxu1  ;;  %2991 = vmatpush.bf16.msrb.mxu0 %v4387_v45  ;;  %v7048_v45 = vld [vmem:[#allocation21_spill] sm:$0xff] }
 0x450   :  { %v6168_v16 = vadd.f32 %v1757_v51, %v5766_v30  ;;  %v2150_v12 = vmax.f32 %v2126_v18, 0.0  ;;  %v6171_v25 = vadd.f32 %v1886_v53, %v7044_v36  ;;  %v2242_v30 = vunpack.c.l.b16 %v2173_v17  ;;  %v4693_v18 = vld [vmem:[#allocation2 + $0x1ac] sm:$0xf0]  ;;  %v4692_v51 = vld [vmem:[#allocation2 + $0x1ac] sm:$0xf] }
 0x451   :  { %4092 = vmatmul.msk.bf16.gmra.mxu0 %vm241_vm1, %v4755_v24  ;;  %4116 = vmatmul.msk.bf16.gmra.mxu1 %vm241_vm1, %v4755_v24  ;;  %v4371_v17 = vor.u32 %v4693_v18, %v4370_v19  ;;  %v7046_v36 = vld [vmem:[#allocation19_spill] sm:$0xff]  ;;  %v4348_v19 = vld [vmem:[#allocation2 + $0x180] sm:$0xf0] }
 0x452   :  { %v2174_v22 = vpack.c.bf16 %v2150_v12, %v2150_v12  ;;  %v2066_v60 = vmax.f32 %v6168_v16, %v6171_v25  ;;  %v4372_v12 = vld [vmem:[#allocation2 + $0x1b0] sm:$0xf0]  ;;  %v4351_v18 = vor.u32 %v4686_v56, %v4348_v19  ;;  %v4647_v56 = vld [vmem:[#allocation2 + $0x24] sm:$0xf0]  ;;  %v4212_v19 = vld [vmem:[#allocation2 + $0x28] sm:$0xf0] }
 0x453   :  { %2992 = vmatpush.bf16.msrb.mxu0 %v4379_v23 }
 0x454   :  { %v2243_v31 = vunpack.c.l.b16 %v2174_v22 }
 0x456   :  { %v6184_v46 = vpack.c.b16 %v2243_v31, %v2242_v30  ;;  %v4375_v30 = vor.u32 %v4692_v51, %v4372_v12  ;;  %v7047_v31 = vld [vmem:[#allocation20_spill] sm:$0xff] }
 0x457   :  { %v1759_v1 = vpop.f32.mrf.mxu0  ;;  %v1888_v54 = vpop.f32.mrf.mxu1  ;;  %2993 = vmatpush.bf16.msrb.mxu0 %v4371_v17  ;;  %v4338_v17 = vld [vmem:[#allocation2 + $0x168] sm:$0xf]  ;;  %v4685_v12 = vld [vmem:[#allocation2 + $0x16c] sm:$0xf0] }
 0x458   :  { %v6186_v63 = vadd.f32 %v1759_v1, %v1605_v48  ;;  %v6188_v0 = vadd.f32 %v1888_v54, %v1606_v59  ;;  %4180 = vmatmul.msk.bf16.gmra.mxu2 %vm2333_vm3, %v6184_v46  ;;  %4188 = vmatmul.msk.bf16.gmra.mxu3 %vm2333_vm3, %v6184_v46  ;;  %v4756_v48 = vld [vmem:[%s6828_s0 + $0xc8] sm:$0xff]  ;;  %v4363_v59 = vor.u32 %v4691_v4, %v4362_v3  ;;  %v4690_v1 = vld [vmem:[#allocation2 + $0x19c] sm:$0xf]  ;;  %v7049_v54 = vld [vmem:[#allocation28_spill] sm:$0xff] }
 0x459   :  { %3042 = vmatpush.bf16.msrb.mxu1 %v4375_v30  ;;  %v4367_v10 = vor.u32 %v4690_v1, %v4364_v11  ;;  %v1609_v33 = vadd.f32 %v7049_v54, %v7048_v45  ;;  %v4339_v30 = vor.u32 %v4685_v12, %v4338_v17  ;;  %v7053_v1 = vld [vmem:[#allocation26_spill] sm:$0xff]  ;;  %v7054_v45 = vld [vmem:[#allocation27_spill] sm:$0xff] }
 0x45a   :  { %v2067_v27 = vmax.f32 %v6186_v63, %v6188_v0  ;;  %v4757_v63 = vld [vmem:[%s6828_s0 + $0xd0] sm:$0xff]  ;;  %v7055_v54 = vld [vmem:[#allocation30_spill] sm:$0xff] }
 0x45b   :  { %2994 = vmatpush.bf16.msrb.mxu0 %v4363_v59 }
 0x45d   :  { %3043 = vmatpush.bf16.msrb.mxu1 %v4367_v10 }
 0x45f   :  { %v1762_v53 = vpop.f32.mrf.mxu0  ;;  %v1891_v22 = vpop.f32.mrf.mxu1  ;;  %2995 = vmatpush.bf16.msrb.mxu0 %v4355_v6  ;;  %v4648_v6 = vld [vmem:[#allocation2 + $0x34] sm:$0xf] }
 0x460   :  { %v1998_v24 = vadd.f32 %v1762_v53, %v7046_v36  ;;  %v1999_v42 = vadd.f32 %v1891_v22, %v7047_v31  ;;  %v4684_v36 = vld [vmem:[#allocation2 + $0x16c] sm:$0xf]  ;;  %v4340_v31 = vld [vmem:[#allocation2 + $0x170] sm:$0xf0] }
 0x461   :  { %4093 = vmatmul.msk.bf16.gmra.mxu0 %vm241_vm1, %v4756_v48  ;;  %4117 = vmatmul.msk.bf16.gmra.mxu1 %vm241_vm1, %v4756_v48  ;;  %v4343_v4 = vor.u32 %v4684_v36, %v4340_v31  ;;  %v7059_v31 = vld [vmem:[#allocation34_spill] sm:$0xff] }
 0x462   :  { %v2068_v50 = vmax.f32 %v1998_v24, %v1999_v42  ;;  %3044 = vmatpush.bf16.msrb.mxu1 %v4359_v28  ;;  %v7052_v42 = vld [vmem:[#allocation25_spill] sm:$0xff] }
 0x463   :  { %v4220_v28 = vld [vmem:[#allocation2 + $0x38] sm:$0xf0] }
 0x464   :  { %v2102_v14 = vmax.f32 %v2066_v60, %v2068_v50  ;;  %v4346_v60 = vld [vmem:[#allocation2 + $0x178] sm:$0xf] }
 0x465   :  { %v4347_v13 = vor.u32 %v4687_v29, %v4346_v60  ;;  %v4210_v29 = vld [vmem:[#allocation2 + $0x20] sm:$0xf] }
 0x466   :  { %v2127_v16 = vadd.f32 %v6031_v9, %v2102_v14  ;;  %3045 = vmatpush.bf16.msrb.mxu1 %v4351_v18 }
 0x467   :  { %v1764_v15 = vpop.f32.mrf.mxu0  ;;  %v1893_v23 = vpop.f32.mrf.mxu1  ;;  %2996 = vmatpush.bf16.msrb.mxu0 %v4347_v13  ;;  %v4211_v13 = vor.u32 %v4647_v56, %v4210_v29  ;;  %v4202_v56 = vld [vmem:[#allocation2 + $0x10] sm:$0xf] }
 0x468   :  { %v2000_v52 = vadd.f32 %v1764_v15, %v1609_v33  ;;  %v2001_v25 = vadd.f32 %v1893_v23, %v1610_v44  ;;  %v2151_v51 = vmax.f32 %v2127_v16, 0.0  ;;  %v1613_v33 = vadd.f32 %v7055_v54, %v7054_v45  ;;  %v4218_v44 = vld [vmem:[#allocation2 + $0x30] sm:$0xf]  ;;  %v4649_v15 = vld [vmem:[#allocation2 + $0x34] sm:$0xf0] }
 0x469   :  { %v4219_v23 = vor.u32 %v4649_v15, %v4218_v44  ;;  %v7062_v45 = vld [vmem:[#allocation36_spill] sm:$0xff] }
 0x46a   :  { %v2069_v49 = vmax.f32 %v2000_v52, %v2001_v25  ;;  %v2175_v50 = vpack.c.bf16 %v2151_v51, %v2151_v51  ;;  %3046 = vmatpush.bf16.msrb.mxu1 %v4343_v4  ;;  %v4223_v25 = vor.u32 %v4648_v6, %v4220_v28  ;;  %v4621_v51 = vld [vmem:[%s6828_s0 + $0xd8] sm:$0xff]  ;;  %v7066_v28 = vld [vmem:[#allocation39_spill] sm:$0xff] }
 0x46b   :  { %2997 = vmatpush.bf16.msrb.mxu0 %v4339_v30  ;;  %2556 = vmatpush.bf16.msrb.mxu2 %v4219_v23  ;;  %v7058_v30 = vld [vmem:[#allocation32_spill] sm:$0xff] }
 0x46c   :  { %v2103_v53 = vmax.f32 %v2067_v27, %v2069_v49  ;;  %v2244_v10 = vunpack.c.l.b16 %v2175_v50  ;;  %2605 = vmatpush.bf16.msrb.mxu3 %v4223_v25  ;;  %v4646_v49 = vld [vmem:[#allocation2 + $0x24] sm:$0xf] }
 0x46d   :  { %v4215_v18 = vor.u32 %v4646_v49, %v4212_v19  ;;  %v4645_v49 = vld [vmem:[#allocation2 + $0x14] sm:$0xf0] }
 0x46e   :  { %v2128_v24 = vadd.f32 %v6031_v9, %v2103_v53 }
 0x46f   :  { %v1767_v22 = vpop.f32.mrf.mxu0  ;;  %v1896_v3 = vpop.f32.mrf.mxu1  ;;  %2557 = vmatpush.bf16.msrb.mxu2 %v4211_v13  ;;  %v4644_v13 = vld [vmem:[#allocation2 + $0x14] sm:$0xf] }
 0x470   :  { %v2002_v48 = vadd.f32 %v1767_v22, %v7052_v42  ;;  %v2152_v59 = vmax.f32 %v2128_v24, 0.0  ;;  %v2003_v11 = vadd.f32 %v1896_v3, %v7053_v1  ;;  %2606 = vmatpush.bf16.msrb.mxu3 %v4215_v18  ;;  %v1617_v42 = vadd.f32 %v7059_v31, %v7058_v30  ;;  %v7061_v3 = vld [vmem:[#allocation35_spill] sm:$0xff]  ;;  %v4642_v30 = vld [vmem:[#allocation2 + $0x4] sm:$0xf] }
 0x471   :  { %4094 = vmatmul.msk.bf16.gmra.mxu0 %vm241_vm1, %v4757_v63  ;;  %4118 = vmatmul.msk.bf16.gmra.mxu1 %vm241_vm1, %v4757_v63 }
 0x472   :  { %v2176_v0 = vpack.c.bf16 %v2152_v59, %v2152_v59  ;;  %v2070_v27 = vmax.f32 %v2002_v48, %v2003_v11  ;;  %v7060_v48 = vld [vmem:[#allocation33_spill] sm:$0xff] }
 0x473   :  { %v1618_v4 = vadd.f32 %v7061_v3, %v7060_v48 }
 0x474   :  { %v2245_v14 = vunpack.c.l.b16 %v2176_v0 }
 0x476   :  { %v6226_v57 = vpack.c.b16 %v2245_v14, %v2244_v10 }
 0x477   :  { %v1769_v38 = vpop.f32.mrf.mxu0  ;;  %v1898_v52 = vpop.f32.mrf.mxu1 }
 0x478   :  { %v2004_v8 = vadd.f32 %v1769_v38, %v1613_v33  ;;  %v2005_v16 = vadd.f32 %v1898_v52, %v1614_v32  ;;  %4181 = vmatmul.msk.bf16.gmra.mxu2 %vm2333_vm3, %v6226_v57  ;;  %4189 = vmatmul.msk.bf16.gmra.mxu3 %vm2333_vm3, %v6226_v57  ;;  %v7065_v52 = vld [vmem:[#allocation40_spill] sm:$0xff] }
 0x47a   :  { %v2071_v60 = vmax.f32 %v2004_v8, %v2005_v16  ;;  %v7064_v8 = vld [vmem:[#allocation38_spill] sm:$0xff]  ;;  %v7067_v16 = vld [vmem:[#allocation41_spill] sm:$0xff] }
 0x47b   :  { %v1621_v23 = vadd.f32 %v7065_v52, %v7064_v8  ;;  %v1622_v25 = vadd.f32 %v7067_v16, %v7066_v28 }
 0x47f   :  { %v1772_v53 = vpop.f32.mrf.mxu0  ;;  %v1901_v12 = vpop.f32.mrf.mxu1 }
 0x480   :  { %v2006_v17 = vadd.f32 %v1772_v53, %v5838_v2  ;;  %v2007_v36 = vadd.f32 %v1901_v12, %v5840_v26  ;;  %v4204_v53 = vld [vmem:[#allocation2 + $0x18] sm:$0xf0] }
 0x481   :  { %4095 = vmatmul.msk.bf16.gmra.mxu0 %vm241_vm1, %v4621_v51  ;;  %4119 = vmatmul.msk.bf16.gmra.mxu1 %vm241_vm1, %v4621_v51  ;;  %v4203_v51 = vor.u32 %v4645_v49, %v4202_v56  ;;  %v4207_v12 = vor.u32 %v4644_v13, %v4204_v53  ;;  %v6281_v56 = vpop.f32.mrf.mxu3  ;;  %v7073_v49 = vld [vmem:[#allocation46_spill] sm:$0xff]  ;;  %v7074_v13 = vld [vmem:[#allocation48_spill] sm:$0xff] }
 0x482   :  { %v2072_v24 = vmax.f32 %v2006_v17, %v2007_v36 }
 0x483   :  { %2558 = vmatpush.bf16.msrb.mxu2 %v4203_v51  ;;  %2607 = vmatpush.bf16.msrb.mxu3 %v4207_v12  ;;  %v2665_v51 = vld [vmem:[#allocation2 + $0x160] sm:$0xff] }
 0x484   :  { %v2104_v22 = vmax.f32 %v2070_v27, %v2072_v24  ;;  %v4194_v24 = vld [vmem:[#allocation2] sm:$0xf]  ;;  %v2714_v12 = vunpack.c.l.b16 %v2665_v51 }
 0x486   :  { %v2129_v2 = vadd.f32 %v6031_v9, %v2104_v22  ;;  %v4643_v22 = vld [vmem:[#allocation2 + $0x4] sm:$0xf0] }
 0x487   :  { %v1774_v50 = vpop.f32.mrf.mxu0  ;;  %v1903_v1 = vpop.f32.mrf.mxu1  ;;  %v4195_v31 = vor.u32 %v4643_v22, %v4194_v24  ;;  %v2730_v22 = vpack.c.b16 %v2714_v12, %v2714_v12 }
 0x488   :  { %v2008_v59 = vadd.f32 %v1774_v50, %v1617_v42  ;;  %v2009_v11 = vadd.f32 %v1903_v1, %v1618_v4  ;;  %v2153_v26 = vmax.f32 %v2129_v2, 0.0  ;;  %v4196_v42 = vld [vmem:[#allocation2 + $0x8] sm:$0xf0]  ;;  %v7068_v4 = vld [vmem:[#allocation42_spill] sm:$0xff] }
 0x489   :  { %v4199_v48 = vor.u32 %v4642_v30, %v4196_v42  ;;  %2559 = vmatpush.bf16.msrb.mxu2 %v4195_v31  ;;  %v4314_v42 = vld [vmem:[#allocation2 + $0x150] sm:$0xf] }
 0x48a   :  { %v2073_v63 = vmax.f32 %v2008_v59, %v2009_v11  ;;  %v2177_v33 = vpack.c.bf16 %v2153_v26, %v2153_v26  ;;  %v7069_v26 = vld [vmem:[#allocation43_spill] sm:$0xff] }
 0x48b   :  { %2608 = vmatpush.bf16.msrb.mxu3 %v4199_v48  ;;  %v4683_v48 = vld [vmem:[#allocation2 + $0x154] sm:$0xf0] }
 0x48c   :  { %v2105_v0 = vmax.f32 %v2071_v60, %v2073_v63  ;;  %v2246_v15 = vunpack.c.l.b16 %v2177_v33 }
 0x48e   :  { %v2130_v10 = vadd.f32 %v6031_v9, %v2105_v0 }
 0x48f   :  { %v1777_v14 = vpop.f32.mrf.mxu0  ;;  %v1906_v54 = vpop.f32.mrf.mxu1 }
 0x490   :  { %v2010_v27 = vadd.f32 %v1777_v14, %v7062_v45  ;;  %v2154_v5 = vmax.f32 %v2130_v10, 0.0  ;;  %v2011_v32 = vadd.f32 %v1906_v54, %v7063_v47  ;;  %v7070_v45 = vld [vmem:[#allocation44_spill] sm:$0xff] }
 0x491   :  { %4392 = vmatmul.msk.bf16.vlgmr.msrb.gmra.mxu0 %vm2333_vm3, %v6118_v43  ;;  %4400 = vmatmul.msk.bf16.vlgmr.msrb.gmra.mxu1 %vm2333_vm3, %v6118_v43 }
 0x492   :  { %v2178_v38 = vpack.c.bf16 %v2154_v5, %v2154_v5  ;;  %v2074_v44 = vmax.f32 %v2010_v27, %v2011_v32 }
 0x494   :  { %v2247_v6 = vunpack.c.l.b16 %v2178_v38 }
 0x496   :  { %v6255_v60 = vpack.c.b16 %v2247_v6, %v2246_v15 }
 0x497   :  { %v1779_v29 = vpop.f32.mrf.mxu0  ;;  %v1908_v18 = vpop.f32.mrf.mxu1 }
 0x498   :  { %v2012_v19 = vadd.f32 %v1779_v29, %v1621_v23  ;;  %v2013_v17 = vadd.f32 %v1908_v18, %v1622_v25  ;;  %4182 = vmatmul.msk.bf16.gmra.mxu2 %vm2333_vm3, %v6255_v60  ;;  %4190 = vmatmul.msk.bf16.gmra.mxu3 %vm2333_vm3, %v6255_v60  ;;  %v6277_v23 = vpop.f32.mrf.mxu2  ;;  %v7071_v25 = vld [vmem:[#allocation45_spill] sm:$0xff]  ;;  %v7072_v29 = vld [vmem:[#allocation47_spill] sm:$0xff] }
 0x49a   :  { %v2075_v36 = vmax.f32 %v2012_v19, %v2013_v17 }
 0x49f   :  { %v1782_v3 = vpop.f32.mrf.mxu0  ;;  %v1911_v59 = vpop.f32.mrf.mxu1 }
 0x4a0   :  { %v2014_v50 = vadd.f32 %v1782_v3, %v7068_v4  ;;  %v2015_v1 = vadd.f32 %v1911_v59, %v5882_v40  ;;  %v4682_v3 = vld [vmem:[#allocation2 + $0x154] sm:$0xf]  ;;  %v2750_v4 = vsel %vm2358_vm2, %v2730_v22, 0  ;;  %v4316_v59 = vld [vmem:[#allocation2 + $0x158] sm:$0xf0] }
 0x4a1   :  { %4393 = vmatmul.msk.bf16.gmra.mxu0 %vm2333_vm3, %v6144_v58  ;;  %4401 = vmatmul.msk.bf16.gmra.mxu1 %vm2333_vm3, %v6144_v58  ;;  %v7082_v22 = vld [vmem:[#allocation68_spill] sm:$0xff] }
 0x4a2   :  { %v2076_v2 = vmax.f32 %v2014_v50, %v2015_v1  ;;  %v6293_v1 = vpop.f32.mrf.mxu2  ;;  %2755 = vmatpush.bf16.msra.mxu2 %v2750_v4  ;;  %v4681_v4 = vld [vmem:[#allocation2 + $0x144] sm:$0xf0] }
 0x4a4   :  { %v2106_v11 = vmax.f32 %v2074_v44, %v2076_v2  ;;  %v4315_v2 = vor.u32 %v4683_v48, %v4314_v42 }
 0x4a6   :  { %v2131_v14 = vadd.f32 %v6031_v9, %v2106_v11  ;;  %v4319_v11 = vor.u32 %v4682_v3, %v4316_v59  ;;  %2756 = vmatpush.bf16.msra.mxu2 %v4315_v2  ;;  %v4306_v3 = vld [vmem:[#allocation2 + $0x140] sm:$0xf]  ;;  %v7084_v2 = vld [vmem:[#allocation69_spill] sm:$0xff] }
 0x4a7   :  { %v1784_v63 = vpop.f32.mrf.mxu0  ;;  %v1913_v10 = vpop.f32.mrf.mxu1  ;;  %v7083_v59 = vld [vmem:[#allocation54_spill] sm:$0xff] }
 0x4a8   :  { %v2016_v0 = vadd.f32 %v1784_v63, %v7069_v26  ;;  %v2017_v27 = vadd.f32 %v1913_v10, %v7070_v45  ;;  %v2155_v33 = vmax.f32 %v2131_v14, 0.0  ;;  %v6295_v63 = vpop.f32.mrf.mxu3  ;;  %v7076_v45 = vld [vmem:[#allocation50_spill] sm:$0xff] }
 0x4aa   :  { %v2077_v54 = vmax.f32 %v2016_v0, %v2017_v27  ;;  %v2179_v15 = vpack.c.bf16 %v2155_v33, %v2155_v33  ;;  %v7075_v0 = vld [vmem:[#allocation49_spill] sm:$0xff] }
 0x4ac   :  { %v2107_v5 = vmax.f32 %v2075_v36, %v2077_v54  ;;  %v2248_v28 = vunpack.c.l.b16 %v2179_v15  ;;  %v2715_v36 = vunpack.c.h.b16 %v2665_v51 }
 0x4ae   :  { %v2132_v40 = vadd.f32 %v6031_v9, %v2107_v5  ;;  %v2731_v30 = vpack.c.b16 %v2715_v36, %v2715_v36  ;;  %v7077_v5 = vld [vmem:[#allocation51_spill] sm:$0xff] }
 0x4af   :  { %v1787_v47 = vpop.f32.mrf.mxu0  ;;  %v1916_v38 = vpop.f32.mrf.mxu1 }
 0x4b0   :  { %v2018_v32 = vadd.f32 %v1787_v47, %v5897_v41  ;;  %v2156_v6 = vmax.f32 %v2132_v40, 0.0  ;;  %v2019_v44 = vadd.f32 %v1916_v38, %v5899_v34  ;;  %v1629_v41 = vadd.f32 %v7072_v29, %v7071_v25  ;;  %v7078_v40 = vld [vmem:[#allocation66_spill] sm:$0xff]  ;;  %v7080_v38 = vld [vmem:[#allocation67_spill] sm:$0xff] }
 0x4b1   :  { %4394 = vmatmul.msk.bf16.gmra.mxu0 %vm2333_vm3, %v6184_v46  ;;  %4402 = vmatmul.msk.bf16.gmra.mxu1 %vm2333_vm3, %v6184_v46  ;;  %v1630_v34 = vadd.f32 %v7074_v13, %v7073_v49  ;;  %v2753_v50 = vsel %vm2358_vm2, %v2731_v30, 0  ;;  %v1633_v47 = vadd.f32 %v7078_v40, %v7077_v5 }
 0x4b2   :  { %v2180_v8 = vpack.c.bf16 %v2156_v6, %v2156_v6  ;;  %v2078_v52 = vmax.f32 %v2018_v32, %v2019_v44  ;;  %2804 = vmatpush.bf16.msra.mxu3 %v2753_v50  ;;  %v7079_v32 = vld [vmem:[#allocation52_spill] sm:$0xff]  ;;  %v6307_v6 = vpop.f32.mrf.mxu2  ;;  %v4680_v50 = vld [vmem:[#allocation2 + $0x144] sm:$0xf] }
 0x4b3   :  { %v1634_v15 = vadd.f32 %v7080_v38, %v7079_v32 }
 0x4b4   :  { %v2249_v16 = vunpack.c.l.b16 %v2180_v8  ;;  %v6309_v8 = vpop.f32.mrf.mxu3 }
 0x4b6   :  { %v6285_v19 = vpack.c.b16 %v2249_v16, %v2248_v28  ;;  %2805 = vmatpush.bf16.msra.mxu3 %v4319_v11  ;;  %v1637_v11 = vadd.f32 %v7084_v2, %v7083_v59 }
 0x4b7   :  { %v1789_v18 = vpop.f32.mrf.mxu0  ;;  %v1918_v17 = vpop.f32.mrf.mxu1 }
 0x4b8   :  { %v2020_v53 = vadd.f32 %v1789_v18, %v1629_v41  ;;  %v2021_v24 = vadd.f32 %v1918_v17, %v1630_v34  ;;  %4183 = vmatmul.msk.bf16.gmra.mxu2 %vm2333_vm3, %v6285_v19  ;;  %4191 = vmatmul.msk.bf16.gmra.mxu3 %vm2333_vm3, %v6285_v19 }
 0x4ba   :  { %v2079_v31 = vmax.f32 %v2020_v53, %v2021_v24  ;;  %v6316_v13 = vpop.f32.mrf.mxu2  ;;  %v7081_v53 = vld [vmem:[#allocation53_spill] sm:$0xff] }
 0x4bc   :  { %v6319_v51 = vpop.f32.mrf.mxu3 }
 0x4bf   :  { %v1792_v26 = vpop.f32.mrf.mxu0  ;;  %v1921_v14 = vpop.f32.mrf.mxu1 }
 0x4c0   :  { %v2022_v10 = vadd.f32 %v1792_v26, %v7075_v0  ;;  %v2023_v27 = vadd.f32 %v1921_v14, %v7076_v45  ;;  %v4307_v26 = vor.u32 %v4681_v4, %v4306_v3  ;;  %v4308_v0 = vld [vmem:[#allocation2 + $0x148] sm:$0xf0]  ;;  %v7086_v14 = vld [vmem:[#allocation70_spill] sm:$0xff] }
 0x4c1   :  { %4395 = vmatmul.msk.bf16.gmra.mxu0 %vm2333_vm3, %v6226_v57  ;;  %4403 = vmatmul.msk.bf16.gmra.mxu1 %vm2333_vm3, %v6226_v57 }
 0x4c2   :  { %v2080_v54 = vmax.f32 %v2022_v10, %v2023_v27  ;;  %v7085_v10 = vld [vmem:[#allocation55_spill] sm:$0xff]  ;;  %2757 = vmatpush.bf16.msra.mxu2 %v4307_v26  ;;  %v6337_v32 = vpop.f32.mrf.mxu2 }
 0x4c3   :  { %v1638_v45 = vadd.f32 %v7086_v14, %v7085_v10 }
 0x4c4   :  { %v2108_v33 = vmax.f32 %v2078_v52, %v2080_v54  ;;  %v6339_v38 = vpop.f32.mrf.mxu3 }
 0x4c6   :  { %v2133_v25 = vadd.f32 %v6031_v9, %v2108_v33  ;;  %v4311_v33 = vor.u32 %v4680_v50, %v4308_v0 }
 0x4c7   :  { %v1794_v44 = vpop.f32.mrf.mxu0  ;;  %v1923_v16 = vpop.f32.mrf.mxu1 }
 0x4c8   :  { %v2024_v28 = vadd.f32 %v1794_v44, %v1633_v47  ;;  %v2025_v29 = vadd.f32 %v1923_v16, %v1634_v15  ;;  %4248 = vmatmul.msk.bf16.vlgmr.msrb.gmra.mxu2 %vm2333_vm3, %v6044_v62  ;;  %4256 = vmatmul.msk.bf16.vlgmr.msrb.gmra.mxu3 %vm2333_vm3, %v6044_v62  ;;  %v2157_v41 = vmax.f32 %v2133_v25, 0.0  ;;  %v4298_v44 = vld [vmem:[#allocation2 + $0x130] sm:$0xf]  ;;  %v4678_v16 = vld [vmem:[#allocation2 + $0x134] sm:$0xf] }
 0x4c9   :  { %2806 = vmatpush.bf16.msra.mxu3 %v4311_v33 }
 0x4ca   :  { %v2081_v52 = vmax.f32 %v2024_v28, %v2025_v29  ;;  %v2181_v36 = vpack.c.bf16 %v2157_v41, %v2157_v41  ;;  %v4679_v28 = vld [vmem:[#allocation2 + $0x134] sm:$0xf0]  ;;  %v4300_v29 = vld [vmem:[#allocation2 + $0x138] sm:$0xf0] }
 0x4cb   :  { %v4299_v25 = vor.u32 %v4679_v28, %v4298_v44 }
 0x4cc   :  { %v2109_v49 = vmax.f32 %v2079_v31, %v2081_v52  ;;  %v2668_v31 = vunpack.c.l.b16 %v2181_v36  ;;  %v4303_v52 = vor.u32 %v4678_v16, %v4300_v29  ;;  %v4677_v16 = vld [vmem:[#allocation2 + $0x124] sm:$0xf0]  ;;  %v7091_v29 = vld [vmem:[#allocation61_spill] sm:$0xff] }
 0x4cd   :  { %2758 = vmatpush.bf16.msra.mxu2 %v4299_v25  ;;  %v4676_v25 = vld [vmem:[#allocation2 + $0x124] sm:$0xf] }
 0x4ce   :  { %v2134_v34 = vadd.f32 %v6031_v9, %v2109_v49  ;;  %2807 = vmatpush.bf16.msra.mxu3 %v4303_v52 }
 0x4cf   :  { %v1797_v18 = vpop.f32.mrf.mxu0  ;;  %v1926_v12 = vpop.f32.mrf.mxu1 }
 0x4d0   :  { %v2026_v17 = vadd.f32 %v1797_v18, %v7081_v53  ;;  %v2158_v24 = vmax.f32 %v2134_v34, 0.0  ;;  %v2027_v30 = vadd.f32 %v1926_v12, %v7082_v22  ;;  %v7087_v18 = vld [vmem:[#allocation56_spill] sm:$0xff]  ;;  %v6343_v53 = vpop.f32.mrf.mxu2 }
 0x4d1   :  { %4396 = vmatmul.msk.bf16.gmra.mxu0 %vm2333_vm3, %v6255_v60  ;;  %4404 = vmatmul.msk.bf16.gmra.mxu1 %vm2333_vm3, %v6255_v60 }
 0x4d2   :  { %v2182_v62 = vpack.c.bf16 %v2158_v24, %v2158_v24  ;;  %v2082_v42 = vmax.f32 %v2026_v17, %v2027_v30  ;;  %v6345_v17 = vpop.f32.mrf.mxu3  ;;  %v7088_v24 = vld [vmem:[#allocation57_spill] sm:$0xff]  ;;  %v7089_v30 = vld [vmem:[#allocation58_spill] sm:$0xff] }
 0x4d3   :  { %v1641_v22 = vadd.f32 %v5970_v39, %v7088_v24 }
 0x4d4   :  { %v2669_v48 = vunpack.c.l.b16 %v2182_v62 }
 0x4d6   :  { %v6331_v27 = vpack.c.b16 %v2669_v48, %v2668_v31 }
 0x4d7   :  { %v1799_v54 = vpop.f32.mrf.mxu0  ;;  %v1928_v40 = vpop.f32.mrf.mxu1 }
 0x4d8   :  { %v2028_v5 = vadd.f32 %v1799_v54, %v1637_v11  ;;  %v2029_v47 = vadd.f32 %v1928_v40, %v1638_v45  ;;  %4249 = vmatmul.msk.bf16.gmra.mxu2 %vm2333_vm3, %v6066_v55  ;;  %4257 = vmatmul.msk.bf16.gmra.mxu3 %vm2333_vm3, %v6066_v55 }
 0x4da   :  { %v2083_v15 = vmax.f32 %v2028_v5, %v2029_v47  ;;  %v6362_v2 = vpop.f32.mrf.mxu3 }
 0x4df   :  { %v1802_v41 = vpop.f32.mrf.mxu0  ;;  %v1931_v34 = vpop.f32.mrf.mxu1 }
 0x4e0   :  { %v2030_v49 = vadd.f32 %v1802_v41, %v5960_v61  ;;  %v2031_v55 = vadd.f32 %v1931_v34, %v7087_v18  ;;  %v7090_v61 = vld [vmem:[#allocation59_spill] sm:$0xff]  ;;  %v7093_v34 = vld [vmem:[#allocation62_spill] sm:$0xff] }
 0x4e1   :  { %4397 = vmatmul.msk.bf16.gmra.mxu0 %vm2333_vm3, %v6285_v19  ;;  %4405 = vmatmul.msk.bf16.gmra.mxu1 %vm2333_vm3, %v6285_v19  ;;  %v1642_v62 = vadd.f32 %v7090_v61, %v7089_v30  ;;  %v4292_v41 = vld [vmem:[#allocation2 + $0x128] sm:$0xf0]  ;;  %v4675_v61 = vld [vmem:[#allocation2 + $0x114] sm:$0xf0] }
 0x4e2   :  { %v2084_v12 = vmax.f32 %v2030_v49, %v2031_v55  ;;  %v7092_v49 = vld [vmem:[#allocation60_spill] sm:$0xff] }
 0x4e3   :  { %v1646_v18 = vadd.f32 %v7093_v34, %v7092_v49  ;;  %v4276_v49 = vld [vmem:[#allocation2 + $0x108] sm:$0xf0] }
 0x4e4   :  { %v2110_v36 = vmax.f32 %v2082_v42, %v2084_v12  ;;  %v6360_v42 = vpop.f32.mrf.mxu2 }
 0x4e6   :  { %v2135_v4 = vadd.f32 %v6031_v9, %v2110_v36  ;;  %v4295_v36 = vor.u32 %v4676_v25, %v4292_v41  ;;  %v4672_v41 = vld [vmem:[#allocation2 + $0x104] sm:$0xf] }
 0x4e7   :  { %v1804_v31 = vpop.f32.mrf.mxu0  ;;  %v1933_v3 = vpop.f32.mrf.mxu1 }
 0x4e8   :  { %v2032_v48 = vadd.f32 %v1804_v31, %v1641_v22  ;;  %v2033_v50 = vadd.f32 %v1933_v3, %v1642_v62  ;;  %4250 = vmatmul.msk.bf16.gmra.mxu2 %vm2333_vm3, %v6092_v35  ;;  %4258 = vmatmul.msk.bf16.gmra.mxu3 %vm2333_vm3, %v6092_v35  ;;  %v2159_v39 = vmax.f32 %v2135_v4, 0.0  ;;  %v4674_v62 = vld [vmem:[#allocation2 + $0x114] sm:$0xf] }
 0x4e9   :  { %2808 = vmatpush.bf16.msra.mxu3 %v4295_v36 }
 0x4ea   :  { %v2085_v59 = vmax.f32 %v2032_v48, %v2033_v50  ;;  %v2183_v45 = vpack.c.bf16 %v2159_v39, %v2159_v39  ;;  %v4284_v48 = vld [vmem:[#allocation2 + $0x118] sm:$0xf0] }
 0x4eb   :  { %v4287_v4 = vor.u32 %v4674_v62, %v4284_v48 }
 0x4ec   :  { %v2111_v11 = vmax.f32 %v2083_v15, %v2085_v59  ;;  %v6371_v47 = vpop.f32.mrf.mxu2  ;;  %v6373_v15 = vpop.f32.mrf.mxu3  ;;  %v2903_v44 = vunpack.c.l.b16 %v2183_v45 }
 0x4ed   :  { %2809 = vmatpush.bf16.msra.mxu3 %v4287_v4 }
 0x4ee   :  { %v2136_v26 = vadd.f32 %v6031_v9, %v2111_v11 }
 0x4ef   :  { %v1807_v0 = vpop.f32.mrf.mxu0  ;;  %v1936_v14 = vpop.f32.mrf.mxu1 }
 0x4f0   :  { %v2034_v10 = vadd.f32 %v1807_v0, %v5981_v7  ;;  %v2160_v54 = vmax.f32 %v2136_v26, 0.0  ;;  %v2035_v33 = vadd.f32 %v1936_v14, %v5983_v37  ;;  %v4290_v7 = vld [vmem:[#allocation2 + $0x120] sm:$0xf]  ;;  %v1645_v37 = vadd.f32 %v7091_v29, %v5986_v20  ;;  %v4282_v20 = vld [vmem:[#allocation2 + $0x110] sm:$0xf]  ;;  %v7094_v0 = vld [vmem:[#allocation63_spill] sm:$0xff] }
 0x4f1   :  { %4398 = vmatmul.msk.bf16.gmra.mxu0 %vm2333_vm3, %v6331_v27  ;;  %4406 = vmatmul.msk.bf16.gmra.mxu1 %vm2333_vm3, %v6331_v27  ;;  %v4291_v52 = vor.u32 %v4677_v16, %v4290_v7  ;;  %v4283_v31 = vor.u32 %v4675_v61, %v4282_v20 }
 0x4f2   :  { %v2184_v5 = vpack.c.bf16 %v2160_v54, %v2160_v54  ;;  %v2086_v40 = vmax.f32 %v2034_v10, %v2035_v33  ;;  %v7095_v54 = vld [vmem:[#allocation71_spill] sm:$0xff] }
 0x4f3   :  { %2759 = vmatpush.bf16.msra.mxu2 %v4291_v52  ;;  %v1649_v33 = vadd.f32 %v6277_v23, %v7095_v54  ;;  %v4274_v23 = vld [vmem:[#allocation2 + $0x100] sm:$0xf]  ;;  %v3135_v54 = vld [vmem:[#allocation2 + $0x250] sm:$0xff] }
 0x4f4   :  { %v2904_v28 = vunpack.c.l.b16 %v2184_v5  ;;  %v6385_v50 = vpop.f32.mrf.mxu2  ;;  %v6387_v59 = vpop.f32.mrf.mxu3 }
 0x4f6   :  { %v6379_v12 = vpack.c.b16 %v2904_v28, %v2903_v44  ;;  %v7096_v28 = vld [vmem:[#allocation64_spill] sm:$0xff] }
 0x4f7   :  { %v1809_v55 = vpop.f32.mrf.mxu0  ;;  %v1938_v22 = vpop.f32.mrf.mxu1  ;;  %2760 = vmatpush.bf16.msra.mxu2 %v4283_v31 }
 0x4f8   :  { %v2036_v24 = vadd.f32 %v1809_v55, %v1645_v37  ;;  %v2037_v30 = vadd.f32 %v1938_v22, %v1646_v18  ;;  %4251 = vmatmul.msk.bf16.gmra.mxu2 %vm2333_vm3, %v6118_v43  ;;  %4259 = vmatmul.msk.bf16.gmra.mxu3 %vm2333_vm3, %v6118_v43  ;;  %v4279_v18 = vor.u32 %v4672_v41, %v4276_v49  ;;  %v4711_v41 = vld [vmem:[#allocation2 + $0x244] sm:$0xf0]  ;;  %v4710_v49 = vld [vmem:[#allocation2 + $0x244] sm:$0xf] }
 0x4fa   :  { %v2087_v3 = vmax.f32 %v2036_v24, %v2037_v30  ;;  %2810 = vmatpush.bf16.msra.mxu3 %v4279_v18  ;;  %v4460_v18 = vld [vmem:[#allocation2 + $0x248] sm:$0xf0] }
 0x4fc   :  { %v6397_v5 = vpop.f32.mrf.mxu2  ;;  %v6399_v44 = vpop.f32.mrf.mxu3 }
 0x4ff   :  { %v1812_v39 = vpop.f32.mrf.mxu0  ;;  %v1941_v26 = vpop.f32.mrf.mxu1 }
 0x500   :  { %v2038_v11 = vadd.f32 %v1812_v39, %v6002_v21  ;;  %v2039_v10 = vadd.f32 %v1941_v26, %v7094_v0  ;;  %v1650_v21 = vadd.f32 %v6281_v56, %v7096_v28  ;;  %v4268_v0 = vld [vmem:[#allocation2 + $0xf8] sm:$0xf0] }
 0x501   :  { %4399 = vmatmul.msk.bf16.gmra.mxu0 %vm2333_vm3, %v6379_v12  ;;  %4407 = vmatmul.msk.bf16.gmra.mxu1 %vm2333_vm3, %v6379_v12 }
 0x502   :  { %v2088_v14 = vmax.f32 %v2038_v11, %v2039_v10  ;;  %v4670_v11 = vld [vmem:[#allocation2 + $0xf4] sm:$0xf] }
 0x503   :  { %v4271_v10 = vor.u32 %v4670_v11, %v4268_v0 }
 0x504   :  { %v2112_v45 = vmax.f32 %v2086_v40, %v2088_v14  ;;  %v4673_v40 = vld [vmem:[#allocation2 + $0x104] sm:$0xf0]  ;;  %v6409_v24 = vpop.f32.mrf.mxu2  ;;  %v6411_v22 = vpop.f32.mrf.mxu3 }
 0x505   :  { %v4275_v52 = vor.u32 %v4673_v40, %v4274_v23  ;;  %7097 = vst [vmem:[#allocation65_spill] sm:$0xff] %v6409_v24  ;;  %2811 = vmatpush.bf16.msra.mxu3 %v4271_v10 }
 0x506   :  { %v2137_v29 = vadd.f32 %v6031_v9, %v2112_v45  ;;  %7098 = vst [vmem:[#allocation5_spill] sm:$0xff] %v6411_v22 }
 0x507   :  { %v1814_v7 = vpop.f32.mrf.mxu0  ;;  %v1943_v25 = vpop.f32.mrf.mxu1  ;;  %2761 = vmatpush.bf16.msra.mxu2 %v4275_v52  ;;  %v4458_v52 = vld [vmem:[#allocation2 + $0x240] sm:$0xf] }
 0x508   :  { %v2040_v16 = vadd.f32 %v1814_v7, %v1649_v33  ;;  %v2041_v37 = vadd.f32 %v1943_v25, %v1650_v21  ;;  %4252 = vmatmul.msk.bf16.gmra.mxu2 %vm2333_vm3, %v6144_v58  ;;  %4260 = vmatmul.msk.bf16.gmra.mxu3 %vm2333_vm3, %v6144_v58  ;;  %v2161_v56 = vmax.f32 %v2137_v29, 0.0  ;;  %v3184_v21 = vunpack.c.l.b16 %v3135_v54 }
 0x509   :  { %v3185_v7 = vunpack.c.h.b16 %v3135_v54 }
 0x50a   :  { %v2089_v34 = vmax.f32 %v2040_v16, %v2041_v37  ;;  %v2185_v30 = vpack.c.bf16 %v2161_v56, %v2161_v56  ;;  %v3200_v16 = vpack.c.b16 %v3184_v21, %v3184_v21  ;;  %v4463_v56 = vor.u32 %v4710_v49, %v4460_v18  ;;  %v4707_v21 = vld [vmem:[#allocation2 + $0x224] sm:$0xf0]  ;;  %v4704_v18 = vld [vmem:[#allocation2 + $0x214] sm:$0xf] }
 0x50b   :  { %v3201_v25 = vpack.c.b16 %v3185_v7, %v3185_v7  ;;  %v4706_v7 = vld [vmem:[#allocation2 + $0x224] sm:$0xf] }
 0x50c   :  { %v2113_v55 = vmax.f32 %v2087_v3, %v2089_v34  ;;  %v3138_v62 = vunpack.c.l.b16 %v2185_v30  ;;  %v6415_v4 = vpop.f32.mrf.mxu2  ;;  %v6417_v39 = vpop.f32.mrf.mxu3  ;;  %v4671_v3 = vld [vmem:[#allocation2 + $0xf4] sm:$0xf0]  ;;  %v3220_v29 = vsel %vm2358_vm2, %v3200_v16, 0  ;;  %v4459_v34 = vor.u32 %v4711_v41, %v4458_v52 }
 0x50d   :  { %v3223_v37 = vsel %vm2358_vm2, %v3201_v25, 0  ;;  %v4444_v25 = vld [vmem:[#allocation2 + $0x228] sm:$0xf0] }
 0x50e   :  { %v2138_v36 = vadd.f32 %v6031_v9, %v2113_v55  ;;  %v4266_v9 = vld [vmem:[#allocation2 + $0xf0] sm:$0xf]  ;;  %3274 = vmatpush.bf16.msrb.mxu3 %v3223_v37 }
 0x50f   :  { %v4267_v26 = vor.u32 %v4671_v3, %v4266_v9  ;;  %v4452_v3 = vld [vmem:[#allocation2 + $0x238] sm:$0xf0] }
 0x510   :  { %v2162_v20 = vmax.f32 %v2138_v36, 0.0 }
 0x511   :  { %2762 = vmatpush.bf16.msra.mxu2 %v4267_v26 }
 0x512   :  { %v2186_v61 = vpack.c.bf16 %v2162_v20, %v2162_v20  ;;  %3275 = vmatpush.bf16.msrb.mxu3 %v4463_v56 }
 0x514   :  { %v3139_v31 = vunpack.c.l.b16 %v2186_v61  ;;  %v6423_v14 = vpop.f32.mrf.mxu2  ;;  %v6425_v45 = vpop.f32.mrf.mxu3  ;;  %v4450_v61 = vld [vmem:[#allocation2 + $0x230] sm:$0xf] }
 0x515   :  { %3225 = vmatpush.bf16.msrb.mxu2 %v3220_v29  ;;  %v4447_v29 = vor.u32 %v4706_v7, %v4444_v25  ;;  %v4702_v7 = vld [vmem:[#allocation2 + $0x204] sm:$0xf]  ;;  %v4428_v25 = vld [vmem:[#allocation2 + $0x208] sm:$0xf0] }
 0x516   :  { %v6413_v48 = vpack.c.b16 %v3139_v31, %v3138_v62  ;;  %v4709_v62 = vld [vmem:[#allocation2 + $0x234] sm:$0xf0]  ;;  %v4708_v31 = vld [vmem:[#allocation2 + $0x234] sm:$0xf] }
 0x517   :  { %v4451_v9 = vor.u32 %v4709_v62, %v4450_v61  ;;  %v4455_v11 = vor.u32 %v4708_v31, %v4452_v3  ;;  %v4436_v61 = vld [vmem:[#allocation2 + $0x218] sm:$0xf0] }
 0x518   :  { %7099 = vst [vmem:[#allocation6_spill] sm:$0xff] %v6413_v48  ;;  %4253 = vmatmul.msk.bf16.gmra.mxu2 %vm2333_vm3, %v6184_v46  ;;  %4261 = vmatmul.msk.bf16.gmra.mxu3 %vm2333_vm3, %v6184_v46  ;;  %v4439_v62 = vor.u32 %v4704_v18, %v4436_v61  ;;  %v4418_v61 = vld [vmem:[#allocation2 + $0x1f0] sm:$0xf] }
 0x519   :  { %3226 = vmatpush.bf16.msrb.mxu2 %v4459_v34  ;;  %3276 = vmatpush.bf16.msrb.mxu3 %v4455_v11  ;;  %v4705_v34 = vld [vmem:[#allocation2 + $0x214] sm:$0xf0] }
 0x51c   :  { %v6431_v33 = vpop.f32.mrf.mxu2  ;;  %v6433_v28 = vpop.f32.mrf.mxu3 }
 0x51d   :  { %3227 = vmatpush.bf16.msrb.mxu2 %v4451_v9  ;;  %3277 = vmatpush.bf16.msrb.mxu3 %v4447_v29  ;;  %v4431_v29 = vor.u32 %v4702_v7, %v4428_v25  ;;  %v4420_v7 = vld [vmem:[#allocation2 + $0x1f8] sm:$0xf0] }
 0x521   :  { %3278 = vmatpush.bf16.msrb.mxu3 %v4439_v62  ;;  %v4701_v62 = vld [vmem:[#allocation2 + $0x1f4] sm:$0xf0] }
 0x524   :  { %v6437_v23 = vpop.f32.mrf.mxu2  ;;  %v6439_v40 = vpop.f32.mrf.mxu3 }
 0x525   :  { %7100 = vst [vmem:[#allocation7_spill] sm:$0xff] %v6437_v23  ;;  %3279 = vmatpush.bf16.msrb.mxu3 %v4431_v29 }
 0x526   :  { %7101 = vst [vmem:[#allocation8_spill] sm:$0xff] %v6439_v40 }
 0x528   :  { %4254 = vmatmul.msk.bf16.gmra.mxu2 %vm2333_vm3, %v6226_v57  ;;  %4262 = vmatmul.msk.bf16.gmra.mxu3 %vm2333_vm3, %v6226_v57 }
 0x538   :  { %4255 = vmatmul.msk.bf16.gmra.mxu2 %vm2333_vm3, %v6255_v60  ;;  %4263 = vmatmul.msk.bf16.gmra.mxu3 %vm2333_vm3, %v6255_v60 }
 0x53b   :  { %v6445_v55 = vpop.f32.mrf.mxu2  ;;  %v6447_v36 = vpop.f32.mrf.mxu3 }
 0x53c   :  { %7102 = vst [vmem:[#allocation13_spill] sm:$0xff] %v6445_v55 }
 0x53d   :  { %7103 = vst [vmem:[#allocation9_spill] sm:$0xff] %v6447_v36 }
 0x543   :  { %v6449_v30 = vpop.f32.mrf.mxu2  ;;  %v6451_v20 = vpop.f32.mrf.mxu3 }
 0x544   :  { %7104 = vst [vmem:[#allocation10_spill] sm:$0xff] %v6449_v30 }
 0x545   :  { %7105 = vst [vmem:[#allocation11_spill] sm:$0xff] %v6451_v20  ;;  %v4410_v20 = vld [vmem:[#allocation2 + $0x1e0] sm:$0xf] }
 0x548   :  { %4320 = vmatmul.msk.bf16.vlgmr.msra.gmra.mxu2 %vm2333_vm3, %v6092_v35  ;;  %4328 = vmatmul.msk.bf16.vlgmr.msra.gmra.mxu3 %vm2333_vm3, %v6092_v35  ;;  %v4442_v35 = vld [vmem:[#allocation2 + $0x220] sm:$0xf] }
 0x549   :  { %v4443_v16 = vor.u32 %v4707_v21, %v4442_v35  ;;  %v4426_v35 = vld [vmem:[#allocation2 + $0x200] sm:$0xf]  ;;  %v4703_v21 = vld [vmem:[#allocation2 + $0x204] sm:$0xf0] }
 0x54b   :  { %v6457_v26 = vpop.f32.mrf.mxu2  ;;  %v6459_v0 = vpop.f32.mrf.mxu3  ;;  %3228 = vmatpush.bf16.msrb.mxu2 %v4443_v16  ;;  %v4427_v16 = vor.u32 %v4703_v21, %v4426_v35  ;;  %v4700_v35 = vld [vmem:[#allocation2 + $0x1f4] sm:$0xf]  ;;  %v4419_v21 = vor.u32 %v4701_v62, %v4418_v61  ;;  %v4699_v61 = vld [vmem:[#allocation2 + $0x1e4] sm:$0xf0]  ;;  %v4698_v62 = vld [vmem:[#allocation2 + $0x1e4] sm:$0xf] }
 0x54c   :  { %v4423_v25 = vor.u32 %v4700_v35, %v4420_v7  ;;  %v4411_v35 = vor.u32 %v4699_v61, %v4410_v20  ;;  %v4412_v7 = vld [vmem:[#allocation2 + $0x1e8] sm:$0xf0]  ;;  %v2562_v48 = vadd.f32 %v6457_v26, %v6293_v1 }
 0x54d   :  { %v4415_v30 = vor.u32 %v4698_v62, %v4412_v7 }
 0x54e   :  { %3280 = vmatpush.bf16.msrb.mxu3 %v4423_v25 }
 0x552   :  { %3281 = vmatpush.bf16.msrb.mxu3 %v4415_v30 }
 0x553   :  { %v6461_v10 = vpop.f32.mrf.mxu2  ;;  %v6463_v54 = vpop.f32.mrf.mxu3 }
 0x558   :  { %4321 = vmatmul.msk.bf16.gmra.mxu2 %vm2333_vm3, %v6118_v43  ;;  %4329 = vmatmul.msk.bf16.gmra.mxu3 %vm2333_vm3, %v6118_v43  ;;  %v4434_v43 = vld [vmem:[#allocation2 + $0x210] sm:$0xf] }
 0x559   :  { %v4435_v56 = vor.u32 %v4705_v34, %v4434_v43 }
 0x55b   :  { %v6469_v37 = vpop.f32.mrf.mxu2  ;;  %v6471_v52 = vpop.f32.mrf.mxu3  ;;  %3229 = vmatpush.bf16.msrb.mxu2 %v4435_v56 }
 0x55f   :  { %3230 = vmatpush.bf16.msrb.mxu2 %v4427_v16 }
 0x563   :  { %v6473_v41 = vpop.f32.mrf.mxu2  ;;  %v6475_v49 = vpop.f32.mrf.mxu3  ;;  %3231 = vmatpush.bf16.msrb.mxu2 %v4419_v21 }
 0x564   :  { %v2618_v26 = vadd.f32 %v6475_v49, %v6339_v38 }
 0x567   :  { %3232 = vmatpush.bf16.msrb.mxu2 %v4411_v35 }
 0x568   :  { %4322 = vmatmul.msk.bf16.gmra.mxu2 %vm2333_vm3, %v6144_v58  ;;  %4330 = vmatmul.msk.bf16.gmra.mxu3 %vm2333_vm3, %v6144_v58 }
 0x56b   :  { %v6481_v31 = vpop.f32.mrf.mxu2  ;;  %v6483_v9 = vpop.f32.mrf.mxu3 }
 0x573   :  { %v6485_v3 = vpop.f32.mrf.mxu2  ;;  %v6487_v11 = vpop.f32.mrf.mxu3 }
 0x574   :  { %v2623_v49 = vadd.f32 %v6487_v11, %v6362_v2 }
 0x578   :  { %4323 = vmatmul.msk.bf16.gmra.mxu2 %vm2333_vm3, %v6184_v46  ;;  %4331 = vmatmul.msk.bf16.gmra.mxu3 %vm2333_vm3, %v6184_v46 }
 0x57b   :  { %v6493_v43 = vpop.f32.mrf.mxu2  ;;  %v6495_v34 = vpop.f32.mrf.mxu3 }
 0x583   :  { %v6497_v18 = vpop.f32.mrf.mxu2  ;;  %v6499_v56 = vpop.f32.mrf.mxu3 }
 0x584   :  { %v2579_v11 = vadd.f32 %v6497_v18, %v6385_v50 }
 0x588   :  { %4324 = vmatmul.msk.bf16.gmra.mxu2 %vm2333_vm3, %v6226_v57  ;;  %4332 = vmatmul.msk.bf16.gmra.mxu3 %vm2333_vm3, %v6226_v57 }
 0x58b   :  { %v6505_v22 = vpop.f32.mrf.mxu2  ;;  %v6507_v16 = vpop.f32.mrf.mxu3 }
 0x58c   :  { %v2631_v50 = vadd.f32 %v6507_v16, %v6399_v44 }
 0x593   :  { %v6509_v29 = vpop.f32.mrf.mxu2  ;;  %v6511_v24 = vpop.f32.mrf.mxu3 }
 0x594   :  { %7106 = vst [vmem:[#allocation12_spill] sm:$0xff] %v6509_v29 }
 0x595   :  { %7107 = vst [vmem:[#allocation18_spill] sm:$0xff] %v6511_v24 }
 0x598   :  { %4325 = vmatmul.msk.bf16.gmra.mxu2 %vm2333_vm3, %v6255_v60  ;;  %4333 = vmatmul.msk.bf16.gmra.mxu3 %vm2333_vm3, %v6255_v60 }
 0x59b   :  { %v6517_v36 = vpop.f32.mrf.mxu2  ;;  %v6519_v21 = vpop.f32.mrf.mxu3 }
 0x5a3   :  { %v6521_v25 = vpop.f32.mrf.mxu2  ;;  %v6523_v24 = vpop.f32.mrf.mxu3 }
 0x5a8   :  { %4326 = vmatmul.msk.bf16.gmra.mxu2 %vm2333_vm3, %v6285_v19  ;;  %4334 = vmatmul.msk.bf16.gmra.mxu3 %vm2333_vm3, %v6285_v19 }
 0x5ab   :  { %v6529_v29 = vpop.f32.mrf.mxu2  ;;  %v6531_v20 = vpop.f32.mrf.mxu3 }
 0x5ac   :  { %7108 = vst [vmem:[#allocation14_spill] sm:$0xff] %v6531_v20 }
 0x5b3   :  { %v6533_v61 = vpop.f32.mrf.mxu2  ;;  %v6535_v62 = vpop.f32.mrf.mxu3 }
 0x5b4   :  { %7109 = vst [vmem:[#allocation15_spill] sm:$0xff] %v6533_v61 }
 0x5b5   :  { %7110 = vst [vmem:[#allocation16_spill] sm:$0xff] %v6535_v62  ;;  %v2611_v62 = vadd.f32 %v6459_v0, %v6295_v63  ;;  %v2567_v63 = vadd.f32 %v6469_v37, %v6316_v13 }
 0x5b8   :  { %4327 = vmatmul.msk.bf16.gmra.mxu2 %vm2333_vm3, %v6331_v27  ;;  %4335 = vmatmul.msk.bf16.gmra.mxu3 %vm2333_vm3, %v6331_v27 }
 0x5bb   :  { %v6541_v30 = vpop.f32.mrf.mxu2  ;;  %v6543_v35 = vpop.f32.mrf.mxu3 }
 0x5bc   :  { %7111 = vst [vmem:[#allocation17_spill] sm:$0xff] %v6541_v30 }
 0x5bd   :  { %7112 = vst [vmem:[#allocation23_spill] sm:$0xff] %v6543_v35 }
 0x5c3   :  { %v6545_v7 = vpop.f32.mrf.mxu2  ;;  %v6547_v55 = vpop.f32.mrf.mxu3 }
 0x5c4   :  { %7113 = vst [vmem:[#allocation19_spill] sm:$0xff] %v6545_v7  ;;  %v2613_v7 = vadd.f32 %v6463_v54, %v6309_v8 }
 0x5c5   :  { %7114 = vst [vmem:[#allocation20_spill] sm:$0xff] %v6547_v55  ;;  %v2564_v55 = vadd.f32 %v6461_v10, %v6307_v6  ;;  %v2616_v6 = vadd.f32 %v6471_v52, %v6319_v51  ;;  %v2572_v51 = vadd.f32 %v6481_v31, %v6343_v53 }
 0x5c8   :  { %4464 = vmatmul.msk.bf16.vlgmr.msrb.gmra.mxu2 %vm2333_vm3, %v6144_v58  ;;  %4472 = vmatmul.msk.bf16.vlgmr.msrb.gmra.mxu3 %vm2333_vm3, %v6144_v58 }
 0x5cb   :  { %v2764_v40 = vpop.f32.mrf.mxu2  ;;  %v2813_v30 = vpop.f32.mrf.mxu3 }
 0x5cc   :  { %v6557_v61 = vadd.f32 %v2764_v40, %v2562_v48  ;;  %v6559_v35 = vadd.f32 %v2813_v30, %v2611_v62 }
 0x5d3   :  { %v2766_v23 = vpop.f32.mrf.mxu2  ;;  %v2815_v58 = vpop.f32.mrf.mxu3 }
 0x5d4   :  { %v6565_v20 = vadd.f32 %v2766_v23, %v2564_v55  ;;  %v6567_v1 = vadd.f32 %v2815_v58, %v2613_v7  ;;  %v2569_v55 = vadd.f32 %v6473_v41, %v6337_v32  ;;  %v2621_v32 = vadd.f32 %v6483_v9, %v6345_v17 }
 0x5d5   :  { %v2574_v41 = vadd.f32 %v6485_v3, %v6360_v42  ;;  %v2577_v17 = vadd.f32 %v6493_v43, %v6371_v47  ;;  %v2626_v42 = vadd.f32 %v6495_v34, %v6373_v15  ;;  %v2628_v7 = vadd.f32 %v6499_v56, %v6387_v59 }
 0x5d6   :  { %v2582_v15 = vadd.f32 %v6505_v22, %v6397_v5  ;;  %v2636_v5 = vadd.f32 %v6519_v21, %v6417_v39  ;;  %v2999_v39 = vpop.f32.mrf.mxu0  ;;  %v7115_v21 = vld [vmem:[#allocation14_spill] sm:$0xff] }
 0x5d8   :  { %4465 = vmatmul.msk.bf16.gmra.mxu2 %vm2333_vm3, %v6184_v46  ;;  %4473 = vmatmul.msk.bf16.gmra.mxu3 %vm2333_vm3, %v6184_v46 }
 0x5db   :  { %v2769_v48 = vpop.f32.mrf.mxu2  ;;  %v2818_v8 = vpop.f32.mrf.mxu3 }
 0x5dc   :  { %v6577_v40 = vadd.f32 %v2769_v48, %v2567_v63  ;;  %v6579_v23 = vadd.f32 %v2818_v8, %v2616_v6  ;;  %v2589_v8 = vadd.f32 %v6521_v25, %v6423_v14  ;;  %v2592_v14 = vadd.f32 %v6529_v29, %v6431_v33 }
 0x5e3   :  { %v2771_v0 = vpop.f32.mrf.mxu2  ;;  %v2820_v46 = vpop.f32.mrf.mxu3 }
 0x5e4   :  { %v6585_v10 = vadd.f32 %v2771_v0, %v2569_v55  ;;  %v6587_v13 = vadd.f32 %v2820_v46, %v2618_v26  ;;  %v2638_v55 = vadd.f32 %v6523_v24, %v6425_v45  ;;  %v2641_v24 = vadd.f32 %v7115_v21, %v6433_v28  ;;  %v3001_v28 = vpop.f32.mrf.mxu0  ;;  %v7127_v21 = vld [vmem:[#allocation11_spill] sm:$0xff] }
 0x5e8   :  { %4466 = vmatmul.msk.bf16.gmra.mxu2 %vm2333_vm3, %v6226_v57  ;;  %4474 = vmatmul.msk.bf16.gmra.mxu3 %vm2333_vm3, %v6226_v57 }
 0x5eb   :  { %v2774_v54 = vpop.f32.mrf.mxu2  ;;  %v2823_v38 = vpop.f32.mrf.mxu3 }
 0x5ec   :  { %v6597_v37 = vadd.f32 %v2774_v54, %v2572_v51  ;;  %v6599_v52 = vadd.f32 %v2823_v38, %v2621_v32  ;;  %v4726_v32 = vld [vmem:[%s6832_s4 + $0x70] sm:$0xff]  ;;  %v7117_v54 = vld [vmem:[#allocation15_spill] sm:$0xff] }
 0x5ed   :  { %3587 = vmatpush.bf16.msra.mxu2 %v4726_v32 }
 0x5f3   :  { %v2776_v62 = vpop.f32.mrf.mxu2  ;;  %v2825_v57 = vpop.f32.mrf.mxu3 }
 0x5f4   :  { %v6605_v30 = vadd.f32 %v2776_v62, %v2574_v41  ;;  %v6607_v53 = vadd.f32 %v2825_v57, %v2623_v49  ;;  %v7118_v41 = vld [vmem:[#allocation8_spill] sm:$0xff] }
 0x5f5   :  { %v7119_v49 = vld [vmem:[#allocation16_spill] sm:$0xff] }
 0x5f6   :  { %v2643_v33 = vadd.f32 %v7119_v49, %v7118_v41 }
 0x5f8   :  { %4467 = vmatmul.msk.bf16.gmra.mxu2 %vm2333_vm3, %v6255_v60  ;;  %4475 = vmatmul.msk.bf16.gmra.mxu3 %vm2333_vm3, %v6255_v60 }
 0x5fb   :  { %v2779_v31 = vpop.f32.mrf.mxu2  ;;  %v2828_v2 = vpop.f32.mrf.mxu3 }
 0x5fc   :  { %v6617_v9 = vadd.f32 %v2779_v31, %v2577_v17  ;;  %v6619_v3 = vadd.f32 %v2828_v2, %v2626_v42  ;;  %v4716_v31 = vld [vmem:[%s6832_s4 + $0x20] sm:$0xff]  ;;  %v4731_v2 = vld [vmem:[%s6832_s4 + $0x98] sm:$0xff] }
 0x5fd   :  { %3456 = vmatpush.bf16.msra.mxu0 %v4716_v31  ;;  %3652 = vmatpush.bf16.msra.mxu3 %v4731_v2 }
 0x603   :  { %v2781_v58 = vpop.f32.mrf.mxu2  ;;  %v2830_v60 = vpop.f32.mrf.mxu3 }
 0x604   :  { %v6625_v63 = vadd.f32 %v2781_v58, %v2579_v11  ;;  %v6627_v47 = vadd.f32 %v2830_v60, %v2628_v7  ;;  %v4721_v11 = vld [vmem:[%s6832_s4 + $0x48] sm:$0xff]  ;;  %v7120_v7 = vld [vmem:[#allocation6_spill] sm:$0xff]  ;;  %v7121_v58 = vld [vmem:[#allocation13_spill] sm:$0xff] }
 0x605   :  { %v7122_v60 = vld [vmem:[#allocation17_spill] sm:$0xff]  ;;  %3522 = vmatpush.bf16.msra.mxu1 %v4721_v11 }
 0x608   :  { %4468 = vmatmul.msk.bf16.gmra.mxu2 %vm2333_vm3, %v6285_v19  ;;  %4476 = vmatmul.msk.bf16.gmra.mxu3 %vm2333_vm3, %v6285_v19  ;;  %v2587_v19 = vadd.f32 %v6517_v36, %v6415_v4  ;;  %v3048_v36 = vpop.f32.mrf.mxu1 }
 0x60b   :  { %v2784_v43 = vpop.f32.mrf.mxu2  ;;  %v2833_v59 = vpop.f32.mrf.mxu3 }
 0x60c   :  { %v6637_v34 = vadd.f32 %v2784_v43, %v2582_v15  ;;  %v6639_v18 = vadd.f32 %v2833_v59, %v2631_v50  ;;  %v2597_v15 = vadd.f32 %v7122_v60, %v7121_v58  ;;  %v7123_v50 = vld [vmem:[#allocation9_spill] sm:$0xff]  ;;  %v7124_v43 = vld [vmem:[#allocation23_spill] sm:$0xff] }
 0x60d   :  { %v2646_v59 = vadd.f32 %v7124_v43, %v7123_v50  ;;  %v4713_v58 = vld [vmem:[%s6832_s4 + $0x8] sm:$0xff] }
 0x610   :  { %v3050_v57 = vpop.f32.mrf.mxu1 }
 0x613   :  { %v6641_v56 = vpop.f32.mrf.mxu2  ;;  %v6643_v6 = vpop.f32.mrf.mxu3 }
 0x618   :  { %4469 = vmatmul.msk.bf16.gmra.mxu2 %vm2333_vm3, %v6331_v27  ;;  %4477 = vmatmul.msk.bf16.gmra.mxu3 %vm2333_vm3, %v6331_v27 }
 0x61b   :  { %v2789_v44 = vpop.f32.mrf.mxu2  ;;  %v2838_v22 = vpop.f32.mrf.mxu3 }
 0x61c   :  { %v6653_v16 = vadd.f32 %v2789_v44, %v2587_v19  ;;  %v6655_v48 = vadd.f32 %v2838_v22, %v2636_v5 }
 0x623   :  { %v2791_v26 = vpop.f32.mrf.mxu2  ;;  %v2840_v27 = vpop.f32.mrf.mxu3 }
 0x624   :  { %v6661_v0 = vadd.f32 %v2791_v26, %v2589_v8  ;;  %v6663_v4 = vadd.f32 %v2840_v27, %v2638_v55  ;;  %v3004_v8 = vpop.f32.mrf.mxu0  ;;  %v3053_v55 = vpop.f32.mrf.mxu1  ;;  %v7125_v26 = vld [vmem:[#allocation10_spill] sm:$0xff]  ;;  %v7126_v27 = vld [vmem:[#allocation19_spill] sm:$0xff] }
 0x628   :  { %4470 = vmatmul.msk.bf16.gmra.mxu2 %vm2333_vm3, %v6379_v12  ;;  %4478 = vmatmul.msk.bf16.gmra.mxu3 %vm2333_vm3, %v6379_v12  ;;  %v7116_v12 = vld [vmem:[#allocation7_spill] sm:$0xff] }
 0x629   :  { %v2594_v38 = vadd.f32 %v7117_v54, %v7116_v12 }
 0x62b   :  { %v2794_v45 = vpop.f32.mrf.mxu2  ;;  %v2843_v25 = vpop.f32.mrf.mxu3 }
 0x62c   :  { %v6673_v46 = vadd.f32 %v2794_v45, %v2592_v14  ;;  %v6675_v51 = vadd.f32 %v2843_v25, %v2641_v24  ;;  %v2599_v14 = vadd.f32 %v7126_v27, %v7125_v26  ;;  %v7128_v24 = vld [vmem:[#allocation20_spill] sm:$0xff]  ;;  %v3006_v41 = vpop.f32.mrf.mxu0  ;;  %v3055_v49 = vpop.f32.mrf.mxu1 }
 0x62d   :  { %v2648_v45 = vadd.f32 %v7128_v24, %v7127_v21 }
 0x633   :  { %v2796_v29 = vpop.f32.mrf.mxu2  ;;  %v2845_v62 = vpop.f32.mrf.mxu3 }
 0x634   :  { %v6684_v17 = vadd.f32 %v2796_v29, %v2594_v38  ;;  %v6686_v42 = vadd.f32 %v2845_v62, %v2643_v33  ;;  %v4715_v38 = vld [vmem:[%s6832_s4 + $0x18] sm:$0xff]  ;;  %v4714_v33 = vld [vmem:[%s6832_s4 + $0x10] sm:$0xff]  ;;  %v3088_v29 = vadd.f32 %v2999_v39, %v6557_v61  ;;  %v3089_v62 = vadd.f32 %v3048_v36, %v6559_v35  ;;  %v3009_v50 = vpop.f32.mrf.mxu0  ;;  %v3058_v43 = vpop.f32.mrf.mxu1  ;;  %v4725_v39 = vld [vmem:[%s6832_s4 + $0x68] sm:$0xff] }
 0x635   :  { %3457 = vmatpush.bf16.msra.mxu0 %v4715_v38  ;;  %v3090_v61 = vadd.f32 %v3001_v28, %v6565_v20  ;;  %v3091_v35 = vadd.f32 %v3050_v57, %v6567_v1  ;;  %v4730_v36 = vld [vmem:[%s6832_s4 + $0x90] sm:$0xff]  ;;  %3588 = vmatpush.bf16.msra.mxu2 %v4725_v39  ;;  %v3092_v1 = vadd.f32 %v3004_v8, %v6577_v40 }
 0x636   :  { %3653 = vmatpush.bf16.msra.mxu3 %v4730_v36  ;;  %v3093_v28 = vadd.f32 %v3053_v55, %v6579_v23  ;;  %v3094_v40 = vadd.f32 %v3006_v41, %v6585_v10  ;;  %v3095_v23 = vadd.f32 %v3055_v49, %v6587_v13  ;;  %v3096_v10 = vadd.f32 %v3009_v50, %v6597_v37 }
 0x637   :  { %v3097_v13 = vadd.f32 %v3058_v43, %v6599_v52  ;;  %v4717_v52 = vld [vmem:[%s6832_s4 + $0x28] sm:$0xff] }
 0x638   :  { %4471 = vmatmul.msk.bf16.gmra.mxu2 %vm2333_vm3, %v7120_v7  ;;  %4479 = vmatmul.msk.bf16.gmra.mxu3 %vm2333_vm3, %v7120_v7 }
 0x639   :  { %3458 = vmatpush.bf16.msra.mxu0 %v4714_v33  ;;  %v6747_v33 = vld [vmem:[%s6829_s1] sm:$0x7] }
 0x63b   :  { %v2799_v19 = vpop.f32.mrf.mxu2  ;;  %v2848_v5 = vpop.f32.mrf.mxu3 }
 0x63c   :  { %v6705_v44 = vadd.f32 %v2799_v19, %v2597_v15  ;;  %v6707_v22 = vadd.f32 %v2848_v5, %v2646_v59  ;;  %v4712_v15 = vld [vmem:[%s6832_s4] sm:$0xff]  ;;  %v3011_v21 = vpop.f32.mrf.mxu0  ;;  %v3060_v24 = vpop.f32.mrf.mxu1 }
 0x63d   :  { %3459 = vmatpush.bf16.msra.mxu0 %v4713_v58  ;;  %v4720_v59 = vld [vmem:[%s6832_s4 + $0x40] sm:$0xff]  ;;  %v3098_v43 = vadd.f32 %v3011_v21, %v6605_v30 }
 0x63e   :  { %3523 = vmatpush.bf16.msra.mxu1 %v4720_v59 }
 0x641   :  { %3460 = vmatpush.bf16.msra.mxu0 %v4712_v15 }
 0x643   :  { %v2801_v25 = vpop.f32.mrf.mxu2  ;;  %v2850_v32 = vpop.f32.mrf.mxu3 }
 0x644   :  { %v6713_v12 = vadd.f32 %v2801_v25, %v2599_v14  ;;  %v6715_v54 = vadd.f32 %v2850_v32, %v2648_v45 }
 0x64b   :  { %v3234_v31 = vpop.f32.mrf.mxu2  ;;  %v3283_v2 = vpop.f32.mrf.mxu3 }
 0x64c   :  { %v3323_v11 = vadd.f32 %v3234_v31, %v3088_v29  ;;  %v3324_v7 = vadd.f32 %v3283_v2, %v3089_v62  ;;  %v6750_v29 = vperm.slane %v6747_v33, 1 }
 0x64e   :  { %v3355_v60 = vmax.f32 %v3323_v11, %v3324_v7  ;;  %v3014_v11 = vpop.f32.mrf.mxu0  ;;  %v3063_v7 = vpop.f32.mrf.mxu1 }
 0x653   :  { %v3236_v19 = vpop.f32.mrf.mxu2  ;;  %v3285_v5 = vpop.f32.mrf.mxu3 }
 0x654   :  { %v3325_v26 = vadd.f32 %v3236_v19, %v3090_v61  ;;  %v3326_v27 = vadd.f32 %v3285_v5, %v3091_v35  ;;  %v4719_v61 = vld [vmem:[%s6832_s4 + $0x38] sm:$0xff]  ;;  %v4718_v5 = vld [vmem:[%s6832_s4 + $0x30] sm:$0xff] }
 0x655   :  { %3524 = vmatpush.bf16.msra.mxu1 %v4719_v61 }
 0x656   :  { %v3356_v20 = vmax.f32 %v3325_v26, %v3326_v27 }
 0x659   :  { %3525 = vmatpush.bf16.msra.mxu1 %v4718_v5  ;;  %v7130_v5 = vld [vmem:[#allocation12_spill] sm:$0xff] }
 0x65b   :  { %v3239_v57 = vpop.f32.mrf.mxu2  ;;  %v3288_v14 = vpop.f32.mrf.mxu3 }
 0x65c   :  { %v3327_v45 = vadd.f32 %v3239_v57, %v3092_v1  ;;  %v3328_v25 = vadd.f32 %v3288_v14, %v3093_v28  ;;  %v3065_v1 = vpop.f32.mrf.mxu1  ;;  %v3099_v57 = vadd.f32 %v3060_v24, %v6607_v53  ;;  %v4724_v14 = vld [vmem:[%s6832_s4 + $0x60] sm:$0xff]  ;;  %v3100_v24 = vadd.f32 %v3014_v11, %v6617_v9 }
 0x65d   :  { %3526 = vmatpush.bf16.msra.mxu1 %v4717_v52  ;;  %3589 = vmatpush.bf16.msra.mxu2 %v4724_v14 }
 0x65e   :  { %v3357_v32 = vmax.f32 %v3327_v45, %v3328_v25  ;;  %v4729_v45 = vld [vmem:[%s6832_s4 + $0x88] sm:$0xff] }
 0x65f   :  { %3654 = vmatpush.bf16.msra.mxu3 %v4729_v45 }
 0x660   :  { %v3371_v38 = vmax.f32 %v3355_v60, %v3357_v32 }
 0x662   :  { %v3380_v62 = vadd.f32 %v6750_v29, %v3371_v38 }
 0x663   :  { %v3241_v8 = vpop.f32.mrf.mxu2  ;;  %v3290_v55 = vpop.f32.mrf.mxu3 }
 0x664   :  { %v3329_v31 = vadd.f32 %v3241_v8, %v3094_v40  ;;  %v3330_v2 = vadd.f32 %v3290_v55, %v3095_v23  ;;  %v3388_v60 = vmax.f32 %v3380_v62, 0.0  ;;  %v3068_v53 = vpop.f32.mrf.mxu1  ;;  %v3101_v23 = vadd.f32 %v3063_v7, %v6619_v3 }
 0x666   :  { %v3358_v58 = vmax.f32 %v3329_v31, %v3330_v2  ;;  %v3396_v39 = vpack.c.bf16 %v3388_v60, %v3388_v60 }
 0x668   :  { %v3372_v15 = vmax.f32 %v3356_v20, %v3358_v58  ;;  %v3016_v20 = vpop.f32.mrf.mxu0  ;;  %v3416_v28 = vunpack.c.l.b16 %v3396_v39  ;;  %v4723_v39 = vld [vmem:[%s6832_s4 + $0x58] sm:$0xff] }
 0x669   :  { %v3102_v60 = vadd.f32 %v3016_v20, %v6625_v63  ;;  %v4728_v63 = vld [vmem:[%s6832_s4 + $0x80] sm:$0xff]  ;;  %3590 = vmatpush.bf16.msra.mxu2 %v4723_v39 }
 0x66a   :  { %v3381_v35 = vadd.f32 %v6750_v29, %v3372_v15  ;;  %v3103_v15 = vadd.f32 %v3065_v1, %v6627_v47  ;;  %3655 = vmatpush.bf16.msra.mxu3 %v4728_v63  ;;  %v7132_v20 = vld [vmem:[#allocation18_spill] sm:$0xff] }
 0x66b   :  { %v3244_v41 = vpop.f32.mrf.mxu2  ;;  %v3293_v49 = vpop.f32.mrf.mxu3 }
 0x66c   :  { %v3389_v36 = vmax.f32 %v3381_v35, 0.0  ;;  %v3331_v59 = vadd.f32 %v3244_v41, %v3096_v10  ;;  %v3332_v19 = vadd.f32 %v3293_v49, %v3097_v13  ;;  %v3070_v13 = vpop.f32.mrf.mxu1 }
 0x66e   :  { %v3397_v26 = vpack.c.bf16 %v3389_v36, %v3389_v36  ;;  %v3359_v27 = vmax.f32 %v3331_v59, %v3332_v19  ;;  %v3105_v59 = vadd.f32 %v3068_v53, %v6639_v18  ;;  %v7129_v19 = vld [vmem:[#allocation65_spill] sm:$0xff] }
 0x670   :  { %v3417_v37 = vunpack.c.l.b16 %v3397_v26  ;;  %v3019_v21 = vpop.f32.mrf.mxu0  ;;  %v2584_v26 = vadd.f32 %v7130_v5, %v7129_v19 }
 0x671   :  { %v3104_v36 = vadd.f32 %v3019_v21, %v6637_v34 }
 0x672   :  { %v3418_v50 = vpack.c.b16 %v3417_v37, %v3416_v28  ;;  %v2871_v34 = vadd.f32 %v6641_v56, %v2584_v26 }
 0x673   :  { %v3246_v25 = vpop.f32.mrf.mxu2  ;;  %v3295_v32 = vpop.f32.mrf.mxu3 }
 0x674   :  { %v3333_v38 = vadd.f32 %v3246_v25, %v3098_v43  ;;  %v3334_v40 = vadd.f32 %v3295_v32, %v3099_v57  ;;  %4500 = vmatmul.msk.bf16.vlgmr.msra.gmra.mxu0 %vm3449_vm4, %v3418_v50  ;;  %v3073_v45 = vpop.f32.mrf.mxu1 }
 0x676   :  { %v3360_v30 = vmax.f32 %v3333_v38, %v3334_v40 }
 0x678   :  { %v3021_v10 = vpop.f32.mrf.mxu0 }
 0x679   :  { %v3106_v53 = vadd.f32 %v3021_v10, %v2871_v34 }
 0x67b   :  { %v3249_v8 = vpop.f32.mrf.mxu2  ;;  %v3298_v55 = vpop.f32.mrf.mxu3 }
 0x67c   :  { %v3335_v62 = vadd.f32 %v3249_v8, %v3100_v24  ;;  %v3336_v31 = vadd.f32 %v3298_v55, %v3101_v23 }
 0x67e   :  { %v3361_v2 = vmax.f32 %v3335_v62, %v3336_v31  ;;  %v3075_v31 = vpop.f32.mrf.mxu1 }
 0x680   :  { %v3373_v58 = vmax.f32 %v3359_v27, %v3361_v2  ;;  %v7131_v27 = vld [vmem:[#allocation5_spill] sm:$0xff]  ;;  %v3024_v14 = vpop.f32.mrf.mxu0 }
 0x681   :  { %v2633_v1 = vadd.f32 %v7132_v20, %v7131_v27  ;;  %v3108_v2 = vadd.f32 %v3024_v14, %v6653_v16 }
 0x682   :  { %v3382_v41 = vadd.f32 %v6750_v29, %v3373_v58  ;;  %v3109_v58 = vadd.f32 %v3073_v45, %v6655_v48 }
 0x683   :  { %v3251_v61 = vpop.f32.mrf.mxu2  ;;  %v3300_v35 = vpop.f32.mrf.mxu3  ;;  %v2872_v18 = vadd.f32 %v6643_v6, %v2633_v1 }
 0x684   :  { %v3337_v49 = vadd.f32 %v3251_v61, %v3102_v60  ;;  %v3338_v9 = vadd.f32 %v3300_v35, %v3103_v15  ;;  %v3390_v3 = vmax.f32 %v3382_v41, 0.0 }
 0x685   :  { %v3107_v24 = vadd.f32 %v3070_v13, %v2872_v18 }
 0x686   :  { %v3362_v11 = vmax.f32 %v3337_v49, %v3338_v9  ;;  %v3398_v52 = vpack.c.bf16 %v3390_v3, %v3390_v3  ;;  %v3078_v49 = vpop.f32.mrf.mxu1 }
 0x688   :  { %v3374_v7 = vmax.f32 %v3360_v30, %v3362_v11  ;;  %v3483_v38 = vunpack.c.l.b16 %v3398_v52  ;;  %v4722_v30 = vld [vmem:[%s6832_s4 + $0x50] sm:$0xff]  ;;  %v3026_v6 = vpop.f32.mrf.mxu0  ;;  %v3111_v11 = vadd.f32 %v3075_v31, %v6663_v4 }
 0x689   :  { %3591 = vmatpush.bf16.msra.mxu2 %v4722_v30  ;;  %v3110_v9 = vadd.f32 %v3026_v6, %v6661_v0  ;;  %v3113_v0 = vadd.f32 %v3078_v49, %v6675_v51 }
 0x68a   :  { %v3383_v47 = vadd.f32 %v6750_v29, %v3374_v7 }
 0x68b   :  { %v3254_v28 = vpop.f32.mrf.mxu2  ;;  %v3303_v37 = vpop.f32.mrf.mxu3 }
 0x68c   :  { %v3391_v50 = vmax.f32 %v3383_v47, 0.0  ;;  %v3339_v43 = vadd.f32 %v3254_v28, %v3104_v36  ;;  %v3340_v57 = vadd.f32 %v3303_v37, %v3105_v59  ;;  %v4727_v59 = vld [vmem:[%s6832_s4 + $0x78] sm:$0xff] }
 0x68d   :  { %3656 = vmatpush.bf16.msra.mxu3 %v4727_v59 }
 0x68e   :  { %v3399_v25 = vpack.c.bf16 %v3391_v50, %v3391_v50  ;;  %v3363_v32 = vmax.f32 %v3339_v43, %v3340_v57  ;;  %v3080_v52 = vpop.f32.mrf.mxu1 }
 0x690   :  { %v3484_v40 = vunpack.c.l.b16 %v3399_v25  ;;  %v3029_v41 = vpop.f32.mrf.mxu0 }
 0x691   :  { %v3112_v5 = vadd.f32 %v3029_v41, %v6673_v46  ;;  %v3115_v46 = vadd.f32 %v3080_v52, %v6686_v42 }
 0x692   :  { %v3485_v21 = vpack.c.b16 %v3484_v40, %v3483_v38 }
 0x693   :  { %v3256_v23 = vpop.f32.mrf.mxu2  ;;  %v3305_v8 = vpop.f32.mrf.mxu3 }
 0x694   :  { %v3341_v55 = vadd.f32 %v3256_v23, %v3106_v53  ;;  %v3342_v62 = vadd.f32 %v3305_v8, %v3107_v24  ;;  %4531 = vmatmul.msk.bf16.vlgmr.msra.gmra.mxu1 %vm3449_vm4, %v3485_v21 }
 0x696   :  { %v3364_v56 = vmax.f32 %v3341_v55, %v3342_v62  ;;  %v3083_v30 = vpop.f32.mrf.mxu1 }
 0x697   :  { %v3117_v53 = vadd.f32 %v3083_v30, %v6707_v22 }
 0x698   :  { %v3031_v37 = vpop.f32.mrf.mxu0 }
 0x699   :  { %v3114_v34 = vadd.f32 %v3031_v37, %v6684_v17 }
 0x69b   :  { %v3259_v60 = vpop.f32.mrf.mxu2  ;;  %v3308_v15 = vpop.f32.mrf.mxu3 }
 0x69c   :  { %v3343_v61 = vadd.f32 %v3259_v60, %v3108_v2  ;;  %v3344_v35 = vadd.f32 %v3308_v15, %v3109_v58 }
 0x69e   :  { %v3365_v10 = vmax.f32 %v3343_v61, %v3344_v35 }
 0x6a0   :  { %v3375_v13 = vmax.f32 %v3363_v32, %v3365_v10  ;;  %v3034_v40 = vpop.f32.mrf.mxu0 }
 0x6a1   :  { %v3116_v21 = vadd.f32 %v3034_v40, %v6705_v44 }
 0x6a2   :  { %v3384_v39 = vadd.f32 %v6750_v29, %v3375_v13 }
 0x6a3   :  { %v3261_v3 = vpop.f32.mrf.mxu2  ;;  %v3310_v7 = vpop.f32.mrf.mxu3 }
 0x6a4   :  { %v3345_v63 = vadd.f32 %v3261_v3, %v3110_v9  ;;  %v3346_v16 = vadd.f32 %v3310_v7, %v3111_v11  ;;  %v3392_v48 = vmax.f32 %v3384_v39, 0.0 }
 0x6a6   :  { %v3366_v47 = vmax.f32 %v3345_v63, %v3346_v16  ;;  %v3400_v27 = vpack.c.bf16 %v3392_v48, %v3392_v48 }
 0x6a8   :  { %v3376_v36 = vmax.f32 %v3364_v56, %v3366_v47  ;;  %v3548_v57 = vunpack.c.l.b16 %v3400_v27  ;;  %v3036_v42 = vpop.f32.mrf.mxu0  ;;  %v3085_v56 = vpop.f32.mrf.mxu1 }
 0x6a9   :  { %v3118_v6 = vadd.f32 %v3036_v42, %v6713_v12  ;;  %v3119_v31 = vadd.f32 %v3085_v56, %v6715_v54  ;;  %v3467_v54 = vperm.slane %v6747_v33, 2 }
 0x6aa   :  { %v3385_v19 = vadd.f32 %v6750_v29, %v3376_v36 }
 0x6ab   :  { %v3264_v4 = vpop.f32.mrf.mxu2  ;;  %v3313_v26 = vpop.f32.mrf.mxu3 }
 0x6ac   :  { %v3393_v20 = vmax.f32 %v3385_v19, 0.0  ;;  %v3347_v1 = vadd.f32 %v3264_v4, %v3112_v5  ;;  %v3348_v28 = vadd.f32 %v3313_v26, %v3113_v0 }
 0x6ae   :  { %v3401_v50 = vpack.c.bf16 %v3393_v20, %v3393_v20  ;;  %v3367_v43 = vmax.f32 %v3347_v1, %v3348_v28 }
 0x6b0   :  { %v3549_v14 = vunpack.c.l.b16 %v3401_v50 }
 0x6b2   :  { %v3550_v45 = vpack.c.b16 %v3549_v14, %v3548_v57 }
 0x6b3   :  { %v3266_v18 = vpop.f32.mrf.mxu2  ;;  %v3315_v51 = vpop.f32.mrf.mxu3 }
 0x6b4   :  { %v3349_v25 = vadd.f32 %v3266_v18, %v3114_v34  ;;  %v3350_v32 = vadd.f32 %v3315_v51, %v3115_v46  ;;  %4562 = vmatmul.msk.bf16.vlgmr.msra.gmra.mxu2 %vm3449_vm4, %v3550_v45 }
 0x6b6   :  { %v3368_v38 = vmax.f32 %v3349_v25, %v3350_v32 }
 0x6bb   :  { %v3269_v24 = vpop.f32.mrf.mxu2  ;;  %v3318_v23 = vpop.f32.mrf.mxu3 }
 0x6bc   :  { %v3351_v8 = vadd.f32 %v3269_v24, %v3116_v21  ;;  %v3352_v55 = vadd.f32 %v3318_v23, %v3117_v53 }
 0x6be   :  { %v3369_v17 = vmax.f32 %v3351_v8, %v3352_v55 }
 0x6c0   :  { %v3377_v62 = vmax.f32 %v3367_v43, %v3369_v17 }
 0x6c2   :  { %v3386_v60 = vadd.f32 %v6750_v29, %v3377_v62 }
 0x6c3   :  { %v3271_v2 = vpop.f32.mrf.mxu2  ;;  %v3320_v58 = vpop.f32.mrf.mxu3 }
 0x6c4   :  { %v3353_v15 = vadd.f32 %v3271_v2, %v3118_v6  ;;  %v3354_v44 = vadd.f32 %v3320_v58, %v3119_v31  ;;  %v3394_v22 = vmax.f32 %v3386_v60, 0.0 }
 0x6c6   :  { %v3370_v61 = vmax.f32 %v3353_v15, %v3354_v44  ;;  %v3402_v13 = vpack.c.bf16 %v3394_v22, %v3394_v22 }
 0x6c8   :  { %v3378_v35 = vmax.f32 %v3368_v38, %v3370_v61  ;;  %v3613_v9 = vunpack.c.l.b16 %v3402_v13 }
 0x6ca   :  { %v3387_v10 = vadd.f32 %v6750_v29, %v3378_v35 }
 0x6cc   :  { %v3395_v41 = vmax.f32 %v3387_v10, 0.0 }
 0x6ce   :  { %v3403_v49 = vpack.c.bf16 %v3395_v41, %v3395_v41 }
 0x6d0   :  { %v3614_v11 = vunpack.c.l.b16 %v3403_v49 }
 0x6d2   :  { %v3615_v3 = vpack.c.b16 %v3614_v11, %v3613_v9 }
 0x6d4   :  { %4593 = vmatmul.msk.bf16.vlgmr.msra.gmra.mxu3 %vm3449_vm4, %v3615_v3 }
 0x6f1   :  { %v3462_v12 = vpop.f32.mrf.mxu0 }
 0x6f2   :  { %v3468_v63 = vadd.f32 %v3467_v54, %v3462_v12 }
 0x6f9   :  { %v3464_v48 = vpop.f32.mrf.mxu0 }
 0x6fa   :  { %v3469_v19 = vadd.f32 %v3467_v54, %v3464_v48 }
 0x711   :  { %v3528_v7 = vpop.f32.mrf.mxu1 }
 0x712   :  { %v3533_v16 = vadd.f32 %v3528_v7, %v3468_v63 }
 0x719   :  { %v3530_v29 = vpop.f32.mrf.mxu1 }
 0x71a   :  { %v3534_v0 = vadd.f32 %v3530_v29, %v3469_v19 }
 0x737   :  { %v3593_v39 = vpop.f32.mrf.mxu2 }
 0x738   :  { %v3598_v47 = vadd.f32 %v3593_v39, %v3533_v16 }
 0x73f   :  { %v3595_v5 = vpop.f32.mrf.mxu2 }
 0x740   :  { %v3599_v4 = vadd.f32 %v3595_v5, %v3534_v0 }
 0x757   :  { %v3658_v36 = vpop.f32.mrf.mxu3 }
 0x758   :  { %v3663_v59 = vadd.f32 %v3658_v36, %v3598_v47 }
 0x75a   :  { %3665 = vst [vmem:[%s6833_s5] sm:$0xff] %v3663_v59 }
 0x75f   :  { %v3660_v26 = vpop.f32.mrf.mxu3 }
 0x760   :  { %v3664_v27 = vadd.f32 %v3660_v26, %v3599_v4 }
 0x762   :  { %3666 = vst [vmem:[%s6833_s5 + $0x8] sm:$0xff] %v3664_v27 }
 0x763   :  { %3671 = vsyncpa [#allocation3], 1 }

</bundles_post_ra>
